<compile_context>
chip_gen: v5e
topology: v5e:2x2
jax: 0.10.0
libtpu: 0.0.40
codegen_flags: <defaults>
</compile_context>

<pallas_src>
import functools

import jax
import jax.numpy as jnp
from jax.experimental import pallas as pl
from jax.experimental.pallas import tpu as pltpu

EMBED = 2048  # SelfLoss.__init__ hard-codes embedding_size = 2048


def _self_loss_kernel(x_ref, k_ref, tgt_ref, out_ref, acc_ct_ref, acc_rs_ref,
                      *, alpha, beta, n, num_class, tk, num_e_steps):
    kk = pl.program_id(0)

    x = x_ref[...]                                       # (N, tk), native dtype

    # Proxy kernel is VMEM-resident across the whole grid; slice the current E
    # window locally instead of re-issuing a strided HBM DMA per step.
    if num_e_steps == 1:
        k_slab = k_ref[...]                              # (E, C)
    else:
        start = pl.multiple_of(kk * tk, 128)
        k_slab = k_ref[pl.ds(start, tk), :]              # (tk, C)

    # MXU: partial un-normalized cos_theta = x @ kernel (f32 accumulation).
    ct_part = jnp.dot(x, k_slab, preferred_element_type=jnp.float32)   # (N, C)

    # sim_mat = x @ x.T is never formed.  Downstream only consumes
    # rowsum(sim_mat)[0] and rowsum(sim_mat)[1]:
    #   rowsum_i = sum_e x[i, e] * colsum_e,  colsum_e = sum_rows x[:, e],
    # which is separable per E tile, so only a (2, 1) partial is accumulated.
    x32 = x.astype(jnp.float32)
    colsum = jnp.sum(x32, axis=0, keepdims=True)                        # (1, tk)
    rs_part = jnp.sum(x32[0:2, :] * colsum, axis=1, keepdims=True)      # (2, 1)

    if num_e_steps == 1:
        acc_ct_ref[...] = ct_part
        acc_rs_ref[...] = rs_part
    else:
        @pl.when(kk == 0)
        def _init():
            acc_ct_ref[...] = jnp.zeros_like(acc_ct_ref)
            acc_rs_ref[...] = jnp.zeros_like(acc_rs_ref)

        acc_ct_ref[...] += ct_part
        acc_rs_ref[...] += rs_part

    def _finalize():
        # Column L2 norms of the resident proxy kernel, computed exactly once
        # and folded into a post-scale of cos_theta (EUP rsqrt).  torch's
        # l2_norm has no eps, so neither does this.
        kf = k_ref[...].astype(jnp.float32)
        inv_norm = jax.lax.rsqrt(jnp.sum(kf * kf, axis=0, keepdims=True))  # (1, C)
        cos_theta = acc_ct_ref[...] * inv_norm                             # (N, C)

        tgt_col = tgt_ref[...]                                             # (N, 1)
        col_ids = jax.lax.broadcasted_iota(jnp.int32, (n, num_class), 1)
        index = col_ids == tgt_col                                         # one-hot bool

        # Exactly one target per row: index.sum() == n, (~index).sum() == n*(C-1).
        pos_sum = jnp.sum(jnp.where(index, cos_theta, 0.0))
        mean_proxy_pos = pos_sum / float(n)
        mean_proxy_neg = ((jnp.sum(cos_theta) - pos_sum)
                          / float(n * (num_class - 1)))

        # output[index] = phi[index]; output *= alpha
        output = jnp.where(index, cos_theta - beta, cos_theta) * alpha

        max_out = jnp.max(output, axis=1, keepdims=True)                    # (N, 1)
        margin = jnp.sum(jnp.where(index, output, 0.0), axis=1, keepdims=True)
        # Stabilized (mathematically identical) form of
        # log(sum(exp(output) * (1 - index), dim=1)); torch's unstabilized
        # version can overflow f32 for large alpha * ||x||.
        neg_exp = jnp.where(index, 0.0, jnp.exp(output - max_out))
        logit = jnp.log(jnp.sum(neg_exp, axis=1, keepdims=True)) + max_out
        loss_vec = logit - margin
        mask_f = ((max_out - margin) > 0.0).astype(jnp.float32)
        n_hard = jnp.sum(mask_f)
        # torch guards with python max(loss_mask.sum(), 1); this matches.
        loss = jnp.sum(loss_vec * mask_f) / jnp.maximum(n_hard, 1.0)

        # pred = argmax(output, 1): lowest class index among exact-tie maxima
        # (torch.argmax tie order is unspecified; exact f32 ties are rare).
        pred = jnp.min(jnp.where(output == max_out, col_ids, num_class),
                       axis=1, keepdims=True)
        prec = jnp.sum((pred == tgt_col).astype(jnp.float32)) / float(n)
        # TODO(synk): torch returns prec via .item() as a Python float; here it
        # stays a traced f32 scalar.

        # sim_mat[long_idx].sum() with long_idx in {0,1} equals
        #   (#zeros)*rowsum0 + (#ones)*rowsum1   (advanced row indexing, not a
        # boolean mask); the reference divides by the count of ones
        # (.sum()/count, not .mean()), guarding only the positive term with
        # max(1., .) — both replicated exactly below.
        rs = acc_rs_ref[...]                                               # (2, 1)
        rowsum0 = jnp.sum(rs[0:1, :])
        rowsum1 = jnp.sum(rs[1:2, :])
        counts = jnp.sum(jnp.where(index, 1.0, 0.0), axis=0, keepdims=True)  # (1, C)
        same_pairs = jnp.sum(counts * counts)        # == sim_label.sum()
        total = float(n * n)
        cnt_pos = same_pairs - float(n)              # ones in (sim_label - eye)
        cnt_neg = total - same_pairs                 # ones in (1 - sim_label)
        mean_pos_sim = ((cnt_pos * rowsum1 + (total - cnt_pos) * rowsum0)
                        / jnp.maximum(cnt_pos, 1.0))
        # Unguarded divide matches torch (inf/nan if every pair shares a label).
        mean_neg_sim = (cnt_neg * rowsum1 + (total - cnt_neg) * rowsum0) / cnt_neg

        out_ref[0] = loss
        out_ref[1] = prec
        out_ref[2] = mean_proxy_pos
        out_ref[3] = mean_proxy_neg
        out_ref[4] = mean_pos_sim
        out_ref[5] = mean_neg_sim
        out_ref[6] = jnp.float32(0.0)
        out_ref[7] = jnp.float32(0.0)

    if num_e_steps == 1:
        _finalize()
    else:
        @pl.when(kk == num_e_steps - 1)
        def _():
            _finalize()


def _vmem_budget_bytes():
    """~75% of this generation's physical VMEM (v7x 64 MiB -> 48 MiB budget,
    v5e/v6e 128 MiB -> 96 MiB).  Conservative v7x-sized fallback if the query
    is unavailable."""
    try:
        cap = int(pltpu.get_tpu_info().vmem_capacity_bytes)
    except Exception:
        cap = 64 * 1024 * 1024
    return (3 * cap) // 4


def _plan_tiles(n, e, c, x_isize, k_isize, budget):
    """Largest E tile for the streamed input slab such that the whole working
    set (resident proxy kernel + accumulators + double-buffered x slab) fits
    the per-generation VMEM budget.  For E=2048 and modest N this collapses to
    a single grid step (tk = E)."""
    c_pad = max(128, ((c + 127) // 128) * 128)   # lane padding of the last dim
    n_pad = max(8, ((n + 7) // 8) * 8)           # sublane padding
    fixed = 2 * e * c_pad * k_isize              # resident proxy kernel (2 buffers)
    fixed += n_pad * c_pad * 4                   # (N, C) f32 cos_theta accumulator
    fixed += 8 * 128 * 4                         # (2, 1) rowsum accumulator (1 vreg)
    fixed += 2 * n_pad * 128 * 4                 # (N, 1) int32 targets block
    candidates = [e] + [t for t in (1024, 512, 256, 128) if t < e and e % t == 0]
    tk = candidates[-1]
    for t in candidates:                         # largest fitting tile wins
        if fixed + 2 * n_pad * max(t, 128) * x_isize <= budget:
            tk = t
            break
    return tk


def self_loss(inputs, targets, kernel, *, alpha, beta):
    """Pallas forward of SelfLoss.

    Returns (loss, prec, mean_proxy_pos, mean_proxy_neg, mean_pos_sim, mean_neg_sim).
    """
    n, e = inputs.shape
    e2, c = kernel.shape
    assert e2 == e
    assert n >= 2, "SelfLoss pairwise terms reference rows 0 and 1 of sim_mat"

    x_isize = jnp.dtype(inputs.dtype).itemsize
    k_isize = jnp.dtype(kernel.dtype).itemsize
    budget = _vmem_budget_bytes()
    tk = _plan_tiles(n, e, c, x_isize, k_isize, budget)
    n_k = e // tk
    tgt_col = targets.reshape(n, 1).astype(jnp.int32)

    cost = pl.CostEstimate(
        flops=2 * n * e * c + n * e + 4 * e + 2 * e * c + 16 * n * c,
        transcendentals=n * c + 2 * n + c,
        bytes_accessed=n * e * x_isize + e * c * k_isize + n * 4 + 8 * 4,
    )

    # TODO(synk): a leading "parallel" N-block axis could use v7x's second
    # TensorCore for very large N; omitted (needs a cross-core colsum fix-up).
    out = pl.pallas_call(
        functools.partial(_self_loss_kernel, alpha=float(alpha), beta=float(beta),
                          n=n, num_class=c, tk=tk, num_e_steps=n_k),
        out_shape=jax.ShapeDtypeStruct((8,), jnp.float32),
        grid=(n_k,),
        in_specs=[
            pl.BlockSpec((n, tk), lambda kk: (0, kk)),   # streamed input slab (N, tk)
            pl.BlockSpec((e, c), lambda kk: (0, 0)),     # resident proxy kernel (E, C)
            pl.BlockSpec((n, 1), lambda kk: (0, 0)),     # targets column (N, 1)
        ],
        out_specs=pl.BlockSpec(memory_space=pltpu.MemorySpace.SMEM),
        scratch_shapes=[
            pltpu.VMEM((n, c), jnp.float32),   # un-normalized cos_theta accumulator
            pltpu.VMEM((2, 1), jnp.float32),   # rowsum(sim_mat)[0:2] accumulator
        ],
        compiler_params=pltpu.CompilerParams(
            dimension_semantics=("arbitrary",),          # E is a reduction axis
            vmem_limit_bytes=budget,
        ),
        cost_estimate=cost,
    )(inputs, kernel, tgt_col)

    return tuple(out[i] for i in range(6))


if __name__ == "__main__":
    key = jax.random.PRNGKey(0)
    k_in, k_tgt, k_ker = jax.random.split(key, 3)

    n, num_class = 8, 16
    inputs = jax.random.normal(k_in, (n, EMBED), dtype=jnp.float32)
    targets = jax.random.randint(k_tgt, (n,), 0, num_class, dtype=jnp.int32)
    # nn.init.normal_(kernel, std=0.001), shape (embedding_size=2048, num_class)
    kernel = 0.001 * jax.random.normal(k_ker, (EMBED, num_class), dtype=jnp.float32)

    outs = self_loss(inputs, targets, kernel, alpha=2.0, beta=0.1)
    outs = jax.block_until_ready(outs)
    print("KERNEL_OK")
</pallas_src>

<mosaic_0001>
module attributes {stable_mosaic.version = 11 : i64} {
  func.func @_self_loss_kernel(%arg0: i32, %arg1: memref<8x2048xf32, #tpu.memory_space<vmem>>, %arg2: memref<2048x16xf32, #tpu.memory_space<vmem>>, %arg3: memref<8x1xi32, #tpu.memory_space<vmem>>, %arg4: memref<8xf32, #tpu.memory_space<smem>>, %arg5: memref<8x16xf32, #tpu.memory_space<vmem>>, %arg6: memref<2x1xf32, #tpu.memory_space<vmem>>) attributes {dimension_semantics = [#tpu.dimension_semantics<arbitrary>], iteration_bounds = array<i64: 1>, scalar_prefetch = 0 : i64, scratch_operands = 2 : i64, tpu.core_type = #tpu.core_type<tc>, window_params = [{transform_indices = @transform_0, window_bounds = array<i64: 8, 2048>}, {pipeline_mode = #tpu.pipeline_mode<synchronous>, transform_indices = @transform_1, window_bounds = array<i64: 2048, 16>}, {pipeline_mode = #tpu.pipeline_mode<synchronous>, transform_indices = @transform_2, window_bounds = array<i64: 8, 1>}, {transform_indices = @transform_3, window_bounds = array<i64: 8>}]} {
    %c0 = arith.constant 0 : index
    %c0_0 = arith.constant 0 : index
    %0 = vector.load %arg1[%c0, %c0_0] : memref<8x2048xf32, #tpu.memory_space<vmem>>, vector<8x2048xf32>
    %c0_1 = arith.constant 0 : index
    %c0_2 = arith.constant 0 : index
    %1 = vector.load %arg2[%c0_1, %c0_2] : memref<2048x16xf32, #tpu.memory_space<vmem>>, vector<2048x16xf32>
    %cst = arith.constant dense<0.000000e+00> : vector<8x16xf32>
    %2 = tpu.matmul %0, %1, %cst {dimension_numbers = #tpu.dot_dimension_numbers<[1], [0], [0], [1], [0, 0, 1, 1], [], []>} : vector<8x2048xf32>, vector<2048x16xf32>, vector<8x16xf32> -> vector<8x16xf32>
    %cst_3 = arith.constant dense<0.000000e+00> : vector<2048xf32>
    %3 = vector.multi_reduction <add>, %0, %cst_3 [0] : vector<8x2048xf32> to vector<2048xf32>
    %4 = vector.shape_cast %3 : vector<2048xf32> to vector<1x2048xf32>
    %5 = vector.extract_strided_slice %0 {offsets = [0, 0], sizes = [2, 2048], strides = [1, 1]} : vector<8x2048xf32> to vector<2x2048xf32>
    %6 = vector.broadcast %4 : vector<1x2048xf32> to vector<2x2048xf32>
    %7 = arith.mulf %5, %6 : vector<2x2048xf32>
    %cst_4 = arith.constant dense<0.000000e+00> : vector<2xf32>
    %8 = vector.multi_reduction <add>, %7, %cst_4 [1] : vector<2x2048xf32> to vector<2xf32>
    %9 = vector.shape_cast %8 : vector<2xf32> to vector<2x1xf32>
    %c0_5 = arith.constant 0 : index
    %c0_6 = arith.constant 0 : index
    %10 = vector.load %arg5[%c0_5, %c0_6] : memref<8x16xf32, #tpu.memory_space<vmem>>, vector<8x16xf32>
    tpu.vector_store %arg5[%c0_5, %c0_6], %2 {strides = array<i32>} : memref<8x16xf32, #tpu.memory_space<vmem>>, vector<8x16xf32>,
    %c0_7 = arith.constant 0 : index
    %c0_8 = arith.constant 0 : index
    %11 = vector.load %arg6[%c0_7, %c0_8] : memref<2x1xf32, #tpu.memory_space<vmem>>, vector<2x1xf32>
    tpu.vector_store %arg6[%c0_7, %c0_8], %9 {strides = array<i32>} : memref<2x1xf32, #tpu.memory_space<vmem>>, vector<2x1xf32>,
    %c0_9 = arith.constant 0 : index
    %c0_10 = arith.constant 0 : index
    %12 = vector.load %arg2[%c0_9, %c0_10] : memref<2048x16xf32, #tpu.memory_space<vmem>>, vector<2048x16xf32>
    %13 = arith.mulf %12, %12 : vector<2048x16xf32>
    %cst_11 = arith.constant dense<0.000000e+00> : vector<16xf32>
    %14 = vector.multi_reduction <add>, %13, %cst_11 [0] : vector<2048x16xf32> to vector<16xf32>
    %15 = vector.shape_cast %14 : vector<16xf32> to vector<1x16xf32>
    %16 = math.rsqrt %15 : vector<1x16xf32>
    %c0_12 = arith.constant 0 : index
    %c0_13 = arith.constant 0 : index
    %17 = vector.load %arg5[%c0_12, %c0_13] : memref<8x16xf32, #tpu.memory_space<vmem>>, vector<8x16xf32>
    %18 = vector.broadcast %16 : vector<1x16xf32> to vector<8x16xf32>
    %19 = arith.mulf %17, %18 : vector<8x16xf32>
    %c0_14 = arith.constant 0 : index
    %c0_15 = arith.constant 0 : index
    %20 = vector.load %arg3[%c0_14, %c0_15] : memref<8x1xi32, #tpu.memory_space<vmem>>, vector<8x1xi32>
    %21 = tpu.iota {dimensions = array<i32: 1>} : vector<8x16xi32>
    %22 = vector.broadcast %20 : vector<8x1xi32> to vector<8x16xi32>
    %23 = arith.cmpi eq, %21, %22 : vector<8x16xi32>
    %cst_16 = arith.constant 0.000000e+00 : f32
    %24 = vector.broadcast %cst_16 : f32 to vector<8x16xf32>
    %25 = arith.select %23, %19, %24 : vector<8x16xi1>, vector<8x16xf32>
    %26 = vector.shape_cast %25 : vector<8x16xf32> to vector<1x8x16xf32>
    %cst_17 = arith.constant dense<0.000000e+00> : vector<1xf32>
    %27 = vector.multi_reduction <add>, %26, %cst_17 [1, 2] : vector<1x8x16xf32> to vector<1xf32>
    %28 = vector.shape_cast %27 : vector<1xf32> to vector<1x1x1xf32>
    %29 = vector.extract %28[0, 0, 0] : f32 from vector<1x1x1xf32>
    %cst_18 = arith.constant 8.000000e+00 : f32
    %30 = arith.divf %29, %cst_18 : f32
    %31 = vector.shape_cast %19 : vector<8x16xf32> to vector<1x8x16xf32>
    %cst_19 = arith.constant dense<0.000000e+00> : vector<1xf32>
    %32 = vector.multi_reduction <add>, %31, %cst_19 [1, 2] : vector<1x8x16xf32> to vector<1xf32>
    %33 = vector.shape_cast %32 : vector<1xf32> to vector<1x1x1xf32>
    %34 = vector.extract %33[0, 0, 0] : f32 from vector<1x1x1xf32>
    %35 = arith.subf %34, %29 : f32
    %cst_20 = arith.constant 1.200000e+02 : f32
    %36 = arith.divf %35, %cst_20 : f32
    %cst_21 = arith.constant 1.000000e-01 : f32
    %37 = vector.broadcast %cst_21 : f32 to vector<8x16xf32>
    %38 = arith.subf %19, %37 : vector<8x16xf32>
    %39 = arith.select %23, %38, %19 : vector<8x16xi1>, vector<8x16xf32>
    %cst_22 = arith.constant 2.000000e+00 : f32
    %40 = vector.broadcast %cst_22 : f32 to vector<8x16xf32>
    %41 = arith.mulf %39, %40 : vector<8x16xf32>
    %cst_23 = arith.constant dense<0xFF800000> : vector<8xf32>
    %42 = vector.multi_reduction <maximumf>, %41, %cst_23 [1] : vector<8x16xf32> to vector<8xf32>
    %43 = vector.shape_cast %42 : vector<8xf32> to vector<8x1xf32>
    %cst_24 = arith.constant 0.000000e+00 : f32
    %44 = vector.broadcast %cst_24 : f32 to vector<8x16xf32>
    %45 = arith.select %23, %41, %44 : vector<8x16xi1>, vector<8x16xf32>
    %cst_25 = arith.constant dense<0.000000e+00> : vector<8xf32>
    %46 = vector.multi_reduction <add>, %45, %cst_25 [1] : vector<8x16xf32> to vector<8xf32>
    %47 = vector.shape_cast %46 : vector<8xf32> to vector<8x1xf32>
    %48 = vector.broadcast %43 : vector<8x1xf32> to vector<8x16xf32>
    %49 = arith.subf %41, %48 : vector<8x16xf32>
    %50 = math.exp %49 : vector<8x16xf32>
    %cst_26 = arith.constant 0.000000e+00 : f32
    %51 = vector.broadcast %cst_26 : f32 to vector<8x16xf32>
    %52 = arith.select %23, %51, %50 : vector<8x16xi1>, vector<8x16xf32>
    %cst_27 = arith.constant dense<0.000000e+00> : vector<8xf32>
    %53 = vector.multi_reduction <add>, %52, %cst_27 [1] : vector<8x16xf32> to vector<8xf32>
    %54 = vector.shape_cast %53 : vector<8xf32> to vector<8x1xf32>
    %55 = math.log %54 : vector<8x1xf32>
    %56 = arith.addf %55, %43 : vector<8x1xf32>
    %57 = arith.subf %56, %47 : vector<8x1xf32>
    %58 = arith.subf %43, %47 : vector<8x1xf32>
    %cst_28 = arith.constant 0.000000e+00 : f32
    %59 = vector.broadcast %cst_28 : f32 to vector<8x1xf32>
    %60 = arith.cmpf ogt, %58, %59 : vector<8x1xf32>
    %61 = arith.extui %60 : vector<8x1xi1> to vector<8x1xi32>
    %62 = arith.sitofp %61 : vector<8x1xi32> to vector<8x1xf32>
    %63 = vector.shape_cast %62 : vector<8x1xf32> to vector<1x8x1xf32>
    %cst_29 = arith.constant dense<0.000000e+00> : vector<1xf32>
    %64 = vector.multi_reduction <add>, %63, %cst_29 [1, 2] : vector<1x8x1xf32> to vector<1xf32>
    %65 = vector.shape_cast %64 : vector<1xf32> to vector<1x1x1xf32>
    %66 = vector.extract %65[0, 0, 0] : f32 from vector<1x1x1xf32>
    %67 = arith.mulf %57, %62 : vector<8x1xf32>
    %68 = vector.shape_cast %67 : vector<8x1xf32> to vector<1x8x1xf32>
    %cst_30 = arith.constant dense<0.000000e+00> : vector<1xf32>
    %69 = vector.multi_reduction <add>, %68, %cst_30 [1, 2] : vector<1x8x1xf32> to vector<1xf32>
    %70 = vector.shape_cast %69 : vector<1xf32> to vector<1x1x1xf32>
    %71 = vector.extract %70[0, 0, 0] : f32 from vector<1x1x1xf32>
    %cst_31 = arith.constant 1.000000e+00 : f32
    %72 = arith.maximumf %66, %cst_31 : f32
    %73 = arith.divf %71, %72 : f32
    %74 = vector.broadcast %43 : vector<8x1xf32> to vector<8x16xf32>
    %75 = arith.cmpf oeq, %41, %74 : vector<8x16xf32>
    %c16_i32 = arith.constant 16 : i32
    %76 = vector.broadcast %c16_i32 : i32 to vector<8x16xi32>
    %77 = arith.select %75, %21, %76 : vector<8x16xi1>, vector<8x16xi32>
    %cst_32 = arith.constant dense<2147483647> : vector<8xi32>
    %78 = vector.multi_reduction <minsi>, %77, %cst_32 [1] : vector<8x16xi32> to vector<8xi32>
    %79 = vector.shape_cast %78 : vector<8xi32> to vector<8x1xi32>
    %80 = arith.cmpi eq, %79, %20 : vector<8x1xi32>
    %81 = arith.extui %80 : vector<8x1xi1> to vector<8x1xi32>
    %82 = arith.sitofp %81 : vector<8x1xi32> to vector<8x1xf32>
    %83 = vector.shape_cast %82 : vector<8x1xf32> to vector<1x8x1xf32>
    %cst_33 = arith.constant dense<0.000000e+00> : vector<1xf32>
    %84 = vector.multi_reduction <add>, %83, %cst_33 [1, 2] : vector<1x8x1xf32> to vector<1xf32>
    %85 = vector.shape_cast %84 : vector<1xf32> to vector<1x1x1xf32>
    %86 = vector.extract %85[0, 0, 0] : f32 from vector<1x1x1xf32>
    %cst_34 = arith.constant 8.000000e+00 : f32
    %87 = arith.divf %86, %cst_34 : f32
    %c0_35 = arith.constant 0 : index
    %c0_36 = arith.constant 0 : index
    %88 = vector.load %arg6[%c0_35, %c0_36] : memref<2x1xf32, #tpu.memory_space<vmem>>, vector<2x1xf32>
    %89 = vector.extract_strided_slice %88 {offsets = [0, 0], sizes = [1, 1], strides = [1, 1]} : vector<2x1xf32> to vector<1x1xf32>
    %90 = vector.shape_cast %89 : vector<1x1xf32> to vector<1x1x1xf32>
    %cst_37 = arith.constant dense<0.000000e+00> : vector<1xf32>
    %91 = vector.multi_reduction <add>, %90, %cst_37 [1, 2] : vector<1x1x1xf32> to vector<1xf32>
    %92 = vector.shape_cast %91 : vector<1xf32> to vector<1x1x1xf32>
    %93 = vector.extract %92[0, 0, 0] : f32 from vector<1x1x1xf32>
    %94 = vector.extract_strided_slice %88 {offsets = [1, 0], sizes = [1, 1], strides = [1, 1]} : vector<2x1xf32> to vector<1x1xf32>
    %95 = vector.shape_cast %94 : vector<1x1xf32> to vector<1x1x1xf32>
    %cst_38 = arith.constant dense<0.000000e+00> : vector<1xf32>
    %96 = vector.multi_reduction <add>, %95, %cst_38 [1, 2] : vector<1x1x1xf32> to vector<1xf32>
    %97 = vector.shape_cast %96 : vector<1xf32> to vector<1x1x1xf32>
    %98 = vector.extract %97[0, 0, 0] : f32 from vector<1x1x1xf32>
    %cst_39 = arith.constant 1.000000e+00 : f32
    %cst_40 = arith.constant 0.000000e+00 : f32
    %99 = vector.broadcast %cst_39 : f32 to vector<8x16xf32>
    %100 = vector.broadcast %cst_40 : f32 to vector<8x16xf32>
    %101 = arith.select %23, %99, %100 : vector<8x16xi1>, vector<8x16xf32>
    %cst_41 = arith.constant dense<0.000000e+00> : vector<16xf32>
    %102 = vector.multi_reduction <add>, %101, %cst_41 [0] : vector<8x16xf32> to vector<16xf32>
    %103 = vector.shape_cast %102 : vector<16xf32> to vector<1x16xf32>
    %104 = arith.mulf %103, %103 : vector<1x16xf32>
    %105 = vector.shape_cast %104 : vector<1x16xf32> to vector<1x1x16xf32>
    %cst_42 = arith.constant dense<0.000000e+00> : vector<1xf32>
    %106 = vector.multi_reduction <add>, %105, %cst_42 [1, 2] : vector<1x1x16xf32> to vector<1xf32>
    %107 = vector.shape_cast %106 : vector<1xf32> to vector<1x1x1xf32>
    %108 = vector.extract %107[0, 0, 0] : f32 from vector<1x1x1xf32>
    %cst_43 = arith.constant 8.000000e+00 : f32
    %109 = arith.subf %108, %cst_43 : f32
    %cst_44 = arith.constant 6.400000e+01 : f32
    %110 = arith.subf %cst_44, %108 : f32
    %111 = arith.mulf %109, %98 : f32
    %cst_45 = arith.constant 6.400000e+01 : f32
    %112 = arith.subf %cst_45, %109 : f32
    %113 = arith.mulf %112, %93 : f32
    %114 = arith.addf %111, %113 : f32
    %cst_46 = arith.constant 1.000000e+00 : f32
    %115 = arith.maximumf %109, %cst_46 : f32
    %116 = arith.divf %114, %115 : f32
    %117 = arith.mulf %110, %98 : f32
    %cst_47 = arith.constant 6.400000e+01 : f32
    %118 = arith.subf %cst_47, %110 : f32
    %119 = arith.mulf %118, %93 : f32
    %120 = arith.addf %117, %119 : f32
    %121 = arith.divf %120, %110 : f32
    %c0_48 = arith.constant 0 : index
    %122 = memref.load %arg4[%c0_48] : memref<8xf32, #tpu.memory_space<smem>>
    memref.store %73, %arg4[%c0_48] : memref<8xf32, #tpu.memory_space<smem>>
    %c1 = arith.constant 1 : index
    %123 = memref.load %arg4[%c1] : memref<8xf32, #tpu.memory_space<smem>>
    memref.store %87, %arg4[%c1] : memref<8xf32, #tpu.memory_space<smem>>
    %c2 = arith.constant 2 : index
    %124 = memref.load %arg4[%c2] : memref<8xf32, #tpu.memory_space<smem>>
    memref.store %30, %arg4[%c2] : memref<8xf32, #tpu.memory_space<smem>>
    %c3 = arith.constant 3 : index
    %125 = memref.load %arg4[%c3] : memref<8xf32, #tpu.memory_space<smem>>
    memref.store %36, %arg4[%c3] : memref<8xf32, #tpu.memory_space<smem>>
    %c4 = arith.constant 4 : index
    %126 = memref.load %arg4[%c4] : memref<8xf32, #tpu.memory_space<smem>>
    memref.store %116, %arg4[%c4] : memref<8xf32, #tpu.memory_space<smem>>
    %c5 = arith.constant 5 : index
    %127 = memref.load %arg4[%c5] : memref<8xf32, #tpu.memory_space<smem>>
    memref.store %121, %arg4[%c5] : memref<8xf32, #tpu.memory_space<smem>>
    %cst_49 = arith.constant 0.000000e+00 : f32
    %c6 = arith.constant 6 : index
    %128 = memref.load %arg4[%c6] : memref<8xf32, #tpu.memory_space<smem>>
    memref.store %cst_49, %arg4[%c6] : memref<8xf32, #tpu.memory_space<smem>>
    %cst_50 = arith.constant 0.000000e+00 : f32
    %c7 = arith.constant 7 : index
    %129 = memref.load %arg4[%c7] : memref<8xf32, #tpu.memory_space<smem>>
    memref.store %cst_50, %arg4[%c7] : memref<8xf32, #tpu.memory_space<smem>>
    return
  }
  func.func @transform_0(%arg0: i32) -> (i32, i32) {
    %c0_i32 = arith.constant 0 : i32
    %c0_i32_0 = arith.constant 0 : i32
    return %c0_i32, %arg0 : i32, i32
  }
  func.func @transform_1(%arg0: i32) -> (i32, i32) {
    %c0_i32 = arith.constant 0 : i32
    %c0_i32_0 = arith.constant 0 : i32
    %c0_i32_1 = arith.constant 0 : i32
    return %c0_i32, %c0_i32_0 : i32, i32
  }
  func.func @transform_2(%arg0: i32) -> (i32, i32) {
    %c0_i32 = arith.constant 0 : i32
    %c0_i32_0 = arith.constant 0 : i32
    %c0_i32_1 = arith.constant 0 : i32
    return %c0_i32, %c0_i32_0 : i32, i32
  }
  func.func @transform_3(%arg0: i32) -> i32 {
    %c0_i32 = arith.constant 0 : i32
    %c0_i32_0 = arith.constant 0 : i32
    return %c0_i32 : i32
  }
}

</mosaic_0001>

<bundles_post_ra>
// kernel: tpu_custom_call.1
= control target key start
LH: loop header
LB: loop body
LE: loop exit
PB: predicated region body
PF: predicated region fallthrough
CT: control target
= control target key end

     0   :  { %vm719_vm0 = vcmask 1041408   ;;  %vm753_vm1 = vcmask 130048   ;;  %s4258_s0 = inlined_call_operand.vmem [shape: f32[8,2048], index: 0, kind: input, shape index: {}]   ;;  %s4259_s1 = inlined_call_operand.vmem [shape: f32[2048,16], index: 1, kind: input, shape index: {}]   ;;  %s4260_s2 = inlined_call_operand.vmem [shape: s32[8,1], index: 2, kind: input, shape index: {}]   ;;  %s4261_s3 = inlined_call_operand.hbm [shape: f32[8], index: 3, kind: output, shape index: {}]  }
   0x1   :  { %v78_v0 = vld [vmem:[%s4259_s1 + $0x178] sm:$0xff]  ;;  %v77_v2 = vld [vmem:[%s4259_s1 + $0x170] sm:$0xff]  ;;  %v76_v6 = vld [vmem:[%s4259_s1 + $0x168] sm:$0xff] }
   0x2   :  { %v46_v1 = vld [vmem:[%s4259_s1 + $0x78] sm:$0xff]  ;;  %327 = vmatpush.msra.mxu2 %v78_v0  ;;  %v45_v4 = vld [vmem:[%s4259_s1 + $0x70] sm:$0xff]  ;;  %v44_v8 = vld [vmem:[%s4259_s1 + $0x68] sm:$0xff] }
   0x3   :  { %287 = vmatpush.msra.mxu0 %v46_v1  ;;  %v94_v3 = vld [vmem:[%s4259_s1 + $0x1f8] sm:$0xff]  ;;  %v93_v7 = vld [vmem:[%s4259_s1 + $0x1f0] sm:$0xff]  ;;  %v92_v10 = vld [vmem:[%s4259_s1 + $0x1e8] sm:$0xff] }
   0x4   :  { %v62_v5 = vld [vmem:[%s4259_s1 + $0xf8] sm:$0xff]  ;;  %347 = vmatpush.msra.mxu3 %v94_v3  ;;  %328 = vmatpush.msra.mxu2 %v77_v2  ;;  %v61_v9 = vld [vmem:[%s4259_s1 + $0xf0] sm:$0xff]  ;;  %v75_v11 = vld [vmem:[%s4259_s1 + $0x160] sm:$0xff] }
   0x5   :  { %307 = vmatpush.msra.mxu1 %v62_v5  ;;  %288 = vmatpush.msra.mxu0 %v45_v4  ;;  %v43_v12 = vld [vmem:[%s4259_s1 + $0x60] sm:$0xff]  ;;  %v60_v13 = vld [vmem:[%s4259_s1 + $0xe8] sm:$0xff]  ;;  %v74_v16 = vld [vmem:[%s4259_s1 + $0x158] sm:$0xff] }
   0x6   :  { %348 = vmatpush.msra.mxu3 %v93_v7  ;;  %329 = vmatpush.msra.mxu2 %v76_v6  ;;  %v91_v14 = vld [vmem:[%s4259_s1 + $0x1e0] sm:$0xff]  ;;  %v42_v17 = vld [vmem:[%s4259_s1 + $0x58] sm:$0xff]  ;;  %v73_v20 = vld [vmem:[%s4259_s1 + $0x150] sm:$0xff] }
   0x7   :  { %308 = vmatpush.msra.mxu1 %v61_v9  ;;  %289 = vmatpush.msra.mxu0 %v44_v8  ;;  %v59_v15 = vld [vmem:[%s4259_s1 + $0xe0] sm:$0xff]  ;;  %v90_v18 = vld [vmem:[%s4259_s1 + $0x1d8] sm:$0xff]  ;;  %v41_v21 = vld [vmem:[%s4259_s1 + $0x50] sm:$0xff] }
   0x8   :  { %349 = vmatpush.msra.mxu3 %v92_v10  ;;  %330 = vmatpush.msra.mxu2 %v75_v11  ;;  %v58_v19 = vld [vmem:[%s4259_s1 + $0xd8] sm:$0xff]  ;;  %v89_v22 = vld [vmem:[%s4259_s1 + $0x1d0] sm:$0xff]  ;;  %v72_v24 = vld [vmem:[%s4259_s1 + $0x148] sm:$0xff] }
   0x9   :  { %309 = vmatpush.msra.mxu1 %v60_v13  ;;  %290 = vmatpush.msra.mxu0 %v43_v12  ;;  %v57_v23 = vld [vmem:[%s4259_s1 + $0xd0] sm:$0xff]  ;;  %v40_v25 = vld [vmem:[%s4259_s1 + $0x48] sm:$0xff]  ;;  %v71_v28 = vld [vmem:[%s4259_s1 + $0x140] sm:$0xff] }
   0xa   :  { %350 = vmatpush.msra.mxu3 %v91_v14  ;;  %331 = vmatpush.msra.mxu2 %v74_v16  ;;  %v88_v26 = vld [vmem:[%s4259_s1 + $0x1c8] sm:$0xff]  ;;  %v39_v29 = vld [vmem:[%s4259_s1 + $0x40] sm:$0xff]  ;;  %v70_v32 = vld [vmem:[%s4259_s1 + $0x138] sm:$0xff] }
   0xb   :  { %310 = vmatpush.msra.mxu1 %v59_v15  ;;  %291 = vmatpush.msra.mxu0 %v42_v17  ;;  %v56_v27 = vld [vmem:[%s4259_s1 + $0xc8] sm:$0xff]  ;;  %v87_v30 = vld [vmem:[%s4259_s1 + $0x1c0] sm:$0xff]  ;;  %v38_v33 = vld [vmem:[%s4259_s1 + $0x38] sm:$0xff] }
   0xc   :  { %351 = vmatpush.msra.mxu3 %v90_v18  ;;  %332 = vmatpush.msra.mxu2 %v73_v20  ;;  %v55_v31 = vld [vmem:[%s4259_s1 + $0xc0] sm:$0xff]  ;;  %v86_v34 = vld [vmem:[%s4259_s1 + $0x1b8] sm:$0xff]  ;;  %v69_v36 = vld [vmem:[%s4259_s1 + $0x130] sm:$0xff] }
   0xd   :  { %311 = vmatpush.msra.mxu1 %v58_v19  ;;  %292 = vmatpush.msra.mxu0 %v41_v21  ;;  %v54_v35 = vld [vmem:[%s4259_s1 + $0xb8] sm:$0xff]  ;;  %v37_v37 = vld [vmem:[%s4259_s1 + $0x30] sm:$0xff]  ;;  %v68_v40 = vld [vmem:[%s4259_s1 + $0x128] sm:$0xff] }
   0xe   :  { %352 = vmatpush.msra.mxu3 %v89_v22  ;;  %333 = vmatpush.msra.mxu2 %v72_v24  ;;  %v85_v38 = vld [vmem:[%s4259_s1 + $0x1b0] sm:$0xff]  ;;  %v36_v41 = vld [vmem:[%s4259_s1 + $0x28] sm:$0xff]  ;;  %v67_v44 = vld [vmem:[%s4259_s1 + $0x120] sm:$0xff] }
   0xf   :  { %312 = vmatpush.msra.mxu1 %v57_v23  ;;  %293 = vmatpush.msra.mxu0 %v40_v25  ;;  %v53_v39 = vld [vmem:[%s4259_s1 + $0xb0] sm:$0xff]  ;;  %v84_v42 = vld [vmem:[%s4259_s1 + $0x1a8] sm:$0xff]  ;;  %v35_v45 = vld [vmem:[%s4259_s1 + $0x20] sm:$0xff] }
  0x10   :  { %353 = vmatpush.msra.mxu3 %v88_v26  ;;  %334 = vmatpush.msra.mxu2 %v71_v28  ;;  %v52_v43 = vld [vmem:[%s4259_s1 + $0xa8] sm:$0xff]  ;;  %v83_v46 = vld [vmem:[%s4259_s1 + $0x1a0] sm:$0xff]  ;;  %v66_v48 = vld [vmem:[%s4259_s1 + $0x118] sm:$0xff] }
  0x11   :  { %313 = vmatpush.msra.mxu1 %v56_v27  ;;  %294 = vmatpush.msra.mxu0 %v39_v29  ;;  %v51_v47 = vld [vmem:[%s4259_s1 + $0xa0] sm:$0xff]  ;;  %v34_v49 = vld [vmem:[%s4259_s1 + $0x18] sm:$0xff]  ;;  %v65_v52 = vld [vmem:[%s4259_s1 + $0x110] sm:$0xff] }
  0x12   :  { %354 = vmatpush.msra.mxu3 %v87_v30  ;;  %335 = vmatpush.msra.mxu2 %v70_v32  ;;  %v82_v50 = vld [vmem:[%s4259_s1 + $0x198] sm:$0xff]  ;;  %v33_v53 = vld [vmem:[%s4259_s1 + $0x10] sm:$0xff]  ;;  %v64_v56 = vld [vmem:[%s4259_s1 + $0x108] sm:$0xff] }
  0x13   :  { %314 = vmatpush.msra.mxu1 %v55_v31  ;;  %295 = vmatpush.msra.mxu0 %v38_v33  ;;  %v50_v51 = vld [vmem:[%s4259_s1 + $0x98] sm:$0xff]  ;;  %v81_v54 = vld [vmem:[%s4259_s1 + $0x190] sm:$0xff]  ;;  %v32_v57 = vld [vmem:[%s4259_s1 + $0x8] sm:$0xff] }
  0x14   :  { %355 = vmatpush.msra.mxu3 %v86_v34  ;;  %336 = vmatpush.msra.mxu2 %v69_v36  ;;  %v49_v55 = vld [vmem:[%s4259_s1 + $0x90] sm:$0xff]  ;;  %v80_v58 = vld [vmem:[%s4259_s1 + $0x188] sm:$0xff]  ;;  %v63_v60 = vld [vmem:[%s4259_s1 + $0x100] sm:$0xff] }
  0x15   :  { %315 = vmatpush.msra.mxu1 %v54_v35  ;;  %296 = vmatpush.msra.mxu0 %v37_v37  ;;  %v48_v59 = vld [vmem:[%s4259_s1 + $0x88] sm:$0xff]  ;;  %v31_v61 = vld [vmem:[%s4259_s1] sm:$0xff]  ;;  %v142_v62 = vld [vmem:[%s4259_s1 + $0x378] sm:$0xff] }
  0x16   :  { %356 = vmatpush.msra.mxu3 %v85_v38  ;;  %337 = vmatpush.msra.mxu2 %v68_v40  ;;  %v79_v63 = vld [vmem:[%s4259_s1 + $0x180] sm:$0xff]  ;;  %v110_v0 = vld [vmem:[%s4259_s1 + $0x278] sm:$0xff]  ;;  %v141_v2 = vld [vmem:[%s4259_s1 + $0x370] sm:$0xff] }
  0x17   :  { %316 = vmatpush.msra.mxu1 %v53_v39  ;;  %297 = vmatpush.msra.mxu0 %v36_v41  ;;  %v158_v1 = vld [vmem:[%s4259_s1 + $0x3f8] sm:$0xff]  ;;  %v47_v3 = vld [vmem:[%s4259_s1 + $0x80] sm:$0xff]  ;;  %v109_v4 = vld [vmem:[%s4259_s1 + $0x270] sm:$0xff] }
  0x18   :  { %357 = vmatpush.msra.mxu3 %v84_v42  ;;  %338 = vmatpush.msra.mxu2 %v67_v44  ;;  %v126_v5 = vld [vmem:[%s4259_s1 + $0x2f8] sm:$0xff]  ;;  %v140_v6 = vld [vmem:[%s4259_s1 + $0x368] sm:$0xff]  ;;  %v157_v7 = vld [vmem:[%s4259_s1 + $0x3f0] sm:$0xff] }
  0x19   :  { %317 = vmatpush.msra.mxu1 %v52_v43  ;;  %298 = vmatpush.msra.mxu0 %v35_v45  ;;  %v108_v8 = vld [vmem:[%s4259_s1 + $0x268] sm:$0xff]  ;;  %v125_v9 = vld [vmem:[%s4259_s1 + $0x2f0] sm:$0xff]  ;;  %v139_v10 = vld [vmem:[%s4259_s1 + $0x360] sm:$0xff] }
  0x1a   :  { %358 = vmatpush.msra.mxu3 %v83_v46  ;;  %339 = vmatpush.msra.mxu2 %v66_v48  ;;  %v156_v11 = vld [vmem:[%s4259_s1 + $0x3e8] sm:$0xff]  ;;  %v107_v12 = vld [vmem:[%s4259_s1 + $0x260] sm:$0xff]  ;;  %v138_v14 = vld [vmem:[%s4259_s1 + $0x358] sm:$0xff] }
  0x1b   :  { %318 = vmatpush.msra.mxu1 %v51_v47  ;;  %299 = vmatpush.msra.mxu0 %v34_v49  ;;  %v124_v13 = vld [vmem:[%s4259_s1 + $0x2e8] sm:$0xff]  ;;  %v155_v15 = vld [vmem:[%s4259_s1 + $0x3e0] sm:$0xff]  ;;  %v106_v16 = vld [vmem:[%s4259_s1 + $0x258] sm:$0xff] }
  0x1c   :  { %359 = vmatpush.msra.mxu3 %v82_v50  ;;  %340 = vmatpush.msra.mxu2 %v65_v52  ;;  %v123_v17 = vld [vmem:[%s4259_s1 + $0x2e0] sm:$0xff]  ;;  %v137_v18 = vld [vmem:[%s4259_s1 + $0x350] sm:$0xff]  ;;  %v154_v19 = vld [vmem:[%s4259_s1 + $0x3d8] sm:$0xff] }
  0x1d   :  { %319 = vmatpush.msra.mxu1 %v50_v51  ;;  %300 = vmatpush.msra.mxu0 %v33_v53  ;;  %v105_v20 = vld [vmem:[%s4259_s1 + $0x250] sm:$0xff]  ;;  %v122_v21 = vld [vmem:[%s4259_s1 + $0x2d8] sm:$0xff]  ;;  %v136_v22 = vld [vmem:[%s4259_s1 + $0x348] sm:$0xff] }
  0x1e   :  { %360 = vmatpush.msra.mxu3 %v81_v54  ;;  %341 = vmatpush.msra.mxu2 %v64_v56  ;;  %v153_v23 = vld [vmem:[%s4259_s1 + $0x3d0] sm:$0xff]  ;;  %v104_v25 = vld [vmem:[%s4259_s1 + $0x248] sm:$0xff]  ;;  %v135_v27 = vld [vmem:[%s4259_s1 + $0x340] sm:$0xff] }
  0x1f   :  { %320 = vmatpush.msra.mxu1 %v49_v55  ;;  %301 = vmatpush.msra.mxu0 %v32_v57  ;;  %v2519_v24 = vld [vmem:[%s4258_s0 + $0x10] sm:$0xff]  ;;  %v152_v29 = vld [vmem:[%s4259_s1 + $0x3c8] sm:$0xff]  ;;  %v2537_v30 = vld [vmem:[%s4258_s0] sm:$0xff] }
  0x20   :  { %361 = vmatpush.msra.mxu3 %v80_v58  ;;  %342 = vmatpush.msra.mxu2 %v63_v60  ;;  %v121_v26 = vld [vmem:[%s4259_s1 + $0x2d0] sm:$0xff]  ;;  %v619_v28 = vrot.slane %v2519_v24, 4  ;;  %v2542_v31 = vld [vmem:[%s4258_s0 + $0x18] sm:$0xff]  ;;  %v103_v32 = vld [vmem:[%s4259_s1 + $0x240] sm:$0xff]  ;;  %v607_v35 = vrot.slane %v2537_v30, 4 }
  0x21   :  { %321 = vmatpush.msra.mxu1 %v48_v59  ;;  %302 = vmatpush.msra.mxu0 %v31_v61  ;;  %v120_v33 = vld [vmem:[%s4259_s1 + $0x2c8] sm:$0xff]  ;;  %v625_v36 = vrot.slane %v2542_v31, 4  ;;  %v134_v37 = vld [vmem:[%s4259_s1 + $0x338] sm:$0xff]  ;;  %v151_v38 = vld [vmem:[%s4259_s1 + $0x3c0] sm:$0xff] }
  0x22   :  { %407 = vmatpush.msrb.mxu2 %v142_v62  ;;  %362 = vmatpush.msra.mxu3 %v79_v63  ;;  %v620_v34 = vadd.f32 %v619_v28, %v2519_v24  ;;  %v2562_v39 = vld [vmem:[%s4258_s0 + $0x8] sm:$0xff]  ;;  %v102_v40 = vld [vmem:[%s4259_s1 + $0x238] sm:$0xff]  ;;  %v119_v41 = vld [vmem:[%s4259_s1 + $0x2c0] sm:$0xff]  ;;  %v608_v43 = vadd.f32 %v607_v35, %v2537_v30 }
  0x23   :  { %367 = vmatpush.msrb.mxu0 %v110_v0  ;;  %322 = vmatpush.msra.mxu1 %v47_v3  ;;  %v626_v44 = vadd.f32 %v625_v36, %v2542_v31  ;;  %v613_v45 = vrot.slane %v2562_v39, 4  ;;  %v133_v46 = vld [vmem:[%s4259_s1 + $0x330] sm:$0xff]  ;;  %v150_v47 = vld [vmem:[%s4259_s1 + $0x3b8] sm:$0xff]  ;;  %v132_v54 = vld [vmem:[%s4259_s1 + $0x328] sm:$0xff] }
  0x24   :  { %427 = vmatpush.msrb.mxu3 %v158_v1  ;;  %408 = vmatpush.msrb.mxu2 %v141_v2  ;;  %v621_v42 = vrot.slane %v620_v34, 2  ;;  %v101_v48 = vld [vmem:[%s4259_s1 + $0x230] sm:$0xff]  ;;  %v118_v49 = vld [vmem:[%s4259_s1 + $0x2b8] sm:$0xff]  ;;  %v609_v51 = vrot.slane %v608_v43, 2  ;;  %v100_v56 = vld [vmem:[%s4259_s1 + $0x228] sm:$0xff] }
  0x25   :  { %368 = vmatpush.msrb.mxu0 %v109_v4  ;;  %387 = vmatpush.msrb.mxu1 %v126_v5  ;;  %v627_v52 = vrot.slane %v626_v44, 2  ;;  %v614_v53 = vadd.f32 %v613_v45, %v2562_v39  ;;  %v149_v55 = vld [vmem:[%s4259_s1 + $0x3b0] sm:$0xff]  ;;  %v131_v62 = vld [vmem:[%s4259_s1 + $0x320] sm:$0xff]  ;;  %v148_v63 = vld [vmem:[%s4259_s1 + $0x3a8] sm:$0xff] }
  0x26   :  { %409 = vmatpush.msrb.mxu2 %v140_v6  ;;  %428 = vmatpush.msrb.mxu3 %v157_v7  ;;  %v622_v50 = vadd.f32 %v621_v42, %v620_v34  ;;  %v117_v57 = vld [vmem:[%s4259_s1 + $0x2b0] sm:$0xff]  ;;  %v610_v59 = vadd.f32 %v609_v51, %v608_v43  ;;  %v99_v0 = vld [vmem:[%s4259_s1 + $0x220] sm:$0xff]  ;;  %v116_v1 = vld [vmem:[%s4259_s1 + $0x2a8] sm:$0xff] }
  0x27   :  { %369 = vmatpush.msrb.mxu0 %v108_v8  ;;  %388 = vmatpush.msrb.mxu1 %v125_v9  ;;  %v628_v60 = vadd.f32 %v627_v52, %v626_v44  ;;  %v615_v61 = vrot.slane %v614_v53, 2  ;;  %v130_v6 = vld [vmem:[%s4259_s1 + $0x318] sm:$0xff]  ;;  %v147_v7 = vld [vmem:[%s4259_s1 + $0x3a0] sm:$0xff]  ;;  %v144_v28 = vld [vmem:[%s4259_s1 + $0x388] sm:$0xff] }
  0x28   :  { %410 = vmatpush.msrb.mxu2 %v139_v10  ;;  %429 = vmatpush.msrb.mxu3 %v156_v11  ;;  %v623_v58 = vrot.slane %v622_v50, 1  ;;  %v611_v3 = vrot.slane %v610_v59, 1  ;;  %v98_v8 = vld [vmem:[%s4259_s1 + $0x218] sm:$0xff]  ;;  %v115_v9 = vld [vmem:[%s4259_s1 + $0x2a0] sm:$0xff]  ;;  %v112_v36 = vld [vmem:[%s4259_s1 + $0x288] sm:$0xff] }
  0x29   :  { %370 = vmatpush.msrb.mxu0 %v107_v12  ;;  %389 = vmatpush.msrb.mxu1 %v124_v13  ;;  %v629_v4 = vrot.slane %v628_v60, 1  ;;  %v616_v5 = vadd.f32 %v615_v61, %v614_v53  ;;  %v129_v12 = vld [vmem:[%s4259_s1 + $0x310] sm:$0xff]  ;;  %v146_v13 = vld [vmem:[%s4259_s1 + $0x398] sm:$0xff]  ;;  %v757_v42 = vld [vmem:[%s4259_s1] sm:$0xff] }
  0x2a   :  { %411 = vmatpush.msrb.mxu2 %v138_v14  ;;  %430 = vmatpush.msrb.mxu3 %v155_v15  ;;  %v624_v2 = vadd.f32 %v623_v58, %v622_v50  ;;  %v612_v10 = vadd.f32 %v611_v3, %v610_v59  ;;  %v97_v15 = vld [vmem:[%s4259_s1 + $0x210] sm:$0xff]  ;;  %v206_v35 = vld [vmem:[%s4259_s1 + $0x578] sm:$0xff]  ;;  %v758_v43 = vld [vmem:[%s4259_s1 + $0x8] sm:$0xff] }
  0x2b   :  { %371 = vmatpush.msrb.mxu0 %v106_v16  ;;  %390 = vmatpush.msrb.mxu1 %v123_v17  ;;  %v617_v11 = vrot.slane %v616_v5, 1  ;;  %v114_v16 = vld [vmem:[%s4259_s1 + $0x298] sm:$0xff]  ;;  %v173_v50 = vld [vmem:[%s4259_s1 + $0x470] sm:$0xff] }
  0x2c   :  { %412 = vmatpush.msrb.mxu2 %v137_v18  ;;  %431 = vmatpush.msrb.mxu3 %v154_v19  ;;  %v705_v14 = vmul.f32 %v624_v2, %v2519_v24  ;;  %v703_v17 = vmul.f32 %v612_v10, %v2537_v30  ;;  %v630_v18 = vadd.f32 %v629_v4, %v628_v60  ;;  %v222_v45 = vld [vmem:[%s4259_s1 + $0x5f8] sm:$0xff]  ;;  %v759_v52 = vld [vmem:[%s4259_s1 + $0x10] sm:$0xff]  ;;  %v2723_v60 = vld [vmem:[%s4258_s0 + $0x20] sm:$0xff] }
  0x2d   :  { %372 = vmatpush.msrb.mxu0 %v105_v20  ;;  %391 = vmatpush.msrb.mxu1 %v122_v21  ;;  %v618_v19 = vadd.f32 %v617_v11, %v616_v5  ;;  %v128_v20 = vld [vmem:[%s4259_s1 + $0x308] sm:$0xff]  ;;  %v145_v21 = vld [vmem:[%s4259_s1 + $0x390] sm:$0xff]  ;;  %v760_v53 = vld [vmem:[%s4259_s1 + $0x18] sm:$0xff]  ;;  %v631_v3 = vrot.slane %v2723_v60, 4 }
  0x2e   :  { %413 = vmatpush.msrb.mxu2 %v136_v22  ;;  %432 = vmatpush.msrb.mxu3 %v153_v23  ;;  %v96_v22 = vld [vmem:[%s4259_s1 + $0x208] sm:$0xff]  ;;  %v113_v23 = vld [vmem:[%s4259_s1 + $0x290] sm:$0xff]  ;;  %v203_v2 = vld [vmem:[%s4259_s1 + $0x560] sm:$0xff] }
  0x2f   :  { %373 = vmatpush.msrb.mxu0 %v104_v25  ;;  %392 = vmatpush.msrb.mxu1 %v121_v26  ;;  %v720_v25 = vsel %vm719_vm0, %v703_v17, 0.0  ;;  %v704_v26 = vmul.f32 %v618_v19, %v2562_v39  ;;  %v762_v5 = vld [vmem:[%s4259_s1 + $0x28] sm:$0xff]  ;;  %v763_v11 = vld [vmem:[%s4259_s1 + $0x30] sm:$0xff] }
  0x30   :  { %414 = vmatpush.msrb.mxu2 %v135_v27  ;;  %433 = vmatpush.msrb.mxu3 %v152_v29  ;;  %v127_v27 = vld [vmem:[%s4259_s1 + $0x300] sm:$0xff]  ;;  %v723_v29 = vsel %vm719_vm0, %v705_v14, 0.0  ;;  %v202_v14 = vld [vmem:[%s4259_s1 + $0x558] sm:$0xff]  ;;  %v2769_v17 = vld [vmem:[%s4258_s0 + $0x28] sm:$0xff] }
  0x31   :  { %374 = vmatpush.msrb.mxu0 %v103_v32  ;;  %393 = vmatpush.msrb.mxu1 %v120_v33  ;;  %v95_v32 = vld [vmem:[%s4259_s1 + $0x200] sm:$0xff]  ;;  %v706_v33 = vmul.f32 %v630_v18, %v2542_v31  ;;  %v721_v34 = vsel %vm719_vm0, %v704_v26, 0.0  ;;  %v1018_v18 = vmul.f32 %v762_v5, %v762_v5  ;;  %v188_v19 = vld [vmem:[%s4259_s1 + $0x4e8] sm:$0xff]  ;;  %v170_v26 = vld [vmem:[%s4259_s1 + $0x458] sm:$0xff] }
  0x32   :  { %415 = vmatpush.msrb.mxu2 %v134_v37  ;;  %434 = vmatpush.msrb.mxu3 %v151_v38  ;;  %v722_v37 = vadd.f32 %v721_v34, %v720_v25  ;;  %v143_v38 = vld [vmem:[%s4259_s1 + $0x380] sm:$0xff]  ;;  %v1019_v25 = vmul.f32 %v763_v11, %v763_v11 }
  0x33   :  { %375 = vmatpush.msrb.mxu0 %v102_v40  ;;  %394 = vmatpush.msrb.mxu1 %v119_v41  ;;  %v174_v40 = vld [vmem:[%s4259_s1 + $0x478] sm:$0xff]  ;;  %v725_v44 = vsel %vm719_vm0, %v706_v33, 0.0  ;;  %v187_v34 = vld [vmem:[%s4259_s1 + $0x4e0] sm:$0xff] }
  0x34   :  { %416 = vmatpush.msrb.mxu2 %v133_v46  ;;  %435 = vmatpush.msrb.mxu3 %v150_v47  ;;  %v724_v41 = vadd.f32 %v723_v29, %v722_v37  ;;  %v2691_v46 = vld [vmem:[%s4258_s0 + $0x30] sm:$0xff]  ;;  %v1013_v47 = vmul.f32 %v757_v42, %v757_v42 }
  0x35   :  { %376 = vmatpush.msrb.mxu0 %v101_v48  ;;  %395 = vmatpush.msrb.mxu1 %v118_v49  ;;  %v1014_v48 = vmul.f32 %v758_v43, %v758_v43  ;;  %v111_v49 = vld [vmem:[%s4259_s1 + $0x280] sm:$0xff]  ;;  %v643_v51 = vrot.slane %v2691_v46, 4 }
  0x36   :  { %417 = vmatpush.msrb.mxu2 %v132_v54  ;;  %436 = vmatpush.msrb.mxu3 %v149_v55  ;;  %v204_v54 = vld [vmem:[%s4259_s1 + $0x568] sm:$0xff]  ;;  %v221_v55 = vld [vmem:[%s4259_s1 + $0x5f0] sm:$0xff]  ;;  %v1269_v58 = vsel %vm753_vm1, %v1013_v47, 0.0  ;;  %v2725_v61 = vadd.f32 %v725_v44, %v724_v41  ;;  %v1278_v44 = vsel %vm753_vm1, %v1018_v18, 0.0 }
  0x37   :  { %377 = vmatpush.msrb.mxu0 %v100_v56  ;;  %396 = vmatpush.msrb.mxu1 %v117_v57  ;;  %v1015_v56 = vmul.f32 %v759_v52, %v759_v52  ;;  %v1016_v57 = vmul.f32 %v760_v53, %v760_v53  ;;  %v1270_v59 = vsel %vm753_vm1, %v1014_v48, 0.0  ;;  %v766_v48 = vld [vmem:[%s4259_s1 + $0x48] sm:$0xff] }
  0x38   :  { %418 = vmatpush.msrb.mxu2 %v131_v62  ;;  %437 = vmatpush.msrb.mxu3 %v148_v63  ;;  %v2730_v62 = vld [vmem:[%s4258_s0 + $0x38] sm:$0xff]  ;;  %v761_v63 = vld [vmem:[%s4259_s1 + $0x20] sm:$0xff] }
  0x39   :  { %378 = vmatpush.msrb.mxu0 %v99_v0  ;;  %397 = vmatpush.msrb.mxu1 %v116_v1  ;;  %v1271_v0 = vadd.f32 %v1270_v59, %v1269_v58  ;;  %v172_v1 = vld [vmem:[%s4259_s1 + $0x468] sm:$0xff]  ;;  %v649_v4 = vrot.slane %v2730_v62, 4  ;;  %v767_v58 = vld [vmem:[%s4259_s1 + $0x50] sm:$0xff] }
  0x3a   :  { %419 = vmatpush.msrb.mxu2 %v130_v6  ;;  %438 = vmatpush.msrb.mxu3 %v147_v7  ;;  %v1017_v6 = vmul.f32 %v761_v63, %v761_v63  ;;  %v1272_v7 = vsel %vm753_vm1, %v1015_v56, 0.0  ;;  %v198_v63 = vld [vmem:[%s4259_s1 + $0x538] sm:$0xff]  ;;  %v1023_v11 = vmul.f32 %v767_v58, %v767_v58 }
  0x3b   :  { %379 = vmatpush.msrb.mxu0 %v98_v8  ;;  %398 = vmatpush.msrb.mxu1 %v115_v9  ;;  %v189_v8 = vld [vmem:[%s4259_s1 + $0x4f0] sm:$0xff]  ;;  %v220_v9 = vld [vmem:[%s4259_s1 + $0x5e8] sm:$0xff] }
  0x3c   :  { %420 = vmatpush.msrb.mxu2 %v129_v12  ;;  %439 = vmatpush.msrb.mxu3 %v146_v13  ;;  %v1273_v12 = vadd.f32 %v1272_v7, %v1271_v0  ;;  %v1274_v13 = vsel %vm753_vm1, %v1016_v57, 0.0  ;;  %v1276_v33 = vsel %vm753_vm1, %v1017_v6, 0.0  ;;  %v768_v6 = vld [vmem:[%s4259_s1 + $0x58] sm:$0xff] }
  0x3d   :  { %380 = vmatpush.msrb.mxu0 %v97_v15  ;;  %399 = vmatpush.msrb.mxu1 %v114_v16  ;;  %v632_v15 = vadd.f32 %v631_v3, %v2723_v60  ;;  %v650_v16 = vadd.f32 %v649_v4, %v2730_v62  ;;  %v215_v4 = vld [vmem:[%s4259_s1 + $0x5c0] sm:$0xff] }
  0x3e   :  { %421 = vmatpush.msrb.mxu2 %v128_v20  ;;  %440 = vmatpush.msrb.mxu3 %v145_v21  ;;  %v219_v20 = vld [vmem:[%s4259_s1 + $0x5e0] sm:$0xff] }
  0x3f   :  { %381 = vmatpush.msrb.mxu0 %v96_v22  ;;  %400 = vmatpush.msrb.mxu1 %v113_v23  ;;  %v637_v22 = vrot.slane %v2769_v17, 4  ;;  %v764_v23 = vld [vmem:[%s4259_s1 + $0x38] sm:$0xff]  ;;  %v651_v29 = vrot.slane %v650_v16, 2 }
  0x40   :  { %422 = vmatpush.msrb.mxu2 %v127_v27  ;;  %441 = vmatpush.msrb.mxu3 %v144_v28  ;;  %v201_v27 = vld [vmem:[%s4259_s1 + $0x550] sm:$0xff]  ;;  %v633_v28 = vrot.slane %v632_v15, 2  ;;  %v1020_v43 = vmul.f32 %v764_v23, %v764_v23  ;;  %v1024_v23 = vmul.f32 %v768_v6, %v768_v6 }
  0x41   :  { %343 = vmatmul.f32.vlgmr.msra.gmra.mxu2 %v2519_v24  ;;  %382 = vmatpush.msrb.mxu0 %v95_v32  ;;  %v205_v24 = vld [vmem:[%s4259_s1 + $0x570] sm:$0xff]  ;;  %v1275_v32 = vadd.f32 %v1274_v13, %v1273_v12  ;;  %v638_v37 = vadd.f32 %v637_v22, %v2769_v17  ;;  %v652_v42 = vadd.f32 %v651_v29, %v650_v16  ;;  %v184_v13 = vld [vmem:[%s4259_s1 + $0x4c8] sm:$0xff]  ;;  %v769_v16 = vld [vmem:[%s4259_s1 + $0x60] sm:$0xff] }
  0x42   :  { %487 = vmatpush.msra.mxu2 %v206_v35  ;;  %401 = vmatpush.msrb.mxu1 %v112_v36  ;;  %v218_v35 = vld [vmem:[%s4259_s1 + $0x5d8] sm:$0xff]  ;;  %v634_v41 = vadd.f32 %v633_v28, %v632_v15  ;;  %v1282_v3 = vsel %vm753_vm1, %v1020_v43, 0.0  ;;  %v164_v43 = vld [vmem:[%s4259_s1 + $0x428] sm:$0xff] }
  0x43   :  { %442 = vmatpush.msrb.mxu3 %v143_v38  ;;  %303 = vmatmul.f32.vlgmr.msra.gmra.mxu0 %v2537_v30  ;;  %v190_v30 = vld [vmem:[%s4259_s1 + $0x4f8] sm:$0xff]  ;;  %v765_v38 = vld [vmem:[%s4259_s1 + $0x40] sm:$0xff]  ;;  %v639_v47 = vrot.slane %v638_v37, 2 }
  0x44   :  { %363 = vmatmul.f32.vlgmr.msra.gmra.mxu3 %v2542_v31  ;;  %447 = vmatpush.msra.mxu0 %v174_v40  ;;  %v644_v31 = vadd.f32 %v643_v51, %v2691_v46  ;;  %v200_v40 = vld [vmem:[%s4259_s1 + $0x548] sm:$0xff]  ;;  %v199_v51 = vld [vmem:[%s4259_s1 + $0x540] sm:$0xff]  ;;  %v635_v52 = vrot.slane %v634_v41, 1  ;;  %v1021_v53 = vmul.f32 %v765_v38, %v765_v38 }
  0x45   :  { %488 = vmatpush.msra.mxu2 %v205_v24  ;;  %507 = vmatpush.msra.mxu3 %v222_v45  ;;  %v186_v24 = vld [vmem:[%s4259_s1 + $0x4d8] sm:$0xff]  ;;  %v217_v45 = vld [vmem:[%s4259_s1 + $0x5d0] sm:$0xff]  ;;  %v640_v57 = vadd.f32 %v639_v47, %v638_v37  ;;  %v212_v37 = vld [vmem:[%s4259_s1 + $0x5a8] sm:$0xff]  ;;  %v1290_v47 = vsel %vm753_vm1, %v1024_v23, 0.0 }
  0x46   :  { %402 = vmatpush.msrb.mxu1 %v111_v49  ;;  %448 = vmatpush.msra.mxu0 %v173_v50  ;;  %v645_v10 = vrot.slane %v644_v31, 2  ;;  %v1277_v49 = vadd.f32 %v1276_v33, %v1275_v32  ;;  %v169_v50 = vld [vmem:[%s4259_s1 + $0x450] sm:$0xff]  ;;  %v636_v0 = vadd.f32 %v635_v52, %v634_v41  ;;  %v1284_v12 = vsel %vm753_vm1, %v1021_v53, 0.0  ;;  %v770_v41 = vld [vmem:[%s4259_s1 + $0x68] sm:$0xff] }
  0x47   :  { %323 = vmatmul.f32.vlgmr.msra.gmra.mxu1 %v2562_v39  ;;  %489 = vmatpush.msra.mxu2 %v204_v54  ;;  %v171_v39 = vld [vmem:[%s4259_s1 + $0x460] sm:$0xff]  ;;  %v185_v54 = vld [vmem:[%s4259_s1 + $0x4d0] sm:$0xff]  ;;  %v641_v5 = vrot.slane %v640_v57, 1  ;;  %v176_v23 = vld [vmem:[%s4259_s1 + $0x488] sm:$0xff] }
  0x48   :  { %467 = vmatpush.msra.mxu1 %v190_v30  ;;  %508 = vmatpush.msra.mxu3 %v221_v55  ;;  %v646_v21 = vadd.f32 %v645_v10, %v644_v31  ;;  %v1280_v30 = vsel %vm753_vm1, %v1019_v25, 0.0  ;;  %v216_v55 = vld [vmem:[%s4259_s1 + $0x5c8] sm:$0xff]  ;;  %v1279_v59 = vadd.f32 %v1278_v44, %v1277_v49  ;;  %v707_v10 = vmul.f32 %v636_v0, %v2723_v60  ;;  %v165_v33 = vld [vmem:[%s4259_s1 + $0x430] sm:$0xff]  ;;  %v194_v44 = vld [vmem:[%s4259_s1 + $0x518] sm:$0xff] }
  0x49   :  { %449 = vmatpush.msra.mxu0 %v172_v1  ;;  %490 = vmatpush.msra.mxu2 %v203_v2  ;;  %v168_v31 = vld [vmem:[%s4259_s1 + $0x448] sm:$0xff]  ;;  %v653_v1 = vrot.slane %v652_v42, 1  ;;  %v1022_v2 = vmul.f32 %v766_v48, %v766_v48  ;;  %v642_v15 = vadd.f32 %v641_v5, %v640_v57  ;;  %v181_v48 = vld [vmem:[%s4259_s1 + $0x4b0] sm:$0xff]  ;;  %v211_v49 = vld [vmem:[%s4259_s1 + $0x5a0] sm:$0xff] }
  0x4a   :  { %468 = vmatpush.msra.mxu1 %v189_v8  ;;  %509 = vmatpush.msra.mxu3 %v220_v9  ;;  %v647_v36 = vrot.slane %v646_v21, 1  ;;  %v1281_v7 = vadd.f32 %v1280_v30, %v1279_v59  ;;  %v167_v8 = vld [vmem:[%s4259_s1 + $0x440] sm:$0xff]  ;;  %v197_v9 = vld [vmem:[%s4259_s1 + $0x530] sm:$0xff]  ;;  %v1026_v30 = vmul.f32 %v770_v41, %v770_v41  ;;  %v162_v59 = vld [vmem:[%s4259_s1 + $0x418] sm:$0xff] }
  0x4b   :  { %450 = vmatpush.msra.mxu0 %v171_v39  ;;  %491 = vmatpush.msra.mxu2 %v202_v14  ;;  %v214_v39 = vld [vmem:[%s4259_s1 + $0x5b8] sm:$0xff]  ;;  %v654_v22 = vadd.f32 %v653_v1, %v652_v42  ;;  %v1286_v25 = vsel %vm753_vm1, %v1022_v2, 0.0  ;;  %v708_v29 = vmul.f32 %v642_v15, %v2769_v17  ;;  %v193_v52 = vld [vmem:[%s4259_s1 + $0x510] sm:$0xff] }
  0x4c   :  { %469 = vmatpush.msra.mxu1 %v188_v19  ;;  %510 = vmatpush.msra.mxu3 %v219_v20  ;;  %v648_v56 = vadd.f32 %v647_v36, %v646_v21  ;;  %v1283_v18 = vadd.f32 %v1282_v3, %v1281_v7  ;;  %v166_v19 = vld [vmem:[%s4259_s1 + $0x438] sm:$0xff]  ;;  %v196_v20 = vld [vmem:[%s4259_s1 + $0x528] sm:$0xff]  ;;  %v727_v21 = vsel %vm719_vm0, %v707_v10, 0.0  ;;  %v1288_v36 = vsel %vm753_vm1, %v1023_v11, 0.0  ;;  %v771_v57 = vld [vmem:[%s4259_s1 + $0x70] sm:$0xff] }
  0x4d   :  { %451 = vmatpush.msra.mxu0 %v170_v26  ;;  %492 = vmatpush.msra.mxu2 %v201_v27  ;;  %v183_v26 = vld [vmem:[%s4259_s1 + $0x4c0] sm:$0xff]  ;;  %v213_v27 = vld [vmem:[%s4259_s1 + $0x5b0] sm:$0xff]  ;;  %v728_v28 = vadd.f32 %v727_v21, %v2725_v61  ;;  %v182_v61 = vld [vmem:[%s4259_s1 + $0x4b8] sm:$0xff]  ;;  %v1027_v5 = vmul.f32 %v771_v57, %v771_v57  ;;  %v1294_v6 = vsel %vm753_vm1, %v1026_v30, 0.0 }
  0x4e   :  { %470 = vmatpush.msra.mxu1 %v187_v34  ;;  %511 = vmatpush.msra.mxu3 %v218_v35  ;;  %v709_v14 = vmul.f32 %v648_v56, %v2691_v46  ;;  %v1285_v32 = vadd.f32 %v1284_v12, %v1283_v18  ;;  %v195_v34 = vld [vmem:[%s4259_s1 + $0x520] sm:$0xff]  ;;  %v1025_v35 = vmul.f32 %v769_v16, %v769_v16  ;;  %v210_v56 = vld [vmem:[%s4259_s1 + $0x598] sm:$0xff]  ;;  %v209_v0 = vld [vmem:[%s4259_s1 + $0x590] sm:$0xff] }
  0x4f   :  { %452 = vmatpush.msra.mxu0 %v169_v50  ;;  %493 = vmatpush.msra.mxu2 %v200_v40  ;;  %v729_v40 = vsel %vm719_vm0, %v708_v29, 0.0  ;;  %v161_v2 = vld [vmem:[%s4259_s1 + $0x410] sm:$0xff]  ;;  %v178_v3 = vld [vmem:[%s4259_s1 + $0x498] sm:$0xff]  ;;  %v208_v7 = vld [vmem:[%s4259_s1 + $0x588] sm:$0xff] }
  0x50   :  { %471 = vmatpush.msra.mxu1 %v186_v24  ;;  %512 = vmatpush.msra.mxu3 %v217_v45  ;;  %v731_v38 = vsel %vm719_vm0, %v709_v14, 0.0  ;;  %v1287_v42 = vadd.f32 %v1286_v25, %v1285_v32  ;;  %v710_v24 = vmul.f32 %v654_v22, %v2730_v62  ;;  %v730_v45 = vadd.f32 %v729_v40, %v728_v28  ;;  %v772_v10 = vld [vmem:[%s4259_s1 + $0x78] sm:$0xff]  ;;  %v160_v11 = vld [vmem:[%s4259_s1 + $0x408] sm:$0xff]  ;;  %v191_v12 = vld [vmem:[%s4259_s1 + $0x500] sm:$0xff] }
  0x51   :  { %453 = vmatpush.msra.mxu0 %v168_v31  ;;  %494 = vmatpush.msra.mxu2 %v199_v51  ;;  %v163_v51 = vld [vmem:[%s4259_s1 + $0x420] sm:$0xff]  ;;  %v270_v14 = vld [vmem:[%s4259_s1 + $0x778] sm:$0xff]  ;;  %v1028_v21 = vmul.f32 %v772_v10, %v772_v10  ;;  %v1296_v22 = vsel %vm753_vm1, %v1027_v5, 0.0  ;;  %v237_v32 = vld [vmem:[%s4259_s1 + $0x670] sm:$0xff] }
  0x52   :  { %472 = vmatpush.msra.mxu1 %v185_v54  ;;  %513 = vmatpush.msra.mxu3 %v216_v55  ;;  %v1289_v50 = vadd.f32 %v1288_v36, %v1287_v42  ;;  %v732_v53 = vadd.f32 %v731_v38, %v730_v45  ;;  %v1292_v54 = vsel %vm753_vm1, %v1025_v35, 0.0  ;;  %v180_v55 = vld [vmem:[%s4259_s1 + $0x4a8] sm:$0xff]  ;;  %v733_v31 = vsel %vm719_vm0, %v710_v24, 0.0  ;;  %v159_v16 = vld [vmem:[%s4259_s1 + $0x400] sm:$0xff]  ;;  %v238_v25 = vld [vmem:[%s4259_s1 + $0x678] sm:$0xff] }
  0x53   :  { %454 = vmatpush.msra.mxu0 %v167_v8  ;;  %495 = vmatpush.msra.mxu2 %v198_v63  ;;  %v179_v63 = vld [vmem:[%s4259_s1 + $0x4a0] sm:$0xff]  ;;  %v286_v28 = vld [vmem:[%s4259_s1 + $0x7f8] sm:$0xff]  ;;  %v268_v36 = vld [vmem:[%s4259_s1 + $0x768] sm:$0xff] }
  0x54   :  { %473 = vmatpush.msra.mxu1 %v184_v13  ;;  %514 = vmatpush.msra.mxu3 %v215_v4  ;;  %v1291_v58 = vadd.f32 %v1290_v47, %v1289_v50  ;;  %v192_v4 = vld [vmem:[%s4259_s1 + $0x508] sm:$0xff]  ;;  %v2948_v8 = vld [vmem:[%s4258_s0 + $0x40] sm:$0xff] }
  0x55   :  { %455 = vmatpush.msra.mxu0 %v166_v19  ;;  %496 = vmatpush.msra.mxu2 %v197_v9  ;;  %v2950_v9 = vadd.f32 %v733_v31, %v732_v53  ;;  %v655_v13 = vrot.slane %v2948_v8, 4  ;;  %v207_v18 = vld [vmem:[%s4259_s1 + $0x580] sm:$0xff] }
  0x56   :  { %474 = vmatpush.msra.mxu1 %v183_v26  ;;  %515 = vmatpush.msra.mxu3 %v214_v39  ;;  %v1293_v1 = vadd.f32 %v1292_v54, %v1291_v58  ;;  %v177_v39 = vld [vmem:[%s4259_s1 + $0x490] sm:$0xff]  ;;  %v175_v35 = vld [vmem:[%s4259_s1 + $0x480] sm:$0xff] }
  0x57   :  { %456 = vmatpush.msra.mxu0 %v165_v33  ;;  %497 = vmatpush.msra.mxu2 %v196_v20  ;;  %v656_v19 = vadd.f32 %v655_v13, %v2948_v8  ;;  %v2978_v20 = vld [vmem:[%s4258_s0 + $0x48] sm:$0xff] }
  0x58   :  { %475 = vmatpush.msra.mxu1 %v182_v61  ;;  %516 = vmatpush.msra.mxu3 %v213_v27  ;;  %v1295_v15 = vadd.f32 %v1294_v6, %v1293_v1  ;;  %v661_v26 = vrot.slane %v2978_v20, 4  ;;  %v773_v27 = vld [vmem:[%s4259_s1 + $0x80] sm:$0xff] }
  0x59   :  { %457 = vmatpush.msra.mxu0 %v164_v43  ;;  %498 = vmatpush.msra.mxu2 %v195_v34  ;;  %v657_v29 = vrot.slane %v656_v19, 2 }
  0x5a   :  { %476 = vmatpush.msra.mxu1 %v181_v48  ;;  %517 = vmatpush.msra.mxu3 %v212_v37  ;;  %v662_v33 = vadd.f32 %v661_v26, %v2978_v20  ;;  %v1297_v34 = vadd.f32 %v1296_v22, %v1295_v15  ;;  %v1298_v37 = vsel %vm753_vm1, %v1028_v21, 0.0 }
  0x5b   :  { %458 = vmatpush.msra.mxu0 %v163_v51  ;;  %499 = vmatpush.msra.mxu2 %v194_v44  ;;  %v658_v61 = vadd.f32 %v657_v29, %v656_v19 }
  0x5c   :  { %477 = vmatpush.msra.mxu1 %v180_v55  ;;  %518 = vmatpush.msra.mxu3 %v211_v49 }
  0x5d   :  { %459 = vmatpush.msra.mxu0 %v162_v59  ;;  %500 = vmatpush.msra.mxu2 %v193_v52 }
  0x5e   :  { %478 = vmatpush.msra.mxu1 %v179_v63  ;;  %519 = vmatpush.msra.mxu3 %v210_v56 }
  0x5f   :  { %460 = vmatpush.msra.mxu0 %v161_v2  ;;  %501 = vmatpush.msra.mxu2 %v192_v4 }
  0x60   :  { %479 = vmatpush.msra.mxu1 %v178_v3  ;;  %520 = vmatpush.msra.mxu3 %v209_v0 }
  0x61   :  { %461 = vmatpush.msra.mxu0 %v160_v11  ;;  %502 = vmatpush.msra.mxu2 %v191_v12 }
  0x62   :  { %480 = vmatpush.msra.mxu1 %v177_v39  ;;  %521 = vmatpush.msra.mxu3 %v208_v7 }
  0x63   :  { %423 = vmatmul.f32.vlgmr.msrb.gmra.mxu2 %v2691_v46  ;;  %462 = vmatpush.msra.mxu0 %v159_v16  ;;  %v269_v46 = vld [vmem:[%s4259_s1 + $0x770] sm:$0xff] }
  0x64   :  { %567 = vmatpush.msrb.mxu2 %v270_v14  ;;  %481 = vmatpush.msra.mxu1 %v176_v23 }
  0x65   :  { %522 = vmatpush.msra.mxu3 %v207_v18  ;;  %383 = vmatmul.f32.vlgmr.msrb.gmra.mxu0 %v2723_v60  ;;  %v1029_v60 = vmul.f32 %v773_v27, %v773_v27 }
  0x66   :  { %443 = vmatmul.f32.vlgmr.msrb.gmra.mxu3 %v2730_v62  ;;  %527 = vmatpush.msrb.mxu0 %v238_v25 }
  0x67   :  { %8 = vsyncpa [#allocation5], 0  ;;  %568 = vmatpush.msrb.mxu2 %v269_v46  ;;  %587 = vmatpush.msrb.mxu3 %v286_v28  ;;  %v254_v62 = vld [vmem:[%s4259_s1 + $0x6f8] sm:$0xff]  ;;  %v285_v38 = vld [vmem:[%s4259_s1 + $0x7f0] sm:$0xff]  ;;  %v663_v40 = vrot.slane %v662_v33, 2  ;;  %v659_v44 = vrot.slane %v658_v61, 1  ;;  %v1299_v49 = vadd.f32 %v1298_v37, %v1297_v34 }
  0x68   :  { %v774_v41 = vld [vmem:[%s4259_s1 + $0x88] sm:$0xff]  ;;  %482 = vmatpush.msra.mxu1 %v175_v35  ;;  %528 = vmatpush.msrb.mxu0 %v237_v32  ;;  %v267_v43 = vld [vmem:[%s4259_s1 + $0x760] sm:$0xff]  ;;  %v253_v24 = vld [vmem:[%s4259_s1 + $0x6f0] sm:$0xff]  ;;  %v1300_v53 = vsel %vm753_vm1, %v1029_v60, 0.0  ;;  %vm1870_vm9 = vcmask 7168   ;;  %vm1965_vm12 = vcmask 122880  }
  0x69   :  { %v236_v42 = vld [vmem:[%s4259_s1 + $0x668] sm:$0xff]  ;;  %403 = vmatmul.f32.vlgmr.msrb.gmra.mxu1 %v2769_v17  ;;  %569 = vmatpush.msrb.mxu2 %v268_v36  ;;  %v664_v47 = vadd.f32 %v663_v40, %v662_v33  ;;  %v775_v48 = vld [vmem:[%s4259_s1 + $0x90] sm:$0xff]  ;;  %v235_v17 = vld [vmem:[%s4259_s1 + $0x660] sm:$0xff]  ;;  %v660_v51 = vadd.f32 %v659_v44, %v658_v61  ;;  %v1030_v52 = vmul.f32 %v774_v41, %v774_v41  ;;  %s2229_s9 = smov 1.0   ;;  %s2230_s14 = smov 0.0  }
  0x6a   :  { %v284_v45 = vld [vmem:[%s4259_s1 + $0x7e8] sm:$0xff]  ;;  %547 = vmatpush.msrb.mxu1 %v254_v62  ;;  %588 = vmatpush.msrb.mxu3 %v285_v38  ;;  %v266_v50 = vld [vmem:[%s4259_s1 + $0x758] sm:$0xff]  ;;  %v283_v54 = vld [vmem:[%s4259_s1 + $0x7e0] sm:$0xff]  ;;  %v1031_v31 = vmul.f32 %v775_v48, %v775_v48  ;;  %v1301_v3 = vadd.f32 %v1300_v53, %v1299_v49  ;;  %2034 = sst [smem:[#allocation4 + $0x6]] %s2230_s14  ;;  %s2042_s5 = sshll.u32 %s4261_s3, 4  ;;  %s2043_s5 = int_to_ptr.hbm [resolvable:$true] %s2042_s5 }
  0x6b   :  { %529 = vmatpush.msrb.mxu0 %v236_v42  ;;  %570 = vmatpush.msrb.mxu2 %v267_v43  ;;  %v252_v30 = vld [vmem:[%s4259_s1 + $0x6e8] sm:$0xff]  ;;  %v665_v55 = vrot.slane %v664_v47, 1  ;;  %v776_v56 = vld [vmem:[%s4259_s1 + $0x98] sm:$0xff]  ;;  %v265_v58 = vld [vmem:[%s4259_s1 + $0x750] sm:$0xff]  ;;  %v711_v59 = vmul.f32 %v660_v51, %v2948_v8  ;;  %v1302_v10 = vsel %vm753_vm1, %v1030_v52, 0.0  ;;  %2036 = sst [smem:[#allocation4 + $0x7]] %s2230_s14 }
  0x6c   :  { %548 = vmatpush.msrb.mxu1 %v253_v24  ;;  %589 = vmatpush.msrb.mxu3 %v284_v45  ;;  %v234_v57 = vld [vmem:[%s4259_s1 + $0x658] sm:$0xff]  ;;  %v251_v63 = vld [vmem:[%s4259_s1 + $0x6e0] sm:$0xff]  ;;  %v233_v4 = vld [vmem:[%s4259_s1 + $0x650] sm:$0xff]  ;;  %v1032_v7 = vmul.f32 %v776_v56, %v776_v56  ;;  %v1304_v19 = vsel %vm753_vm1, %v1031_v31, 0.0  ;;  %v1303_v25 = vadd.f32 %v1302_v10, %v1301_v3 }
  0x6d   :  { %530 = vmatpush.msrb.mxu0 %v235_v17  ;;  %571 = vmatpush.msrb.mxu2 %v266_v50  ;;  %v282_v0 = vld [vmem:[%s4259_s1 + $0x7d8] sm:$0xff]  ;;  %v666_v1 = vadd.f32 %v665_v55, %v664_v47  ;;  %v777_v2 = vld [vmem:[%s4259_s1 + $0xa0] sm:$0xff]  ;;  %v264_v5 = vld [vmem:[%s4259_s1 + $0x748] sm:$0xff]  ;;  %v735_v6 = vsel %vm719_vm0, %v711_v59, 0.0 }
  0x6e   :  { %549 = vmatpush.msrb.mxu1 %v252_v30  ;;  %590 = vmatpush.msrb.mxu3 %v283_v54  ;;  %v250_v11 = vld [vmem:[%s4259_s1 + $0x6d8] sm:$0xff]  ;;  %v281_v12 = vld [vmem:[%s4259_s1 + $0x7d0] sm:$0xff]  ;;  %v736_v13 = vadd.f32 %v735_v6, %v2950_v9  ;;  %v778_v14 = vld [vmem:[%s4259_s1 + $0xa8] sm:$0xff]  ;;  %v1033_v18 = vmul.f32 %v777_v2, %v777_v2  ;;  %v1306_v29 = vsel %vm753_vm1, %v1032_v7, 0.0  ;;  %v1305_v35 = vadd.f32 %v1304_v19, %v1303_v25 }
  0x6f   :  { %531 = vmatpush.msrb.mxu0 %v234_v57  ;;  %572 = vmatpush.msrb.mxu2 %v265_v58  ;;  %v712_v39 = vmul.f32 %v666_v1, %v2978_v20  ;;  %v232_v15 = vld [vmem:[%s4259_s1 + $0x648] sm:$0xff]  ;;  %v263_v16 = vld [vmem:[%s4259_s1 + $0x740] sm:$0xff]  ;;  %v249_v9 = vld [vmem:[%s4259_s1 + $0x6d0] sm:$0xff]  ;;  %v1034_v28 = vmul.f32 %v778_v14, %v778_v14 }
  0x70   :  { %550 = vmatpush.msrb.mxu1 %v251_v63  ;;  %591 = vmatpush.msrb.mxu3 %v282_v0  ;;  %v280_v21 = vld [vmem:[%s4259_s1 + $0x7c8] sm:$0xff]  ;;  %v779_v23 = vld [vmem:[%s4259_s1 + $0xb0] sm:$0xff]  ;;  %v231_v26 = vld [vmem:[%s4259_s1 + $0x640] sm:$0xff]  ;;  %v1308_v37 = vsel %vm753_vm1, %v1033_v18, 0.0  ;;  %v1307_v41 = vadd.f32 %v1306_v29, %v1305_v35 }
  0x71   :  { %532 = vmatpush.msrb.mxu0 %v233_v4  ;;  %573 = vmatpush.msrb.mxu2 %v264_v5  ;;  %v737_v22 = vsel %vm719_vm0, %v712_v39, 0.0  ;;  %v262_v27 = vld [vmem:[%s4259_s1 + $0x738] sm:$0xff]  ;;  %v248_v32 = vld [vmem:[%s4259_s1 + $0x6c8] sm:$0xff]  ;;  %v279_v33 = vld [vmem:[%s4259_s1 + $0x7c0] sm:$0xff]  ;;  %v1035_v60 = vmul.f32 %v779_v23, %v779_v23  ;;  %v1310_v24 = vsel %vm753_vm1, %v1034_v28, 0.0 }
  0x72   :  { %551 = vmatpush.msrb.mxu1 %v250_v11  ;;  %592 = vmatpush.msrb.mxu3 %v281_v12  ;;  %v3110_v46 = vadd.f32 %v737_v22, %v736_v13  ;;  %v780_v34 = vld [vmem:[%s4259_s1 + $0xb8] sm:$0xff]  ;;  %v261_v61 = vld [vmem:[%s4259_s1 + $0x730] sm:$0xff]  ;;  %v247_v62 = vld [vmem:[%s4259_s1 + $0x6c0] sm:$0xff]  ;;  %v1309_v49 = vadd.f32 %v1308_v37, %v1307_v41 }
  0x73   :  { %533 = vmatpush.msrb.mxu0 %v232_v15  ;;  %574 = vmatpush.msrb.mxu2 %v263_v16  ;;  %v230_v36 = vld [vmem:[%s4259_s1 + $0x638] sm:$0xff]  ;;  %v781_v40 = vld [vmem:[%s4259_s1 + $0xc0] sm:$0xff]  ;;  %v229_v42 = vld [vmem:[%s4259_s1 + $0x630] sm:$0xff]  ;;  %v1036_v44 = vmul.f32 %v780_v34, %v780_v34  ;;  %v1312_v52 = vsel %vm753_vm1, %v1035_v60, 0.0 }
  0x74   :  { %552 = vmatpush.msrb.mxu1 %v249_v9  ;;  %593 = vmatpush.msrb.mxu3 %v280_v21  ;;  %v278_v38 = vld [vmem:[%s4259_s1 + $0x7b8] sm:$0xff]  ;;  %v260_v43 = vld [vmem:[%s4259_s1 + $0x728] sm:$0xff]  ;;  %v277_v47 = vld [vmem:[%s4259_s1 + $0x7b0] sm:$0xff]  ;;  %v1037_v51 = vmul.f32 %v781_v40, %v781_v40  ;;  %v1311_v55 = vadd.f32 %v1310_v24, %v1309_v49 }
  0x75   :  { %534 = vmatpush.msrb.mxu0 %v231_v26  ;;  %575 = vmatpush.msrb.mxu2 %v262_v27  ;;  %v246_v45 = vld [vmem:[%s4259_s1 + $0x6b8] sm:$0xff]  ;;  %v782_v48 = vld [vmem:[%s4259_s1 + $0xc8] sm:$0xff]  ;;  %v259_v50 = vld [vmem:[%s4259_s1 + $0x720] sm:$0xff]  ;;  %v1314_v59 = vsel %vm753_vm1, %v1036_v44, 0.0 }
  0x76   :  { %553 = vmatpush.msrb.mxu1 %v248_v32  ;;  %594 = vmatpush.msrb.mxu3 %v279_v33  ;;  %v228_v17 = vld [vmem:[%s4259_s1 + $0x628] sm:$0xff]  ;;  %v245_v53 = vld [vmem:[%s4259_s1 + $0x6b0] sm:$0xff]  ;;  %v227_v57 = vld [vmem:[%s4259_s1 + $0x620] sm:$0xff]  ;;  %v1038_v58 = vmul.f32 %v782_v48, %v782_v48  ;;  %v1313_v1 = vadd.f32 %v1312_v52, %v1311_v55  ;;  %v1316_v4 = vsel %vm753_vm1, %v1037_v51, 0.0 }
  0x77   :  { %535 = vmatpush.msrb.mxu0 %v230_v36  ;;  %576 = vmatpush.msrb.mxu2 %v261_v61  ;;  %v276_v30 = vld [vmem:[%s4259_s1 + $0x7a8] sm:$0xff]  ;;  %v783_v54 = vld [vmem:[%s4259_s1 + $0xd0] sm:$0xff]  ;;  %v258_v63 = vld [vmem:[%s4259_s1 + $0x718] sm:$0xff] }
  0x78   :  { %554 = vmatpush.msrb.mxu1 %v247_v62  ;;  %595 = vmatpush.msrb.mxu3 %v278_v38  ;;  %v25_v56 = vld [vmem:[%s4258_s0 + $0x50] sm:$0xff]  ;;  %v244_v31 = vld [vmem:[%s4259_s1 + $0x6a8] sm:$0xff]  ;;  %v784_v0 = vld [vmem:[%s4259_s1 + $0xd8] sm:$0xff]  ;;  %v1039_v3 = vmul.f32 %v783_v54, %v783_v54  ;;  %v1315_v10 = vadd.f32 %v1314_v59, %v1313_v1  ;;  %v1318_v39 = vsel %vm753_vm1, %v1038_v58, 0.0 }
  0x79   :  { %536 = vmatpush.msrb.mxu0 %v229_v42  ;;  %577 = vmatpush.msrb.mxu2 %v260_v43  ;;  %v275_v2 = vld [vmem:[%s4259_s1 + $0x7a0] sm:$0xff]  ;;  %v26_v5 = vld [vmem:[%s4258_s0 + $0x58] sm:$0xff]  ;;  %v257_v12 = vld [vmem:[%s4259_s1 + $0x710] sm:$0xff]  ;;  %v1040_v13 = vmul.f32 %v784_v0, %v784_v0 }
  0x7a   :  { %555 = vmatpush.msrb.mxu1 %v246_v45  ;;  %596 = vmatpush.msrb.mxu3 %v277_v47  ;;  %v226_v6 = vld [vmem:[%s4259_s1 + $0x618] sm:$0xff]  ;;  %v785_v7 = vld [vmem:[%s4259_s1 + $0xe0] sm:$0xff]  ;;  %v786_v15 = vld [vmem:[%s4259_s1 + $0xe8] sm:$0xff]  ;;  %v1317_v16 = vadd.f32 %v1316_v4, %v1315_v10  ;;  %v1320_v9 = vsel %vm753_vm1, %v1039_v3, 0.0 }
  0x7b   :  { %537 = vmatpush.msrb.mxu0 %v228_v17  ;;  %578 = vmatpush.msrb.mxu2 %v259_v50  ;;  %v243_v11 = vld [vmem:[%s4259_s1 + $0x6a0] sm:$0xff]  ;;  %v274_v14 = vld [vmem:[%s4259_s1 + $0x798] sm:$0xff]  ;;  %v225_v18 = vld [vmem:[%s4259_s1 + $0x610] sm:$0xff]  ;;  %v1042_v28 = vmul.f32 %v786_v15, %v786_v15  ;;  %v1322_v29 = vsel %vm753_vm1, %v1040_v13, 0.0 }
  0x7c   :  { %556 = vmatpush.msrb.mxu1 %v245_v53  ;;  %597 = vmatpush.msrb.mxu3 %v276_v30  ;;  %v242_v19 = vld [vmem:[%s4259_s1 + $0x698] sm:$0xff]  ;;  %v256_v21 = vld [vmem:[%s4259_s1 + $0x708] sm:$0xff]  ;;  %v273_v22 = vld [vmem:[%s4259_s1 + $0x790] sm:$0xff]  ;;  %v1319_v25 = vadd.f32 %v1318_v39, %v1317_v16  ;;  %v2225_v53 = vmov 0  }
  0x7d   :  { %503 = vmatmul.f32.vlgmr.msra.gmra.mxu2 %v25_v56  ;;  %538 = vmatpush.msrb.mxu0 %v227_v57  ;;  %v787_v23 = vld [vmem:[%s4259_s1 + $0xf0] sm:$0xff]  ;;  %v224_v26 = vld [vmem:[%s4259_s1 + $0x608] sm:$0xff]  ;;  %v255_v32 = vld [vmem:[%s4259_s1 + $0x700] sm:$0xff]  ;;  %v1326_v44 = vsel %vm753_vm1, %v1042_v28, 0.0 }
  0x7e   :  { %557 = vmatpush.msrb.mxu1 %v244_v31  ;;  %579 = vmatpush.msrb.mxu2 %v258_v63  ;;  %v241_v27 = vld [vmem:[%s4259_s1 + $0x690] sm:$0xff]  ;;  %v788_v33 = vld [vmem:[%s4259_s1 + $0xf8] sm:$0xff]  ;;  %v1321_v34 = vadd.f32 %v1320_v9, %v1319_v25  ;;  %v223_v36 = vld [vmem:[%s4259_s1 + $0x600] sm:$0xff]  ;;  %v1043_v61 = vmul.f32 %v787_v23, %v787_v23 }
  0x7f   :  { %598 = vmatpush.msrb.mxu3 %v275_v2  ;;  %463 = vmatmul.f32.vlgmr.msra.gmra.mxu0 %v2948_v8  ;;  %v1041_v8 = vmul.f32 %v785_v7, %v785_v7  ;;  %v29_v35 = vld [vmem:[%s4258_s0 + $0x70] sm:$0xff]  ;;  %v240_v37 = vld [vmem:[%s4259_s1 + $0x688] sm:$0xff]  ;;  %v271_v62 = vld [vmem:[%s4259_s1 + $0x780] sm:$0xff]  ;;  %v1044_v43 = vmul.f32 %v788_v33, %v788_v33 }
  0x80   :  { %523 = vmatmul.f32.vlgmr.msra.gmra.mxu3 %v26_v5  ;;  %539 = vmatpush.msrb.mxu0 %v226_v6  ;;  %v789_v38 = vld [vmem:[%s4259_s1 + $0x100] sm:$0xff]  ;;  %v1323_v40 = vadd.f32 %v1322_v29, %v1321_v34  ;;  %v30_v42 = vld [vmem:[%s4258_s0 + $0x78] sm:$0xff]  ;;  %v790_v45 = vld [vmem:[%s4259_s1 + $0x108] sm:$0xff]  ;;  %v1328_v50 = vsel %vm753_vm1, %v1043_v61, 0.0 }
  0x81   :  { %558 = vmatpush.msrb.mxu1 %v243_v11  ;;  %580 = vmatpush.msrb.mxu2 %v257_v12  ;;  %v1324_v60 = vsel %vm753_vm1, %v1041_v8, 0.0  ;;  %v27_v41 = vld [vmem:[%s4258_s0 + $0x60] sm:$0xff]  ;;  %v28_v48 = vld [vmem:[%s4258_s0 + $0x68] sm:$0xff]  ;;  %v1045_v17 = vmul.f32 %v789_v38, %v789_v38  ;;  %v791_v51 = vld [vmem:[%s4259_s1 + $0x110] sm:$0xff]  ;;  %v1046_v30 = vmul.f32 %v790_v45, %v790_v45  ;;  %v1330_v54 = vsel %vm753_vm1, %v1044_v43, 0.0 }
  0x82   :  { %599 = vmatpush.msrb.mxu3 %v274_v14  ;;  %483 = vmatmul.f32.vlgmr.msra.gmra.mxu1 %v2978_v20  ;;  %v272_v20 = vld [vmem:[%s4259_s1 + $0x788] sm:$0xff]  ;;  %v239_v24 = vld [vmem:[%s4259_s1 + $0x680] sm:$0xff]  ;;  %v1325_v47 = vadd.f32 %v1324_v60, %v1323_v40  ;;  %v792_v55 = vld [vmem:[%s4259_s1 + $0x118] sm:$0xff]  ;;  %v1047_v57 = vmul.f32 %v791_v51, %v791_v51 }
  0x83   :  { %540 = vmatpush.msrb.mxu0 %v225_v18  ;;  %559 = vmatpush.msrb.mxu1 %v242_v19  ;;  %v1798_v49 = vld [vmem:[%s4260_s2] sm:$0xff]  ;;  %v1332_v58 = vsel %vm753_vm1, %v1045_v17, 0.0  ;;  %v1048_v63 = vmul.f32 %v792_v55, %v792_v55  ;;  %v1334_v0 = vsel %vm753_vm1, %v1046_v30, 0.0  ;;  %v794_v1 = vld [vmem:[%s4259_s1 + $0x128] sm:$0xff]  ;;  %v795_v5 = vld [vmem:[%s4259_s1 + $0x130] sm:$0xff] }
  0x84   :  { %581 = vmatpush.msrb.mxu2 %v256_v21  ;;  %600 = vmatpush.msrb.mxu3 %v273_v22  ;;  %v1327_v52 = vadd.f32 %v1326_v44, %v1325_v47  ;;  %v793_v59 = vld [vmem:[%s4259_s1 + $0x120] sm:$0xff]  ;;  %v1336_v4 = vsel %vm753_vm1, %v1047_v57, 0.0  ;;  %v1050_v7 = vmul.f32 %v794_v1, %v794_v1  ;;  %v796_v11 = vld [vmem:[%s4259_s1 + $0x138] sm:$0xff]  ;;  %v1051_v13 = vmul.f32 %v795_v5, %v795_v5  ;;  %v798_v19 = vld [vmem:[%s4259_s1 + $0x148] sm:$0xff] }
  0x85   :  { %541 = vmatpush.msrb.mxu0 %v224_v26  ;;  %560 = vmatpush.msrb.mxu1 %v241_v27  ;;  %v1049_v3 = vmul.f32 %v793_v59, %v793_v59  ;;  %v1338_v10 = vsel %vm753_vm1, %v1048_v63, 0.0  ;;  %v797_v14 = vld [vmem:[%s4259_s1 + $0x140] sm:$0xff]  ;;  %v1052_v16 = vmul.f32 %v796_v11, %v796_v11  ;;  %v799_v22 = vld [vmem:[%s4259_s1 + $0x150] sm:$0xff]  ;;  %v1054_v25 = vmul.f32 %v798_v19, %v798_v19  ;;  %v800_v27 = vld [vmem:[%s4259_s1 + $0x158] sm:$0xff] }
  0x86   :  { %582 = vmatpush.msrb.mxu2 %v255_v32  ;;  %601 = vmatpush.msrb.mxu3 %v272_v20  ;;  %v1329_v56 = vadd.f32 %v1328_v50, %v1327_v52  ;;  %v1342_v18 = vsel %vm753_vm1, %v1050_v7, 0.0  ;;  %v1053_v9 = vmul.f32 %v797_v14, %v797_v14  ;;  %v1344_v21 = vsel %vm753_vm1, %v1051_v13, 0.0  ;;  %v801_v20 = vld [vmem:[%s4259_s1 + $0x160] sm:$0xff]  ;;  %v806_v17 = vld [vmem:[%s4259_s1 + $0x188] sm:$0xff] }
  0x87   :  { %583 = vmatmul.f32.vlgmr.msrb.gmra.mxu2 %v29_v35  ;;  %542 = vmatpush.msrb.mxu0 %v223_v36  ;;  %v1340_v39 = vsel %vm753_vm1, %v1049_v3, 0.0  ;;  %v1346_v26 = vsel %vm753_vm1, %v1052_v16, 0.0  ;;  %v1055_v29 = vmul.f32 %v799_v22, %v799_v22  ;;  %v1056_v34 = vmul.f32 %v800_v27, %v800_v27  ;;  %v802_v36 = vld [vmem:[%s4259_s1 + $0x168] sm:$0xff]  ;;  %v805_v45 = vld [vmem:[%s4259_s1 + $0x180] sm:$0xff] }
  0x88   :  { %561 = vmatpush.msrb.mxu1 %v240_v37  ;;  %602 = vmatpush.msrb.mxu3 %v271_v62  ;;  %v1331_v31 = vadd.f32 %v1330_v54, %v1329_v56  ;;  %v1348_v32 = vsel %vm753_vm1, %v1053_v9, 0.0  ;;  %v1350_v35 = vsel %vm753_vm1, %v1054_v25, 0.0  ;;  %v1057_v60 = vmul.f32 %v801_v20, %v801_v20  ;;  %v803_v62 = vld [vmem:[%s4259_s1 + $0x170] sm:$0xff]  ;;  %v808_v56 = vld [vmem:[%s4259_s1 + $0x198] sm:$0xff] }
  0x89   :  { %543 = vmatmul.f32.vlgmr.msrb.gmra.mxu0 %v27_v41  ;;  %603 = vmatmul.f32.vlgmr.msrb.gmra.mxu3 %v30_v42  ;;  %v1352_v37 = vsel %vm753_vm1, %v1055_v29, 0.0  ;;  %v1058_v40 = vmul.f32 %v802_v36, %v802_v36  ;;  %v1354_v41 = vsel %vm753_vm1, %v1056_v34, 0.0  ;;  %v804_v42 = vld [vmem:[%s4259_s1 + $0x178] sm:$0xff]  ;;  %v1059_v44 = vmul.f32 %v803_v62, %v803_v62  ;;  %v818_v62 = vld [vmem:[%s4259_s1 + $0x1e8] sm:$0xff] }
  0x8a   :  { %562 = vmatpush.msrb.mxu1 %v239_v24  ;;  %2089 = vset.pattern.permute.xlu0 %v2225_v53  ;;  %v1333_v2 = vadd.f32 %v1332_v58, %v1331_v31  ;;  %v1356_v24 = vsel %vm753_vm1, %v1057_v60, 0.0  ;;  %v1061_v51 = vmul.f32 %v805_v45, %v805_v45  ;;  %v807_v53 = vld [vmem:[%s4259_s1 + $0x190] sm:$0xff]  ;;  %v1062_v54 = vmul.f32 %v806_v17, %v806_v17  ;;  %v809_v31 = vld [vmem:[%s4259_s1 + $0x1a0] sm:$0xff] }
  0x8b   :  { %563 = vmatmul.f32.vlgmr.msrb.gmra.mxu1 %v28_v48  ;;  %1802 = vperm.xlu0 %2089, %v1798_v49   ;;  %v1060_v48 = vmul.f32 %v804_v42, %v804_v42  ;;  %v1358_v49 = vsel %vm753_vm1, %v1058_v40, 0.0  ;;  %v1360_v52 = vsel %vm753_vm1, %v1059_v44, 0.0  ;;  %v1063_v58 = vmul.f32 %v807_v53, %v807_v53  ;;  %v819_v44 = vld [vmem:[%s4259_s1 + $0x1f0] sm:$0xff] }
  0x8c   :  { %v1335_v6 = vadd.f32 %v1334_v0, %v1333_v2  ;;  %v1364_v59 = vsel %vm753_vm1, %v1061_v51, 0.0  ;;  %v1064_v0 = vmul.f32 %v808_v56, %v808_v56  ;;  %v1366_v1 = vsel %vm753_vm1, %v1062_v54, 0.0  ;;  %v810_v2 = vld [vmem:[%s4259_s1 + $0x1a8] sm:$0xff] }
  0x8d   :  { %v1362_v55 = vsel %vm753_vm1, %v1060_v48, 0.0  ;;  %v1368_v5 = vsel %vm753_vm1, %v1063_v58, 0.0  ;;  %v1074_v42 = vmul.f32 %v818_v62, %v818_v62 }
  0x8e   :  { %v1337_v12 = vadd.f32 %v1336_v4, %v1335_v6  ;;  %v1065_v4 = vmul.f32 %v809_v31, %v809_v31  ;;  %v811_v6 = vld [vmem:[%s4259_s1 + $0x1b0] sm:$0xff]  ;;  %v1370_v11 = vsel %vm753_vm1, %v1064_v0, 0.0 }
  0x8f   :  { %v1390_v48 = vsel %vm753_vm1, %v1074_v42, 0.0 }
  0x90   :  { %v1339_v15 = vadd.f32 %v1338_v10, %v1337_v12  ;;  %v1066_v10 = vmul.f32 %v810_v2, %v810_v2  ;;  %v812_v12 = vld [vmem:[%s4259_s1 + $0x1b8] sm:$0xff]  ;;  %v1372_v14 = vsel %vm753_vm1, %v1065_v4, 0.0 }
  0x92   :  { %v1341_v8 = vadd.f32 %v1340_v39, %v1339_v15  ;;  %v1067_v39 = vmul.f32 %v811_v6, %v811_v6  ;;  %v813_v15 = vld [vmem:[%s4259_s1 + $0x1c0] sm:$0xff]  ;;  %v1374_v19 = vsel %vm753_vm1, %v1066_v10, 0.0 }
  0x94   :  { %v1343_v23 = vadd.f32 %v1342_v18, %v1341_v8  ;;  %v1068_v18 = vmul.f32 %v812_v12, %v812_v12  ;;  %v814_v8 = vld [vmem:[%s4259_s1 + $0x1c8] sm:$0xff]  ;;  %v1376_v22 = vsel %vm753_vm1, %v1067_v39, 0.0 }
  0x95   :  { %v826_v39 = vld [vmem:[%s4259_s1 + $0x228] sm:$0xff] }
  0x96   :  { %v1345_v28 = vadd.f32 %v1344_v21, %v1343_v23  ;;  %v1069_v21 = vmul.f32 %v813_v15, %v813_v15  ;;  %v815_v23 = vld [vmem:[%s4259_s1 + $0x1d0] sm:$0xff]  ;;  %v1378_v27 = vsel %vm753_vm1, %v1068_v18, 0.0 }
  0x98   :  { %v1347_v33 = vadd.f32 %v1346_v26, %v1345_v28  ;;  %v1070_v26 = vmul.f32 %v814_v8, %v814_v8  ;;  %v816_v28 = vld [vmem:[%s4259_s1 + $0x1d8] sm:$0xff]  ;;  %v1380_v20 = vsel %vm753_vm1, %v1069_v21, 0.0  ;;  %v827_v8 = vld [vmem:[%s4259_s1 + $0x230] sm:$0xff] }
  0x9a   :  { %v1349_v61 = vadd.f32 %v1348_v32, %v1347_v33  ;;  %v1071_v32 = vmul.f32 %v815_v23, %v815_v23  ;;  %v817_v33 = vld [vmem:[%s4259_s1 + $0x1e0] sm:$0xff]  ;;  %v1382_v36 = vsel %vm753_vm1, %v1070_v26, 0.0  ;;  %v828_v26 = vld [vmem:[%s4259_s1 + $0x238] sm:$0xff] }
  0x9b   :  { %v1073_v60 = vmul.f32 %v817_v33, %v817_v33  ;;  %v829_v33 = vld [vmem:[%s4259_s1 + $0x240] sm:$0xff] }
  0x9c   :  { %v1351_v38 = vadd.f32 %v1350_v35, %v1349_v61  ;;  %v1072_v35 = vmul.f32 %v816_v28, %v816_v28 }
  0x9e   :  { %v1353_v43 = vadd.f32 %v1352_v37, %v1351_v38  ;;  %v1384_v37 = vsel %vm753_vm1, %v1071_v32, 0.0  ;;  %v1386_v40 = vsel %vm753_vm1, %v1072_v35, 0.0 }
  0xa0   :  { %v1355_v47 = vadd.f32 %v1354_v41, %v1353_v43  ;;  %v1388_v43 = vsel %vm753_vm1, %v1073_v60, 0.0 }
  0xa2   :  { %v1357_v50 = vadd.f32 %v1356_v24, %v1355_v47  ;;  %v1075_v47 = vmul.f32 %v819_v44, %v819_v44 }
  0xa4   :  { %v1359_v30 = vadd.f32 %v1358_v49, %v1357_v50  ;;  %v820_v49 = vld [vmem:[%s4259_s1 + $0x1f8] sm:$0xff]  ;;  %v1392_v51 = vsel %vm753_vm1, %v1075_v47, 0.0 }
  0xa5   :  { %v1076_v50 = vmul.f32 %v820_v49, %v820_v49  ;;  %v832_v49 = vld [vmem:[%s4259_s1 + $0x258] sm:$0xff] }
  0xa6   :  { %v1361_v57 = vadd.f32 %v1360_v52, %v1359_v30  ;;  %v821_v52 = vld [vmem:[%s4259_s1 + $0x200] sm:$0xff] }
  0xa7   :  { %v1077_v30 = vmul.f32 %v821_v52, %v821_v52  ;;  %v1394_v54 = vsel %vm753_vm1, %v1076_v50, 0.0 }
  0xa8   :  { %v1363_v63 = vadd.f32 %v1362_v55, %v1361_v57  ;;  %v822_v55 = vld [vmem:[%s4259_s1 + $0x208] sm:$0xff] }
  0xa9   :  { %v1078_v57 = vmul.f32 %v822_v55, %v822_v55  ;;  %v1396_v58 = vsel %vm753_vm1, %v1077_v30, 0.0  ;;  %v833_v30 = vld [vmem:[%s4259_s1 + $0x260] sm:$0xff] }
  0xaa   :  { %v1365_v3 = vadd.f32 %v1364_v59, %v1363_v63  ;;  %v823_v59 = vld [vmem:[%s4259_s1 + $0x210] sm:$0xff] }
  0xab   :  { %v1079_v63 = vmul.f32 %v823_v59, %v823_v59  ;;  %v1398_v0 = vsel %vm753_vm1, %v1078_v57, 0.0 }
  0xac   :  { %v1367_v7 = vadd.f32 %v1366_v1, %v1365_v3  ;;  %v824_v1 = vld [vmem:[%s4259_s1 + $0x218] sm:$0xff] }
  0xad   :  { %v1080_v3 = vmul.f32 %v824_v1, %v824_v1  ;;  %v1400_v4 = vsel %vm753_vm1, %v1079_v63, 0.0 }
  0xae   :  { %v1369_v13 = vadd.f32 %v1368_v5, %v1367_v7  ;;  %v825_v5 = vld [vmem:[%s4259_s1 + $0x220] sm:$0xff] }
  0xaf   :  { %v1402_v12 = vsel %vm753_vm1, %v1080_v3, 0.0 }
  0xb0   :  { %v1371_v16 = vadd.f32 %v1370_v11, %v1369_v13  ;;  %v1081_v11 = vmul.f32 %v825_v5, %v825_v5  ;;  %v835_v5 = vld [vmem:[%s4259_s1 + $0x270] sm:$0xff] }
  0xb2   :  { %v1373_v9 = vadd.f32 %v1372_v14, %v1371_v16  ;;  %v1082_v16 = vmul.f32 %v826_v39, %v826_v39  ;;  %v1404_v18 = vsel %vm753_vm1, %v1081_v11, 0.0 }
  0xb4   :  { %v1375_v25 = vadd.f32 %v1374_v19, %v1373_v9  ;;  %v1406_v23 = vsel %vm753_vm1, %v1082_v16, 0.0 }
  0xb6   :  { %v1377_v29 = vadd.f32 %v1376_v22, %v1375_v25  ;;  %v1083_v22 = vmul.f32 %v827_v8, %v827_v8 }
  0xb8   :  { %v1379_v34 = vadd.f32 %v1378_v27, %v1377_v29  ;;  %v1084_v29 = vmul.f32 %v828_v26, %v828_v26  ;;  %v1408_v32 = vsel %vm753_vm1, %v1083_v22, 0.0 }
  0xba   :  { %v1381_v61 = vadd.f32 %v1380_v20, %v1379_v34 }
  0xbc   :  { %v1383_v38 = vadd.f32 %v1382_v36, %v1381_v61  ;;  %v1085_v36 = vmul.f32 %v829_v33, %v829_v33  ;;  %v1410_v61 = vsel %vm753_vm1, %v1084_v29, 0.0  ;;  %v840_v29 = vld [vmem:[%s4259_s1 + $0x298] sm:$0xff] }
  0xbe   :  { %v1385_v41 = vadd.f32 %v1384_v37, %v1383_v38  ;;  %v830_v37 = vld [vmem:[%s4259_s1 + $0x248] sm:$0xff] }
  0xc0   :  { %v1387_v24 = vadd.f32 %v1386_v40, %v1385_v41  ;;  %v304_v10 = vpop.f32.mrf.mxu0  ;;  %v1086_v40 = vmul.f32 %v830_v37, %v830_v37  ;;  %v1412_v41 = vsel %vm753_vm1, %v1085_v36, 0.0  ;;  %v1096_v36 = vmul.f32 %v840_v29, %v840_v29 }
  0xc2   :  { %v1389_v45 = vadd.f32 %v1388_v43, %v1387_v24  ;;  %v831_v43 = vld [vmem:[%s4259_s1 + $0x250] sm:$0xff]  ;;  %v1414_v47 = vsel %vm753_vm1, %v1086_v40, 0.0 }
  0xc3   :  { %v843_v40 = vld [vmem:[%s4259_s1 + $0x2b0] sm:$0xff] }
  0xc4   :  { %v1391_v17 = vadd.f32 %v1390_v48, %v1389_v45  ;;  %v324_v6 = vpop.f32.mrf.mxu1  ;;  %v344_v14 = vpop.f32.mrf.mxu2  ;;  %v1087_v45 = vmul.f32 %v831_v43, %v831_v43  ;;  %v1434_v43 = vsel %vm753_vm1, %v1096_v36, 0.0 }
  0xc5   :  { %v325_v13 = vadd.f32 %v324_v6, %v304_v10 }
  0xc6   :  { %v1393_v53 = vadd.f32 %v1392_v51, %v1391_v17  ;;  %v1088_v51 = vmul.f32 %v832_v49, %v832_v49  ;;  %v1416_v52 = vsel %vm753_vm1, %v1087_v45, 0.0  ;;  %v1099_v45 = vmul.f32 %v843_v40, %v843_v40 }
  0xc7   :  { %v345_v19 = vadd.f32 %v344_v14, %v325_v13  ;;  %v364_v9 = vpop.f32.mrf.mxu3  ;;  %v836_v14 = vld [vmem:[%s4259_s1 + $0x278] sm:$0xff] }
  0xc8   :  { %v1395_v56 = vadd.f32 %v1394_v54, %v1393_v53  ;;  %v1418_v59 = vsel %vm753_vm1, %v1088_v51, 0.0  ;;  %v1092_v8 = vmul.f32 %v836_v14, %v836_v14  ;;  %v846_v51 = vld [vmem:[%s4259_s1 + $0x2c8] sm:$0xff] }
  0xc9   :  { %v365_v25 = vadd.f32 %v364_v9, %v345_v19 }
  0xca   :  { %v1397_v31 = vadd.f32 %v1396_v58, %v1395_v56  ;;  %v1089_v58 = vmul.f32 %v833_v30, %v833_v30  ;;  %v1440_v30 = vsel %vm753_vm1, %v1099_v45, 0.0 }
  0xcc   :  { %v1399_v2 = vadd.f32 %v1398_v0, %v1397_v31  ;;  %v834_v31 = vld [vmem:[%s4259_s1 + $0x268] sm:$0xff] }
  0xcd   :  { %v1090_v3 = vmul.f32 %v834_v31, %v834_v31 }
  0xce   :  { %v1401_v7 = vadd.f32 %v1400_v4, %v1399_v2  ;;  %v1420_v4 = vsel %vm753_vm1, %v1089_v58, 0.0  ;;  %v848_v58 = vld [vmem:[%s4259_s1 + $0x2d8] sm:$0xff] }
  0xcf   :  { %v1422_v13 = vsel %vm753_vm1, %v1090_v3, 0.0 }
  0xd0   :  { %v1403_v15 = vadd.f32 %v1402_v12, %v1401_v7  ;;  %v1091_v12 = vmul.f32 %v835_v5, %v835_v5 }
  0xd2   :  { %v1405_v21 = vadd.f32 %v1404_v18, %v1403_v15  ;;  %v1424_v9 = vsel %vm753_vm1, %v1091_v12, 0.0 }
  0xd4   :  { %v1407_v28 = vadd.f32 %v1406_v23, %v1405_v21  ;;  %v838_v23 = vld [vmem:[%s4259_s1 + $0x288] sm:$0xff] }
  0xd6   :  { %v1409_v35 = vadd.f32 %v1408_v32, %v1407_v28  ;;  %v839_v28 = vld [vmem:[%s4259_s1 + $0x290] sm:$0xff]  ;;  %v1094_v32 = vmul.f32 %v838_v23, %v838_v23 }
  0xd7   :  { %v1095_v33 = vmul.f32 %v839_v28, %v839_v28 }
  0xd8   :  { %v1411_v38 = vadd.f32 %v1410_v61, %v1409_v35  ;;  %v841_v35 = vld [vmem:[%s4259_s1 + $0x2a0] sm:$0xff]  ;;  %v842_v61 = vld [vmem:[%s4259_s1 + $0x2a8] sm:$0xff]  ;;  %v1430_v37 = vsel %vm753_vm1, %v1094_v32, 0.0  ;;  %v856_v32 = vld [vmem:[%s4259_s1 + $0x318] sm:$0xff] }
  0xda   :  { %v1413_v24 = vadd.f32 %v1412_v41, %v1411_v38  ;;  %v1432_v38 = vsel %vm753_vm1, %v1095_v33, 0.0 }
  0xdc   :  { %v1415_v17 = vadd.f32 %v1414_v47, %v1413_v24 }
  0xde   :  { %v1417_v55 = vadd.f32 %v1416_v52, %v1415_v17 }
  0xe0   :  { %v1419_v1 = vadd.f32 %v1418_v59, %v1417_v55 }
  0xe2   :  { %v384_v27 = vpop.f32.mrf.mxu0  ;;  %v1421_v10 = vadd.f32 %v1420_v4, %v1419_v1  ;;  %v850_v4 = vld [vmem:[%s4259_s1 + $0x2e8] sm:$0xff] }
  0xe3   :  { %v385_v20 = vadd.f32 %v384_v27, %v365_v25  ;;  %v2106_v25 = vld [vmem:[%s4259_s1 + $0x280] sm:$0xff]  ;;  %v1426_v27 = vsel %vm753_vm1, %v1092_v8, 0.0  ;;  %v1106_v12 = vmul.f32 %v850_v4, %v850_v4 }
  0xe4   :  { %v1423_v18 = vadd.f32 %v1422_v13, %v1421_v10  ;;  %v1093_v26 = vmul.f32 %v2106_v25, %v2106_v25  ;;  %v851_v10 = vld [vmem:[%s4259_s1 + $0x2f0] sm:$0xff] }
  0xe6   :  { %v404_v34 = vpop.f32.mrf.mxu1  ;;  %v424_v62 = vpop.f32.mrf.mxu2  ;;  %v1425_v22 = vadd.f32 %v1424_v9, %v1423_v18  ;;  %v853_v18 = vld [vmem:[%s4259_s1 + $0x300] sm:$0xff]  ;;  %v1454_v9 = vsel %vm753_vm1, %v1106_v12, 0.0 }
  0xe7   :  { %v405_v60 = vadd.f32 %v404_v34, %v385_v20  ;;  %v1428_v34 = vsel %vm753_vm1, %v1093_v26, 0.0  ;;  %v1109_v23 = vmul.f32 %v853_v18, %v853_v18  ;;  %v855_v26 = vld [vmem:[%s4259_s1 + $0x310] sm:$0xff] }
  0xe8   :  { %v1427_v20 = vadd.f32 %v1426_v27, %v1425_v22  ;;  %v1111_v33 = vmul.f32 %v855_v26, %v855_v26 }
  0xe9   :  { %v425_v42 = vadd.f32 %v424_v62, %v405_v60  ;;  %v444_v44 = vpop.f32.mrf.mxu3  ;;  %v1097_v62 = vmul.f32 %v841_v35, %v841_v35  ;;  %v857_v35 = vld [vmem:[%s4259_s1 + $0x320] sm:$0xff] }
  0xea   :  { %v1429_v60 = vadd.f32 %v1428_v34, %v1427_v20  ;;  %v1460_v34 = vsel %vm753_vm1, %v1109_v23, 0.0  ;;  %v1464_v40 = vsel %vm753_vm1, %v1111_v33, 0.0 }
  0xeb   :  { %v445_v48 = vadd.f32 %v444_v44, %v425_v42  ;;  %v1098_v42 = vmul.f32 %v842_v61, %v842_v61  ;;  %v844_v44 = vld [vmem:[%s4259_s1 + $0x2b8] sm:$0xff]  ;;  %v1436_v47 = vsel %vm753_vm1, %v1097_v62, 0.0  ;;  %v1112_v61 = vmul.f32 %v856_v32, %v856_v32 }
  0xec   :  { %v1431_v41 = vadd.f32 %v1430_v37, %v1429_v60  ;;  %v1100_v17 = vmul.f32 %v844_v44, %v844_v44  ;;  %v858_v37 = vld [vmem:[%s4259_s1 + $0x328] sm:$0xff] }
  0xed   :  { %v1466_v44 = vsel %vm753_vm1, %v1112_v61, 0.0 }
  0xee   :  { %v1433_v24 = vadd.f32 %v1432_v38, %v1431_v41  ;;  %v1113_v38 = vmul.f32 %v857_v35, %v857_v35  ;;  %v859_v41 = vld [vmem:[%s4259_s1 + $0x330] sm:$0xff] }
  0xf0   :  { %v1435_v49 = vadd.f32 %v1434_v43, %v1433_v24  ;;  %v1114_v43 = vmul.f32 %v858_v37, %v858_v37  ;;  %v860_v24 = vld [vmem:[%s4259_s1 + $0x338] sm:$0xff] }
  0xf2   :  { %v1437_v52 = vadd.f32 %v1436_v47, %v1435_v49  ;;  %v1115_v47 = vmul.f32 %v859_v41, %v859_v41  ;;  %v861_v49 = vld [vmem:[%s4259_s1 + $0x340] sm:$0xff] }
  0xfc   :  { %v464_v50 = vpop.f32.mrf.mxu0 }
  0xfd   :  { %v465_v53 = vadd.f32 %v464_v50, %v445_v48  ;;  %v845_v48 = vld [vmem:[%s4259_s1 + $0x2c0] sm:$0xff]  ;;  %v1438_v50 = vsel %vm753_vm1, %v1098_v42, 0.0 }
  0xfe   :  { %v1439_v55 = vadd.f32 %v1438_v50, %v1437_v52  ;;  %v1116_v50 = vmul.f32 %v860_v24, %v860_v24  ;;  %v862_v52 = vld [vmem:[%s4259_s1 + $0x348] sm:$0xff] }
  0xff   :  { %v484_v54 = vpop.f32.mrf.mxu1 }
 0x100   :  { %v485_v56 = vadd.f32 %v484_v54, %v465_v53  ;;  %v504_v57 = vpop.f32.mrf.mxu2  ;;  %v1101_v53 = vmul.f32 %v845_v48, %v845_v48  ;;  %v847_v54 = vld [vmem:[%s4259_s1 + $0x2d0] sm:$0xff]  ;;  %v1441_v59 = vadd.f32 %v1440_v30, %v1439_v55  ;;  %v1468_v48 = vsel %vm753_vm1, %v1113_v38, 0.0 }
 0x101   :  { %v1103_v31 = vmul.f32 %v847_v54, %v847_v54  ;;  %v1117_v30 = vmul.f32 %v861_v49, %v861_v49  ;;  %v1472_v54 = vsel %vm753_vm1, %v1115_v47, 0.0  ;;  %v863_v55 = vld [vmem:[%s4259_s1 + $0x350] sm:$0xff] }
 0x102   :  { %v505_v63 = vadd.f32 %v504_v57, %v485_v56  ;;  %v1102_v56 = vmul.f32 %v846_v51, %v846_v51  ;;  %v1442_v57 = vsel %vm753_vm1, %v1100_v17, 0.0  ;;  %v1470_v51 = vsel %vm753_vm1, %v1114_v43, 0.0 }
 0x103   :  { %v524_v0 = vpop.f32.mrf.mxu3  ;;  %v1443_v1 = vadd.f32 %v1442_v57, %v1441_v59  ;;  %v1118_v57 = vmul.f32 %v862_v52, %v862_v52  ;;  %v864_v59 = vld [vmem:[%s4259_s1 + $0x358] sm:$0xff] }
 0x104   :  { %v525_v2 = vadd.f32 %v524_v0, %v505_v63  ;;  %v1444_v63 = vsel %vm753_vm1, %v1101_v53, 0.0  ;;  %v849_v0 = vld [vmem:[%s4259_s1 + $0x2e0] sm:$0xff]  ;;  %v1446_v3 = vsel %vm753_vm1, %v1102_v56, 0.0 }
 0x105   :  { %v1445_v5 = vadd.f32 %v1444_v63, %v1443_v1  ;;  %v1119_v63 = vmul.f32 %v863_v55, %v863_v55  ;;  %v865_v1 = vld [vmem:[%s4259_s1 + $0x360] sm:$0xff]  ;;  %v1478_v4 = vsel %vm753_vm1, %v1118_v57, 0.0 }
 0x106   :  { %v544_v6 = vpop.f32.mrf.mxu0 }
 0x107   :  { %v545_v7 = vadd.f32 %v544_v6, %v525_v2  ;;  %v1104_v2 = vmul.f32 %v848_v58, %v848_v58  ;;  %v1105_v6 = vmul.f32 %v849_v0, %v849_v0  ;;  %v1474_v58 = vsel %vm753_vm1, %v1116_v50, 0.0 }
 0x108   :  { %v564_v11 = vpop.f32.mrf.mxu1  ;;  %v1476_v0 = vsel %vm753_vm1, %v1117_v30, 0.0 }
 0x109   :  { %v565_v39 = vadd.f32 %v564_v11, %v545_v7  ;;  %v1448_v7 = vsel %vm753_vm1, %v1103_v31, 0.0  ;;  %v1447_v11 = vadd.f32 %v1446_v3, %v1445_v5  ;;  %v1450_v13 = vsel %vm753_vm1, %v1104_v2, 0.0  ;;  %v866_v5 = vld [vmem:[%s4259_s1 + $0x368] sm:$0xff] }
 0x10a   :  { %v584_v15 = vpop.f32.mrf.mxu2  ;;  %v1120_v3 = vmul.f32 %v864_v59, %v864_v59 }
 0x10b   :  { %v585_v16 = vadd.f32 %v584_v15, %v565_v39  ;;  %v852_v39 = vld [vmem:[%s4259_s1 + $0x2f8] sm:$0xff]  ;;  %v1449_v14 = vadd.f32 %v1448_v7, %v1447_v11  ;;  %v1107_v15 = vmul.f32 %v851_v10, %v851_v10  ;;  %v1121_v7 = vmul.f32 %v865_v1, %v865_v1  ;;  %v867_v11 = vld [vmem:[%s4259_s1 + $0x370] sm:$0xff] }
 0x10c   :  { %v604_v19 = vpop.f32.mrf.mxu3  ;;  %v1108_v8 = vmul.f32 %v852_v39, %v852_v39  ;;  %v1480_v10 = vsel %vm753_vm1, %v1119_v63, 0.0  ;;  %v1482_v39 = vsel %vm753_vm1, %v1120_v3, 0.0 }
 0x10d   :  { %v605_v21 = vadd.f32 %v604_v19, %v585_v16  ;;  %v1452_v16 = vsel %vm753_vm1, %v1105_v6, 0.0  ;;  %v1451_v19 = vadd.f32 %v1450_v13, %v1449_v14  ;;  %v1456_v25 = vsel %vm753_vm1, %v1107_v15, 0.0  ;;  %v868_v14 = vld [vmem:[%s4259_s1 + $0x378] sm:$0xff] }
 0x10e   :  { %v1458_v29 = vsel %vm753_vm1, %v1108_v8, 0.0  ;;  %v1122_v13 = vmul.f32 %v866_v5, %v866_v5  ;;  %v1484_v18 = vsel %vm753_vm1, %v1121_v7, 0.0 }
 0x10f   :  { %754 = vst.msk [vmem:[#allocation2] sm:$0xff] %vm753_vm1, %v605_v21  ;;  %v854_v21 = vld [vmem:[%s4259_s1 + $0x308] sm:$0xff]  ;;  %v1453_v22 = vadd.f32 %v1452_v16, %v1451_v19  ;;  %v1123_v16 = vmul.f32 %v867_v11, %v867_v11  ;;  %v869_v19 = vld [vmem:[%s4259_s1 + $0x380] sm:$0xff] }
 0x110   :  { %v1110_v28 = vmul.f32 %v854_v21, %v854_v21  ;;  %v1486_v21 = vsel %vm753_vm1, %v1122_v13, 0.0 }
 0x111   :  { %v1455_v27 = vadd.f32 %v1454_v9, %v1453_v22  ;;  %v1124_v9 = vmul.f32 %v868_v14, %v868_v14  ;;  %v870_v22 = vld [vmem:[%s4259_s1 + $0x388] sm:$0xff]  ;;  %v1488_v26 = vsel %vm753_vm1, %v1123_v16, 0.0 }
 0x112   :  { %v1462_v60 = vsel %vm753_vm1, %v1110_v28, 0.0 }
 0x113   :  { %v1457_v20 = vadd.f32 %v1456_v25, %v1455_v27  ;;  %v1125_v25 = vmul.f32 %v869_v19, %v869_v19  ;;  %v871_v27 = vld [vmem:[%s4259_s1 + $0x390] sm:$0xff]  ;;  %v1490_v32 = vsel %vm753_vm1, %v1124_v9, 0.0 }
 0x115   :  { %v1459_v36 = vadd.f32 %v1458_v29, %v1457_v20  ;;  %v1126_v29 = vmul.f32 %v870_v22, %v870_v22  ;;  %v872_v20 = vld [vmem:[%s4259_s1 + $0x398] sm:$0xff]  ;;  %v1492_v35 = vsel %vm753_vm1, %v1125_v25, 0.0 }
 0x117   :  { %v1461_v62 = vadd.f32 %v1460_v34, %v1459_v36  ;;  %v1127_v34 = vmul.f32 %v871_v27, %v871_v27  ;;  %v873_v36 = vld [vmem:[%s4259_s1 + $0x3a0] sm:$0xff]  ;;  %v1494_v37 = vsel %vm753_vm1, %v1126_v29, 0.0 }
 0x119   :  { %v1463_v42 = vadd.f32 %v1462_v60, %v1461_v62  ;;  %v1128_v60 = vmul.f32 %v872_v20, %v872_v20  ;;  %v874_v62 = vld [vmem:[%s4259_s1 + $0x3a8] sm:$0xff]  ;;  %v1496_v41 = vsel %vm753_vm1, %v1127_v34, 0.0 }
 0x11b   :  { %v1465_v45 = vadd.f32 %v1464_v40, %v1463_v42  ;;  %v1129_v40 = vmul.f32 %v873_v36, %v873_v36  ;;  %v875_v42 = vld [vmem:[%s4259_s1 + $0x3b0] sm:$0xff]  ;;  %v1498_v24 = vsel %vm753_vm1, %v1128_v60, 0.0 }
 0x11d   :  { %v1467_v17 = vadd.f32 %v1466_v44, %v1465_v45  ;;  %v1130_v44 = vmul.f32 %v874_v62, %v874_v62  ;;  %v876_v45 = vld [vmem:[%s4259_s1 + $0x3b8] sm:$0xff]  ;;  %v1500_v49 = vsel %vm753_vm1, %v1129_v40, 0.0 }
 0x11f   :  { %v1469_v53 = vadd.f32 %v1468_v48, %v1467_v17  ;;  %v1131_v48 = vmul.f32 %v875_v42, %v875_v42  ;;  %v877_v17 = vld [vmem:[%s4259_s1 + $0x3c0] sm:$0xff]  ;;  %v1502_v52 = vsel %vm753_vm1, %v1130_v44, 0.0 }
 0x121   :  { %v1471_v56 = vadd.f32 %v1470_v51, %v1469_v53  ;;  %v1132_v51 = vmul.f32 %v876_v45, %v876_v45  ;;  %v878_v53 = vld [vmem:[%s4259_s1 + $0x3c8] sm:$0xff]  ;;  %v1504_v55 = vsel %vm753_vm1, %v1131_v48, 0.0 }
 0x123   :  { %v1473_v31 = vadd.f32 %v1472_v54, %v1471_v56  ;;  %v1133_v54 = vmul.f32 %v877_v17, %v877_v17  ;;  %v879_v56 = vld [vmem:[%s4259_s1 + $0x3d0] sm:$0xff]  ;;  %v1506_v59 = vsel %vm753_vm1, %v1132_v51, 0.0 }
 0x125   :  { %v1475_v2 = vadd.f32 %v1474_v58, %v1473_v31  ;;  %v1134_v58 = vmul.f32 %v878_v53, %v878_v53  ;;  %v880_v31 = vld [vmem:[%s4259_s1 + $0x3d8] sm:$0xff]  ;;  %v1508_v1 = vsel %vm753_vm1, %v1133_v54, 0.0 }
 0x127   :  { %v1477_v6 = vadd.f32 %v1476_v0, %v1475_v2  ;;  %v1135_v0 = vmul.f32 %v879_v56, %v879_v56  ;;  %v881_v2 = vld [vmem:[%s4259_s1 + $0x3e0] sm:$0xff]  ;;  %v1510_v5 = vsel %vm753_vm1, %v1134_v58, 0.0 }
 0x129   :  { %v1479_v12 = vadd.f32 %v1478_v4, %v1477_v6  ;;  %v1136_v4 = vmul.f32 %v880_v31, %v880_v31  ;;  %v882_v6 = vld [vmem:[%s4259_s1 + $0x3e8] sm:$0xff]  ;;  %v1512_v11 = vsel %vm753_vm1, %v1135_v0, 0.0  ;;  %v896_v31 = vld [vmem:[%s4259_s1 + $0x458] sm:$0xff]  ;;  %v2117_v0 = vld [vmem:[%s4259_s1 + $0x450] sm:$0xff] }
 0x12b   :  { %v1481_v15 = vadd.f32 %v1480_v10, %v1479_v12  ;;  %v1137_v10 = vmul.f32 %v881_v2, %v881_v2  ;;  %v883_v12 = vld [vmem:[%s4259_s1 + $0x3f0] sm:$0xff]  ;;  %v1514_v14 = vsel %vm753_vm1, %v1136_v4, 0.0 }
 0x12d   :  { %v1483_v8 = vadd.f32 %v1482_v39, %v1481_v15  ;;  %v1138_v39 = vmul.f32 %v882_v6, %v882_v6  ;;  %v884_v15 = vld [vmem:[%s4259_s1 + $0x3f8] sm:$0xff]  ;;  %v1516_v19 = vsel %vm753_vm1, %v1137_v10, 0.0 }
 0x12e   :  { %v1140_v9 = vmul.f32 %v884_v15, %v884_v15 }
 0x12f   :  { %v1485_v23 = vadd.f32 %v1484_v18, %v1483_v8  ;;  %v1139_v18 = vmul.f32 %v883_v12, %v883_v12 }
 0x131   :  { %v1487_v28 = vadd.f32 %v1486_v21, %v1485_v23  ;;  %v1518_v21 = vsel %vm753_vm1, %v1138_v39, 0.0  ;;  %v2107_v23 = vld [vmem:[%s4259_s1 + $0x400] sm:$0xff] }
 0x132   :  { %v1141_v25 = vmul.f32 %v2107_v23, %v2107_v23 }
 0x133   :  { %v1489_v33 = vadd.f32 %v1488_v26, %v1487_v28  ;;  %v1520_v26 = vsel %vm753_vm1, %v1139_v18, 0.0  ;;  %v2108_v28 = vld [vmem:[%s4259_s1 + $0x408] sm:$0xff] }
 0x134   :  { %v1142_v29 = vmul.f32 %v2108_v28, %v2108_v28 }
 0x135   :  { %v1491_v61 = vadd.f32 %v1490_v32, %v1489_v33  ;;  %v1522_v32 = vsel %vm753_vm1, %v1140_v9, 0.0  ;;  %v2109_v33 = vld [vmem:[%s4259_s1 + $0x410] sm:$0xff] }
 0x136   :  { %v1143_v34 = vmul.f32 %v2109_v33, %v2109_v33 }
 0x137   :  { %v1493_v38 = vadd.f32 %v1492_v35, %v1491_v61  ;;  %v1524_v35 = vsel %vm753_vm1, %v1141_v25, 0.0  ;;  %v2110_v61 = vld [vmem:[%s4259_s1 + $0x418] sm:$0xff]  ;;  %v2118_v25 = vld [vmem:[%s4259_s1 + $0x480] sm:$0xff] }
 0x138   :  { %v1144_v60 = vmul.f32 %v2110_v61, %v2110_v61 }
 0x139   :  { %v1495_v43 = vadd.f32 %v1494_v37, %v1493_v38  ;;  %v1526_v37 = vsel %vm753_vm1, %v1142_v29, 0.0  ;;  %v2111_v38 = vld [vmem:[%s4259_s1 + $0x420] sm:$0xff]  ;;  %v2119_v29 = vld [vmem:[%s4259_s1 + $0x488] sm:$0xff] }
 0x13a   :  { %v1145_v40 = vmul.f32 %v2111_v38, %v2111_v38 }
 0x13b   :  { %v1497_v47 = vadd.f32 %v1496_v41, %v1495_v43  ;;  %v1528_v41 = vsel %vm753_vm1, %v1143_v34, 0.0  ;;  %v2112_v43 = vld [vmem:[%s4259_s1 + $0x428] sm:$0xff]  ;;  %v2120_v34 = vld [vmem:[%s4259_s1 + $0x490] sm:$0xff] }
 0x13c   :  { %v1146_v44 = vmul.f32 %v2112_v43, %v2112_v43 }
 0x13d   :  { %v1499_v50 = vadd.f32 %v1498_v24, %v1497_v47  ;;  %v1530_v24 = vsel %vm753_vm1, %v1144_v60, 0.0  ;;  %v2113_v47 = vld [vmem:[%s4259_s1 + $0x430] sm:$0xff]  ;;  %v2121_v60 = vld [vmem:[%s4259_s1 + $0x498] sm:$0xff] }
 0x13e   :  { %v1147_v48 = vmul.f32 %v2113_v47, %v2113_v47 }
 0x13f   :  { %v1501_v30 = vadd.f32 %v1500_v49, %v1499_v50  ;;  %v1532_v49 = vsel %vm753_vm1, %v1145_v40, 0.0  ;;  %v2114_v50 = vld [vmem:[%s4259_s1 + $0x438] sm:$0xff]  ;;  %v2122_v40 = vld [vmem:[%s4259_s1 + $0x4a0] sm:$0xff] }
 0x140   :  { %v1148_v51 = vmul.f32 %v2114_v50, %v2114_v50 }
 0x141   :  { %v1503_v57 = vadd.f32 %v1502_v52, %v1501_v30  ;;  %v1534_v52 = vsel %vm753_vm1, %v1146_v44, 0.0  ;;  %v2115_v30 = vld [vmem:[%s4259_s1 + $0x440] sm:$0xff]  ;;  %v2123_v44 = vld [vmem:[%s4259_s1 + $0x4a8] sm:$0xff] }
 0x142   :  { %v1149_v54 = vmul.f32 %v2115_v30, %v2115_v30 }
 0x143   :  { %v1505_v63 = vadd.f32 %v1504_v55, %v1503_v57  ;;  %v1536_v55 = vsel %vm753_vm1, %v1147_v48, 0.0  ;;  %v2116_v57 = vld [vmem:[%s4259_s1 + $0x448] sm:$0xff]  ;;  %v2124_v48 = vld [vmem:[%s4259_s1 + $0x4b0] sm:$0xff] }
 0x144   :  { %v1150_v58 = vmul.f32 %v2116_v57, %v2116_v57  ;;  %v1540_v2 = vsel %vm753_vm1, %v1149_v54, 0.0  ;;  %v2126_v54 = vld [vmem:[%s4259_s1 + $0x4c0] sm:$0xff]  ;;  %v911_v57 = vld [vmem:[%s4259_s1 + $0x4d0] sm:$0xff] }
 0x145   :  { %v1507_v3 = vadd.f32 %v1506_v59, %v1505_v63  ;;  %v1538_v59 = vsel %vm753_vm1, %v1148_v51, 0.0  ;;  %v2125_v51 = vld [vmem:[%s4259_s1 + $0x4b8] sm:$0xff] }
 0x146   :  { %v1542_v6 = vsel %vm753_vm1, %v1150_v58, 0.0 }
 0x147   :  { %v1509_v7 = vadd.f32 %v1508_v1, %v1507_v3  ;;  %v1151_v1 = vmul.f32 %v2117_v0, %v2117_v0  ;;  %v897_v3 = vld [vmem:[%s4259_s1 + $0x460] sm:$0xff]  ;;  %v912_v0 = vld [vmem:[%s4259_s1 + $0x4d8] sm:$0xff] }
 0x149   :  { %v1511_v13 = vadd.f32 %v1510_v5, %v1509_v7  ;;  %v1152_v5 = vmul.f32 %v896_v31, %v896_v31  ;;  %v898_v7 = vld [vmem:[%s4259_s1 + $0x468] sm:$0xff]  ;;  %v1544_v12 = vsel %vm753_vm1, %v1151_v1, 0.0 }
 0x14b   :  { %v1513_v16 = vadd.f32 %v1512_v11, %v1511_v13  ;;  %v1153_v11 = vmul.f32 %v897_v3, %v897_v3  ;;  %v899_v13 = vld [vmem:[%s4259_s1 + $0x470] sm:$0xff]  ;;  %v1546_v15 = vsel %vm753_vm1, %v1152_v5, 0.0 }
 0x14d   :  { %v1515_v8 = vadd.f32 %v1514_v14, %v1513_v16  ;;  %v1154_v14 = vmul.f32 %v898_v7, %v898_v7  ;;  %v900_v16 = vld [vmem:[%s4259_s1 + $0x478] sm:$0xff] }
 0x14f   :  { %v1517_v22 = vadd.f32 %v1516_v19, %v1515_v8  ;;  %v1155_v19 = vmul.f32 %v899_v13, %v899_v13  ;;  %v1548_v8 = vsel %vm753_vm1, %v1153_v11, 0.0 }
 0x151   :  { %v1519_v27 = vadd.f32 %v1518_v21, %v1517_v22  ;;  %v1156_v21 = vmul.f32 %v900_v16, %v900_v16  ;;  %v1550_v22 = vsel %vm753_vm1, %v1154_v14, 0.0 }
 0x153   :  { %v1521_v20 = vadd.f32 %v1520_v26, %v1519_v27  ;;  %v1157_v26 = vmul.f32 %v2118_v25, %v2118_v25  ;;  %v1552_v27 = vsel %vm753_vm1, %v1155_v19, 0.0 }
 0x155   :  { %v1523_v36 = vadd.f32 %v1522_v32, %v1521_v20  ;;  %v1158_v32 = vmul.f32 %v2119_v29, %v2119_v29  ;;  %v1554_v20 = vsel %vm753_vm1, %v1156_v21, 0.0 }
 0x157   :  { %v1525_v62 = vadd.f32 %v1524_v35, %v1523_v36  ;;  %v1159_v35 = vmul.f32 %v2120_v34, %v2120_v34  ;;  %v1556_v36 = vsel %vm753_vm1, %v1157_v26, 0.0  ;;  %v2128_v26 = vld [vmem:[%s4259_s1 + $0x500] sm:$0xff] }
 0x159   :  { %v1527_v42 = vadd.f32 %v1526_v37, %v1525_v62  ;;  %v1160_v37 = vmul.f32 %v2121_v60, %v2121_v60  ;;  %v1558_v62 = vsel %vm753_vm1, %v1158_v32, 0.0  ;;  %v2129_v32 = vld [vmem:[%s4259_s1 + $0x508] sm:$0xff] }
 0x15b   :  { %v1529_v45 = vadd.f32 %v1528_v41, %v1527_v42  ;;  %v1161_v41 = vmul.f32 %v2122_v40, %v2122_v40  ;;  %v1560_v42 = vsel %vm753_vm1, %v1159_v35, 0.0  ;;  %v2130_v35 = vld [vmem:[%s4259_s1 + $0x510] sm:$0xff] }
 0x15d   :  { %v1531_v17 = vadd.f32 %v1530_v24, %v1529_v45  ;;  %v1162_v24 = vmul.f32 %v2123_v44, %v2123_v44  ;;  %v1562_v45 = vsel %vm753_vm1, %v1160_v37, 0.0  ;;  %v2131_v37 = vld [vmem:[%s4259_s1 + $0x518] sm:$0xff] }
 0x15f   :  { %v1533_v53 = vadd.f32 %v1532_v49, %v1531_v17  ;;  %v1163_v49 = vmul.f32 %v2124_v48, %v2124_v48  ;;  %v1564_v17 = vsel %vm753_vm1, %v1161_v41, 0.0  ;;  %v2132_v41 = vld [vmem:[%s4259_s1 + $0x520] sm:$0xff]  ;;  %v924_v48 = vld [vmem:[%s4259_s1 + $0x538] sm:$0xff] }
 0x161   :  { %v1535_v56 = vadd.f32 %v1534_v52, %v1533_v53  ;;  %v1164_v52 = vmul.f32 %v2125_v51, %v2125_v51  ;;  %v1566_v53 = vsel %vm753_vm1, %v1162_v24, 0.0  ;;  %v2133_v24 = vld [vmem:[%s4259_s1 + $0x528] sm:$0xff] }
 0x163   :  { %v1537_v63 = vadd.f32 %v1536_v55, %v1535_v56  ;;  %v1165_v55 = vmul.f32 %v2126_v54, %v2126_v54  ;;  %v1568_v56 = vsel %vm753_vm1, %v1163_v49, 0.0 }
 0x165   :  { %v1539_v4 = vadd.f32 %v1538_v59, %v1537_v63  ;;  %v2127_v59 = vld [vmem:[%s4259_s1 + $0x4c8] sm:$0xff]  ;;  %v1570_v63 = vsel %vm753_vm1, %v1164_v52, 0.0  ;;  %v1572_v3 = vsel %vm753_vm1, %v1165_v55, 0.0  ;;  %v925_v52 = vld [vmem:[%s4259_s1 + $0x540] sm:$0xff] }
 0x166   :  { %v1166_v31 = vmul.f32 %v2127_v59, %v2127_v59  ;;  %v926_v55 = vld [vmem:[%s4259_s1 + $0x548] sm:$0xff]  ;;  %v927_v59 = vld [vmem:[%s4259_s1 + $0x550] sm:$0xff] }
 0x167   :  { %v1541_v10 = vadd.f32 %v1540_v2, %v1539_v4  ;;  %v1167_v2 = vmul.f32 %v911_v57, %v911_v57  ;;  %v913_v4 = vld [vmem:[%s4259_s1 + $0x4e0] sm:$0xff]  ;;  %v1181_v57 = vmul.f32 %v925_v52, %v925_v52 }
 0x168   :  { %v1574_v7 = vsel %vm753_vm1, %v1166_v31, 0.0 }
 0x169   :  { %v1543_v39 = vadd.f32 %v1542_v6, %v1541_v10  ;;  %v1168_v6 = vmul.f32 %v912_v0, %v912_v0  ;;  %v914_v10 = vld [vmem:[%s4259_s1 + $0x4e8] sm:$0xff]  ;;  %v1576_v13 = vsel %vm753_vm1, %v1167_v2, 0.0 }
 0x16b   :  { %v1545_v18 = vadd.f32 %v1544_v12, %v1543_v39  ;;  %v1169_v12 = vmul.f32 %v913_v4, %v913_v4  ;;  %v915_v39 = vld [vmem:[%s4259_s1 + $0x4f0] sm:$0xff]  ;;  %v1578_v16 = vsel %vm753_vm1, %v1168_v6, 0.0  ;;  %v1604_v4 = vsel %vm753_vm1, %v1181_v57, 0.0 }
 0x16d   :  { %v1547_v9 = vadd.f32 %v1546_v15, %v1545_v18  ;;  %v1170_v15 = vmul.f32 %v914_v10, %v914_v10  ;;  %v916_v18 = vld [vmem:[%s4259_s1 + $0x4f8] sm:$0xff] }
 0x16f   :  { %v1549_v23 = vadd.f32 %v1548_v8, %v1547_v9  ;;  %v1171_v8 = vmul.f32 %v915_v39, %v915_v39  ;;  %v1580_v9 = vsel %vm753_vm1, %v1169_v12, 0.0 }
 0x171   :  { %v1551_v28 = vadd.f32 %v1550_v22, %v1549_v23  ;;  %v1172_v22 = vmul.f32 %v916_v18, %v916_v18  ;;  %v1582_v23 = vsel %vm753_vm1, %v1170_v15, 0.0 }
 0x173   :  { %v1553_v33 = vadd.f32 %v1552_v27, %v1551_v28  ;;  %v1173_v27 = vmul.f32 %v2128_v26, %v2128_v26  ;;  %v1584_v28 = vsel %vm753_vm1, %v1171_v8, 0.0 }
 0x175   :  { %v1555_v61 = vadd.f32 %v1554_v20, %v1553_v33  ;;  %v1174_v20 = vmul.f32 %v2129_v32, %v2129_v32  ;;  %v1586_v33 = vsel %vm753_vm1, %v1172_v22, 0.0 }
 0x177   :  { %v1557_v38 = vadd.f32 %v1556_v36, %v1555_v61  ;;  %v1175_v36 = vmul.f32 %v2130_v35, %v2130_v35  ;;  %v1588_v61 = vsel %vm753_vm1, %v1173_v27, 0.0  ;;  %v2135_v27 = vld [vmem:[%s4259_s1 + $0x580] sm:$0xff] }
 0x179   :  { %v1559_v43 = vadd.f32 %v1558_v62, %v1557_v38  ;;  %v1176_v62 = vmul.f32 %v2131_v37, %v2131_v37  ;;  %v1590_v38 = vsel %vm753_vm1, %v1174_v20, 0.0  ;;  %v2136_v20 = vld [vmem:[%s4259_s1 + $0x588] sm:$0xff] }
 0x17b   :  { %v1561_v47 = vadd.f32 %v1560_v42, %v1559_v43  ;;  %v1177_v42 = vmul.f32 %v2132_v41, %v2132_v41  ;;  %v1592_v43 = vsel %vm753_vm1, %v1175_v36, 0.0  ;;  %v2137_v36 = vld [vmem:[%s4259_s1 + $0x590] sm:$0xff] }
 0x17d   :  { %v1563_v50 = vadd.f32 %v1562_v45, %v1561_v47  ;;  %v1178_v45 = vmul.f32 %v2133_v24, %v2133_v24  ;;  %v1594_v47 = vsel %vm753_vm1, %v1176_v62, 0.0  ;;  %v1596_v51 = vsel %vm753_vm1, %v1177_v42, 0.0  ;;  %v2138_v62 = vld [vmem:[%s4259_s1 + $0x598] sm:$0xff]  ;;  %v2139_v42 = vld [vmem:[%s4259_s1 + $0x5a0] sm:$0xff]  ;;  %v939_v24 = vld [vmem:[%s4259_s1 + $0x5b0] sm:$0xff] }
 0x17f   :  { %v1565_v30 = vadd.f32 %v1564_v17, %v1563_v50  ;;  %v2134_v17 = vld [vmem:[%s4259_s1 + $0x530] sm:$0xff]  ;;  %v1598_v54 = vsel %vm753_vm1, %v1178_v45, 0.0 }
 0x180   :  { %v1179_v50 = vmul.f32 %v2134_v17, %v2134_v17  ;;  %v940_v17 = vld [vmem:[%s4259_s1 + $0x5b8] sm:$0xff] }
 0x181   :  { %v1567_v58 = vadd.f32 %v1566_v53, %v1565_v30  ;;  %v1180_v30 = vmul.f32 %v924_v48, %v924_v48 }
 0x183   :  { %v1569_v1 = vadd.f32 %v1568_v56, %v1567_v58  ;;  %v1600_v58 = vsel %vm753_vm1, %v1179_v50, 0.0  ;;  %v1602_v0 = vsel %vm753_vm1, %v1180_v30, 0.0 }
 0x185   :  { %v1571_v5 = vadd.f32 %v1570_v63, %v1569_v1  ;;  %v1182_v63 = vmul.f32 %v926_v55, %v926_v55  ;;  %v928_v1 = vld [vmem:[%s4259_s1 + $0x558] sm:$0xff] }
 0x187   :  { %v1573_v11 = vadd.f32 %v1572_v3, %v1571_v5  ;;  %v1183_v3 = vmul.f32 %v927_v59, %v927_v59  ;;  %v929_v5 = vld [vmem:[%s4259_s1 + $0x560] sm:$0xff]  ;;  %v1606_v10 = vsel %vm753_vm1, %v1182_v63, 0.0 }
 0x189   :  { %v1575_v14 = vadd.f32 %v1574_v7, %v1573_v11  ;;  %v1184_v7 = vmul.f32 %v928_v1, %v928_v1  ;;  %v930_v11 = vld [vmem:[%s4259_s1 + $0x568] sm:$0xff]  ;;  %v1608_v39 = vsel %vm753_vm1, %v1183_v3, 0.0 }
 0x18b   :  { %v1577_v19 = vadd.f32 %v1576_v13, %v1575_v14  ;;  %v1185_v13 = vmul.f32 %v929_v5, %v929_v5  ;;  %v931_v14 = vld [vmem:[%s4259_s1 + $0x570] sm:$0xff]  ;;  %v1610_v18 = vsel %vm753_vm1, %v1184_v7, 0.0 }
 0x18d   :  { %v1579_v21 = vadd.f32 %v1578_v16, %v1577_v19  ;;  %v1186_v16 = vmul.f32 %v930_v11, %v930_v11  ;;  %v932_v19 = vld [vmem:[%s4259_s1 + $0x578] sm:$0xff] }
 0x18f   :  { %v1581_v25 = vadd.f32 %v1580_v9, %v1579_v21  ;;  %v1187_v9 = vmul.f32 %v931_v14, %v931_v14  ;;  %v1612_v21 = vsel %vm753_vm1, %v1185_v13, 0.0 }
 0x191   :  { %v1583_v29 = vadd.f32 %v1582_v23, %v1581_v25  ;;  %v1188_v23 = vmul.f32 %v932_v19, %v932_v19  ;;  %v1614_v25 = vsel %vm753_vm1, %v1186_v16, 0.0 }
 0x193   :  { %v1585_v34 = vadd.f32 %v1584_v28, %v1583_v29  ;;  %v1189_v28 = vmul.f32 %v2135_v27, %v2135_v27  ;;  %v1616_v29 = vsel %vm753_vm1, %v1187_v9, 0.0 }
 0x195   :  { %v1587_v60 = vadd.f32 %v1586_v33, %v1585_v34  ;;  %v1190_v33 = vmul.f32 %v2136_v20, %v2136_v20  ;;  %v1618_v34 = vsel %vm753_vm1, %v1188_v23, 0.0 }
 0x197   :  { %v1589_v40 = vadd.f32 %v1588_v61, %v1587_v60  ;;  %v1191_v61 = vmul.f32 %v2137_v36, %v2137_v36  ;;  %v1620_v60 = vsel %vm753_vm1, %v1189_v28, 0.0  ;;  %v2141_v28 = vld [vmem:[%s4259_s1 + $0x600] sm:$0xff] }
 0x199   :  { %v1591_v44 = vadd.f32 %v1590_v38, %v1589_v40  ;;  %v1192_v38 = vmul.f32 %v2138_v62, %v2138_v62  ;;  %v1622_v40 = vsel %vm753_vm1, %v1190_v33, 0.0  ;;  %v2142_v33 = vld [vmem:[%s4259_s1 + $0x608] sm:$0xff] }
 0x19b   :  { %v1593_v49 = vadd.f32 %v1592_v43, %v1591_v44  ;;  %v1193_v43 = vmul.f32 %v2139_v42, %v2139_v42  ;;  %v1624_v44 = vsel %vm753_vm1, %v1191_v61, 0.0  ;;  %v2143_v61 = vld [vmem:[%s4259_s1 + $0x610] sm:$0xff] }
 0x19d   :  { %v1595_v53 = vadd.f32 %v1594_v47, %v1593_v49  ;;  %v2140_v47 = vld [vmem:[%s4259_s1 + $0x5a8] sm:$0xff]  ;;  %v1626_v49 = vsel %vm753_vm1, %v1192_v38, 0.0  ;;  %v1628_v52 = vsel %vm753_vm1, %v1193_v43, 0.0  ;;  %v2144_v38 = vld [vmem:[%s4259_s1 + $0x618] sm:$0xff]  ;;  %v2145_v43 = vld [vmem:[%s4259_s1 + $0x620] sm:$0xff] }
 0x19e   :  { %v1194_v48 = vmul.f32 %v2140_v47, %v2140_v47  ;;  %v2146_v47 = vld [vmem:[%s4259_s1 + $0x628] sm:$0xff] }
 0x19f   :  { %v1597_v56 = vadd.f32 %v1596_v51, %v1595_v53  ;;  %v1195_v51 = vmul.f32 %v939_v24, %v939_v24  ;;  %v941_v53 = vld [vmem:[%s4259_s1 + $0x5c0] sm:$0xff] }
 0x1a0   :  { %v1630_v55 = vsel %vm753_vm1, %v1194_v48, 0.0  ;;  %v1210_v48 = vmul.f32 %v2146_v47, %v2146_v47 }
 0x1a1   :  { %v1599_v31 = vadd.f32 %v1598_v54, %v1597_v56  ;;  %v1196_v54 = vmul.f32 %v940_v17, %v940_v17  ;;  %v942_v56 = vld [vmem:[%s4259_s1 + $0x5c8] sm:$0xff]  ;;  %v1632_v59 = vsel %vm753_vm1, %v1195_v51, 0.0 }
 0x1a3   :  { %v1601_v2 = vadd.f32 %v1600_v58, %v1599_v31  ;;  %v1197_v58 = vmul.f32 %v941_v53, %v941_v53  ;;  %v943_v31 = vld [vmem:[%s4259_s1 + $0x5d0] sm:$0xff]  ;;  %v1634_v1 = vsel %vm753_vm1, %v1196_v54, 0.0 }
 0x1a5   :  { %v1603_v6 = vadd.f32 %v1602_v0, %v1601_v2  ;;  %v1198_v0 = vmul.f32 %v942_v56, %v942_v56  ;;  %v944_v2 = vld [vmem:[%s4259_s1 + $0x5d8] sm:$0xff]  ;;  %v1636_v5 = vsel %vm753_vm1, %v1197_v58, 0.0 }
 0x1a7   :  { %v1605_v12 = vadd.f32 %v1604_v4, %v1603_v6  ;;  %v1199_v4 = vmul.f32 %v943_v31, %v943_v31  ;;  %v945_v6 = vld [vmem:[%s4259_s1 + $0x5e0] sm:$0xff]  ;;  %v1638_v11 = vsel %vm753_vm1, %v1198_v0, 0.0 }
 0x1a9   :  { %v1607_v15 = vadd.f32 %v1606_v10, %v1605_v12  ;;  %v1200_v10 = vmul.f32 %v944_v2, %v944_v2  ;;  %v946_v12 = vld [vmem:[%s4259_s1 + $0x5e8] sm:$0xff]  ;;  %v1640_v14 = vsel %vm753_vm1, %v1199_v4, 0.0 }
 0x1ab   :  { %v1609_v8 = vadd.f32 %v1608_v39, %v1607_v15  ;;  %v1201_v39 = vmul.f32 %v945_v6, %v945_v6  ;;  %v947_v15 = vld [vmem:[%s4259_s1 + $0x5f0] sm:$0xff]  ;;  %v1642_v19 = vsel %vm753_vm1, %v1200_v10, 0.0 }
 0x1ad   :  { %v1611_v22 = vadd.f32 %v1610_v18, %v1609_v8  ;;  %v1202_v18 = vmul.f32 %v946_v12, %v946_v12  ;;  %v948_v8 = vld [vmem:[%s4259_s1 + $0x5f8] sm:$0xff] }
 0x1af   :  { %v1613_v26 = vadd.f32 %v1612_v21, %v1611_v22  ;;  %v1203_v21 = vmul.f32 %v947_v15, %v947_v15  ;;  %v1644_v22 = vsel %vm753_vm1, %v1201_v39, 0.0 }
 0x1b1   :  { %v1615_v32 = vadd.f32 %v1614_v25, %v1613_v26  ;;  %v1204_v25 = vmul.f32 %v948_v8, %v948_v8  ;;  %v1646_v26 = vsel %vm753_vm1, %v1202_v18, 0.0 }
 0x1b3   :  { %v1617_v35 = vadd.f32 %v1616_v29, %v1615_v32  ;;  %v1205_v29 = vmul.f32 %v2141_v28, %v2141_v28  ;;  %v1648_v32 = vsel %vm753_vm1, %v1203_v21, 0.0 }
 0x1b5   :  { %v1619_v37 = vadd.f32 %v1618_v34, %v1617_v35  ;;  %v1206_v34 = vmul.f32 %v2142_v33, %v2142_v33  ;;  %v1650_v35 = vsel %vm753_vm1, %v1204_v25, 0.0  ;;  %v2156_v25 = vld [vmem:[%s4259_s1 + $0x678] sm:$0xff] }
 0x1b7   :  { %v1621_v41 = vadd.f32 %v1620_v60, %v1619_v37  ;;  %v1207_v60 = vmul.f32 %v2143_v61, %v2143_v61  ;;  %v1652_v37 = vsel %vm753_vm1, %v1205_v29, 0.0  ;;  %v2157_v29 = vld [vmem:[%s4259_s1 + $0x680] sm:$0xff] }
 0x1b9   :  { %v1623_v45 = vadd.f32 %v1622_v40, %v1621_v41  ;;  %v1208_v40 = vmul.f32 %v2144_v38, %v2144_v38  ;;  %v1654_v41 = vsel %vm753_vm1, %v1206_v34, 0.0  ;;  %v1656_v24 = vsel %vm753_vm1, %v1207_v60, 0.0  ;;  %v2158_v34 = vld [vmem:[%s4259_s1 + $0x688] sm:$0xff]  ;;  %v2159_v60 = vld [vmem:[%s4259_s1 + $0x690] sm:$0xff] }
 0x1bb   :  { %v1625_v50 = vadd.f32 %v1624_v44, %v1623_v45  ;;  %v1209_v44 = vmul.f32 %v2145_v43, %v2145_v43 }
 0x1bd   :  { %v1627_v30 = vadd.f32 %v1626_v49, %v1625_v50  ;;  %v1658_v49 = vsel %vm753_vm1, %v1208_v40, 0.0  ;;  %v2147_v50 = vld [vmem:[%s4259_s1 + $0x630] sm:$0xff]  ;;  %v2160_v40 = vld [vmem:[%s4259_s1 + $0x698] sm:$0xff] }
 0x1be   :  { %v1211_v51 = vmul.f32 %v2147_v50, %v2147_v50 }
 0x1bf   :  { %v1629_v57 = vadd.f32 %v1628_v52, %v1627_v30  ;;  %v1660_v52 = vsel %vm753_vm1, %v1209_v44, 0.0  ;;  %v2148_v30 = vld [vmem:[%s4259_s1 + $0x638] sm:$0xff]  ;;  %v2161_v44 = vld [vmem:[%s4259_s1 + $0x6a0] sm:$0xff] }
 0x1c0   :  { %v1212_v54 = vmul.f32 %v2148_v30, %v2148_v30 }
 0x1c1   :  { %v1631_v63 = vadd.f32 %v1630_v55, %v1629_v57  ;;  %v1662_v55 = vsel %vm753_vm1, %v1210_v48, 0.0  ;;  %v2149_v57 = vld [vmem:[%s4259_s1 + $0x640] sm:$0xff]  ;;  %v2162_v48 = vld [vmem:[%s4259_s1 + $0x6a8] sm:$0xff] }
 0x1c2   :  { %v1213_v58 = vmul.f32 %v2149_v57, %v2149_v57 }
 0x1c3   :  { %v1633_v3 = vadd.f32 %v1632_v59, %v1631_v63  ;;  %v1664_v59 = vsel %vm753_vm1, %v1211_v51, 0.0  ;;  %v2150_v63 = vld [vmem:[%s4259_s1 + $0x648] sm:$0xff]  ;;  %v2163_v51 = vld [vmem:[%s4259_s1 + $0x6b0] sm:$0xff] }
 0x1c4   :  { %v1214_v0 = vmul.f32 %v2150_v63, %v2150_v63 }
 0x1c5   :  { %v1635_v7 = vadd.f32 %v1634_v1, %v1633_v3  ;;  %v1666_v1 = vsel %vm753_vm1, %v1212_v54, 0.0  ;;  %v2151_v3 = vld [vmem:[%s4259_s1 + $0x650] sm:$0xff]  ;;  %v2164_v54 = vld [vmem:[%s4259_s1 + $0x6b8] sm:$0xff] }
 0x1c6   :  { %v1215_v4 = vmul.f32 %v2151_v3, %v2151_v3 }
 0x1c7   :  { %v1637_v13 = vadd.f32 %v1636_v5, %v1635_v7  ;;  %v1668_v5 = vsel %vm753_vm1, %v1213_v58, 0.0  ;;  %v2152_v7 = vld [vmem:[%s4259_s1 + $0x658] sm:$0xff]  ;;  %v2165_v58 = vld [vmem:[%s4259_s1 + $0x6c0] sm:$0xff] }
 0x1c8   :  { %v1216_v10 = vmul.f32 %v2152_v7, %v2152_v7 }
 0x1c9   :  { %v1639_v16 = vadd.f32 %v1638_v11, %v1637_v13  ;;  %v1670_v11 = vsel %vm753_vm1, %v1214_v0, 0.0  ;;  %v2153_v13 = vld [vmem:[%s4259_s1 + $0x660] sm:$0xff]  ;;  %v2166_v0 = vld [vmem:[%s4259_s1 + $0x6c8] sm:$0xff] }
 0x1ca   :  { %v1217_v39 = vmul.f32 %v2153_v13, %v2153_v13 }
 0x1cb   :  { %v1641_v9 = vadd.f32 %v1640_v14, %v1639_v16  ;;  %v1672_v14 = vsel %vm753_vm1, %v1215_v4, 0.0  ;;  %v2154_v16 = vld [vmem:[%s4259_s1 + $0x668] sm:$0xff]  ;;  %v2167_v4 = vld [vmem:[%s4259_s1 + $0x6d0] sm:$0xff] }
 0x1cc   :  { %v1218_v18 = vmul.f32 %v2154_v16, %v2154_v16 }
 0x1cd   :  { %v1643_v23 = vadd.f32 %v1642_v19, %v1641_v9  ;;  %v1674_v19 = vsel %vm753_vm1, %v1216_v10, 0.0  ;;  %v2155_v9 = vld [vmem:[%s4259_s1 + $0x670] sm:$0xff]  ;;  %v2168_v10 = vld [vmem:[%s4259_s1 + $0x6d8] sm:$0xff] }
 0x1ce   :  { %v1219_v21 = vmul.f32 %v2155_v9, %v2155_v9 }
 0x1cf   :  { %v1645_v27 = vadd.f32 %v1644_v22, %v1643_v23  ;;  %v1676_v22 = vsel %vm753_vm1, %v1217_v39, 0.0  ;;  %v2169_v39 = vld [vmem:[%s4259_s1 + $0x6e0] sm:$0xff] }
 0x1d1   :  { %v1647_v20 = vadd.f32 %v1646_v26, %v1645_v27  ;;  %v1220_v26 = vmul.f32 %v2156_v25, %v2156_v25  ;;  %v1678_v27 = vsel %vm753_vm1, %v1218_v18, 0.0  ;;  %v2170_v18 = vld [vmem:[%s4259_s1 + $0x6e8] sm:$0xff] }
 0x1d3   :  { %v1649_v36 = vadd.f32 %v1648_v32, %v1647_v20  ;;  %v1221_v32 = vmul.f32 %v2157_v29, %v2157_v29  ;;  %v1680_v20 = vsel %vm753_vm1, %v1219_v21, 0.0  ;;  %v2171_v21 = vld [vmem:[%s4259_s1 + $0x6f0] sm:$0xff] }
 0x1d5   :  { %v1651_v62 = vadd.f32 %v1650_v35, %v1649_v36  ;;  %v1222_v35 = vmul.f32 %v2158_v34, %v2158_v34  ;;  %v1682_v36 = vsel %vm753_vm1, %v1220_v26, 0.0  ;;  %v2172_v26 = vld [vmem:[%s4259_s1 + $0x6f8] sm:$0xff] }
 0x1d7   :  { %v1653_v42 = vadd.f32 %v1652_v37, %v1651_v62  ;;  %v1223_v37 = vmul.f32 %v2159_v60, %v2159_v60  ;;  %v1684_v62 = vsel %vm753_vm1, %v1221_v32, 0.0  ;;  %v2173_v32 = vld [vmem:[%s4259_s1 + $0x700] sm:$0xff] }
 0x1d9   :  { %v1655_v45 = vadd.f32 %v1654_v41, %v1653_v42  ;;  %v1224_v41 = vmul.f32 %v2160_v40, %v2160_v40  ;;  %v1686_v42 = vsel %vm753_vm1, %v1222_v35, 0.0  ;;  %v2174_v35 = vld [vmem:[%s4259_s1 + $0x708] sm:$0xff] }
 0x1db   :  { %v1657_v17 = vadd.f32 %v1656_v24, %v1655_v45  ;;  %v1225_v24 = vmul.f32 %v2161_v44, %v2161_v44  ;;  %v1688_v45 = vsel %vm753_vm1, %v1223_v37, 0.0  ;;  %v2175_v37 = vld [vmem:[%s4259_s1 + $0x710] sm:$0xff] }
 0x1dd   :  { %v1659_v53 = vadd.f32 %v1658_v49, %v1657_v17  ;;  %v1226_v49 = vmul.f32 %v2162_v48, %v2162_v48  ;;  %v1690_v17 = vsel %vm753_vm1, %v1224_v41, 0.0  ;;  %v2176_v41 = vld [vmem:[%s4259_s1 + $0x718] sm:$0xff] }
 0x1df   :  { %v1661_v56 = vadd.f32 %v1660_v52, %v1659_v53  ;;  %v1227_v52 = vmul.f32 %v2163_v51, %v2163_v51  ;;  %v1692_v53 = vsel %vm753_vm1, %v1225_v24, 0.0  ;;  %v2177_v24 = vld [vmem:[%s4259_s1 + $0x720] sm:$0xff] }
 0x1e1   :  { %v1663_v31 = vadd.f32 %v1662_v55, %v1661_v56  ;;  %v1228_v55 = vmul.f32 %v2164_v54, %v2164_v54  ;;  %v1694_v56 = vsel %vm753_vm1, %v1226_v49, 0.0  ;;  %v2178_v49 = vld [vmem:[%s4259_s1 + $0x728] sm:$0xff] }
 0x1e3   :  { %v1665_v2 = vadd.f32 %v1664_v59, %v1663_v31  ;;  %v1229_v59 = vmul.f32 %v2165_v58, %v2165_v58  ;;  %v1696_v31 = vsel %vm753_vm1, %v1227_v52, 0.0  ;;  %v2179_v52 = vld [vmem:[%s4259_s1 + $0x730] sm:$0xff] }
 0x1e5   :  { %v1667_v6 = vadd.f32 %v1666_v1, %v1665_v2  ;;  %v1230_v1 = vmul.f32 %v2166_v0, %v2166_v0  ;;  %v1698_v2 = vsel %vm753_vm1, %v1228_v55, 0.0  ;;  %v2180_v55 = vld [vmem:[%s4259_s1 + $0x738] sm:$0xff] }
 0x1e7   :  { %v1669_v12 = vadd.f32 %v1668_v5, %v1667_v6  ;;  %v1231_v5 = vmul.f32 %v2167_v4, %v2167_v4  ;;  %v1700_v6 = vsel %vm753_vm1, %v1229_v59, 0.0  ;;  %v2181_v59 = vld [vmem:[%s4259_s1 + $0x740] sm:$0xff] }
 0x1e9   :  { %v1671_v15 = vadd.f32 %v1670_v11, %v1669_v12  ;;  %v1232_v11 = vmul.f32 %v2168_v10, %v2168_v10  ;;  %v1702_v12 = vsel %vm753_vm1, %v1230_v1, 0.0  ;;  %v2182_v1 = vld [vmem:[%s4259_s1 + $0x748] sm:$0xff] }
 0x1eb   :  { %v1673_v8 = vadd.f32 %v1672_v14, %v1671_v15  ;;  %v1233_v14 = vmul.f32 %v2169_v39, %v2169_v39  ;;  %v1704_v15 = vsel %vm753_vm1, %v1231_v5, 0.0  ;;  %v2183_v5 = vld [vmem:[%s4259_s1 + $0x750] sm:$0xff] }
 0x1ed   :  { %v1675_v23 = vadd.f32 %v1674_v19, %v1673_v8  ;;  %v1234_v19 = vmul.f32 %v2170_v18, %v2170_v18  ;;  %v1706_v8 = vsel %vm753_vm1, %v1232_v11, 0.0  ;;  %v2184_v11 = vld [vmem:[%s4259_s1 + $0x758] sm:$0xff] }
 0x1ef   :  { %v1677_v28 = vadd.f32 %v1676_v22, %v1675_v23  ;;  %v1235_v22 = vmul.f32 %v2171_v21, %v2171_v21  ;;  %v1708_v23 = vsel %vm753_vm1, %v1233_v14, 0.0  ;;  %v2185_v14 = vld [vmem:[%s4259_s1 + $0x760] sm:$0xff]  ;;  %v996_v21 = vld [vmem:[%s4259_s1 + $0x778] sm:$0xff] }
 0x1f1   :  { %v1679_v33 = vadd.f32 %v1678_v27, %v1677_v28  ;;  %v1236_v27 = vmul.f32 %v2172_v26, %v2172_v26  ;;  %v1710_v28 = vsel %vm753_vm1, %v1234_v19, 0.0  ;;  %v2186_v19 = vld [vmem:[%s4259_s1 + $0x768] sm:$0xff] }
 0x1f3   :  { %v1681_v61 = vadd.f32 %v1680_v20, %v1679_v33  ;;  %v1237_v20 = vmul.f32 %v2173_v32, %v2173_v32  ;;  %v1712_v33 = vsel %vm753_vm1, %v1235_v22, 0.0 }
 0x1f5   :  { %v1683_v38 = vadd.f32 %v1682_v36, %v1681_v61  ;;  %v1238_v36 = vmul.f32 %v2174_v35, %v2174_v35  ;;  %v1714_v61 = vsel %vm753_vm1, %v1236_v27, 0.0 }
 0x1f7   :  { %v1685_v43 = vadd.f32 %v1684_v62, %v1683_v38  ;;  %v1239_v62 = vmul.f32 %v2175_v37, %v2175_v37  ;;  %v1716_v38 = vsel %vm753_vm1, %v1237_v20, 0.0  ;;  %v2188_v20 = vld [vmem:[%s4259_s1 + $0x780] sm:$0xff] }
 0x1f9   :  { %v1687_v47 = vadd.f32 %v1686_v42, %v1685_v43  ;;  %v1240_v42 = vmul.f32 %v2176_v41, %v2176_v41  ;;  %v1718_v43 = vsel %vm753_vm1, %v1238_v36, 0.0  ;;  %v2189_v36 = vld [vmem:[%s4259_s1 + $0x788] sm:$0xff] }
 0x1fb   :  { %v1689_v50 = vadd.f32 %v1688_v45, %v1687_v47  ;;  %v1241_v45 = vmul.f32 %v2177_v24, %v2177_v24  ;;  %v1720_v47 = vsel %vm753_vm1, %v1239_v62, 0.0  ;;  %v2190_v62 = vld [vmem:[%s4259_s1 + $0x790] sm:$0xff] }
 0x1fd   :  { %v1691_v30 = vadd.f32 %v1690_v17, %v1689_v50  ;;  %v1242_v17 = vmul.f32 %v2178_v49, %v2178_v49  ;;  %v1722_v50 = vsel %vm753_vm1, %v1240_v42, 0.0  ;;  %v2191_v42 = vld [vmem:[%s4259_s1 + $0x798] sm:$0xff] }
 0x1ff   :  { %v1693_v57 = vadd.f32 %v1692_v53, %v1691_v30  ;;  %v1243_v53 = vmul.f32 %v2179_v52, %v2179_v52  ;;  %v1724_v30 = vsel %vm753_vm1, %v1241_v45, 0.0  ;;  %v2192_v45 = vld [vmem:[%s4259_s1 + $0x7a0] sm:$0xff] }
 0x201   :  { %v1695_v63 = vadd.f32 %v1694_v56, %v1693_v57  ;;  %v1244_v56 = vmul.f32 %v2180_v55, %v2180_v55  ;;  %v1726_v57 = vsel %vm753_vm1, %v1242_v17, 0.0  ;;  %v2193_v17 = vld [vmem:[%s4259_s1 + $0x7a8] sm:$0xff] }
 0x203   :  { %v1697_v3 = vadd.f32 %v1696_v31, %v1695_v63  ;;  %v1245_v31 = vmul.f32 %v2181_v59, %v2181_v59  ;;  %v1728_v63 = vsel %vm753_vm1, %v1243_v53, 0.0  ;;  %v2194_v53 = vld [vmem:[%s4259_s1 + $0x7b0] sm:$0xff] }
 0x205   :  { %v1699_v7 = vadd.f32 %v1698_v2, %v1697_v3  ;;  %v1246_v2 = vmul.f32 %v2182_v1, %v2182_v1  ;;  %v1730_v3 = vsel %vm753_vm1, %v1244_v56, 0.0  ;;  %v2195_v56 = vld [vmem:[%s4259_s1 + $0x7b8] sm:$0xff] }
 0x207   :  { %v1701_v13 = vadd.f32 %v1700_v6, %v1699_v7  ;;  %v1247_v6 = vmul.f32 %v2183_v5, %v2183_v5  ;;  %v1732_v7 = vsel %vm753_vm1, %v1245_v31, 0.0  ;;  %v2196_v31 = vld [vmem:[%s4259_s1 + $0x7c0] sm:$0xff] }
 0x209   :  { %v1703_v16 = vadd.f32 %v1702_v12, %v1701_v13  ;;  %v1248_v12 = vmul.f32 %v2184_v11, %v2184_v11  ;;  %v1734_v13 = vsel %vm753_vm1, %v1246_v2, 0.0  ;;  %v2197_v2 = vld [vmem:[%s4259_s1 + $0x7c8] sm:$0xff] }
 0x20b   :  { %v1705_v9 = vadd.f32 %v1704_v15, %v1703_v16  ;;  %v1249_v15 = vmul.f32 %v2185_v14, %v2185_v14  ;;  %v1736_v16 = vsel %vm753_vm1, %v1247_v6, 0.0  ;;  %v2198_v6 = vld [vmem:[%s4259_s1 + $0x7d0] sm:$0xff] }
 0x20d   :  { %v1707_v25 = vadd.f32 %v1706_v8, %v1705_v9  ;;  %v1250_v8 = vmul.f32 %v2186_v19, %v2186_v19  ;;  %v1738_v9 = vsel %vm753_vm1, %v1248_v12, 0.0  ;;  %v1740_v26 = vsel %vm753_vm1, %v1249_v15, 0.0  ;;  %v2199_v12 = vld [vmem:[%s4259_s1 + $0x7d8] sm:$0xff]  ;;  %v2200_v15 = vld [vmem:[%s4259_s1 + $0x7e0] sm:$0xff] }
 0x20f   :  { %v1709_v29 = vadd.f32 %v1708_v23, %v1707_v25  ;;  %v2187_v23 = vld [vmem:[%s4259_s1 + $0x770] sm:$0xff] }
 0x210   :  { %v1251_v25 = vmul.f32 %v2187_v23, %v2187_v23  ;;  %v2202_v23 = vld [vmem:[%s4259_s1 + $0x7f0] sm:$0xff] }
 0x211   :  { %v1711_v34 = vadd.f32 %v1710_v28, %v1709_v29  ;;  %v1252_v28 = vmul.f32 %v996_v21, %v996_v21  ;;  %v1742_v29 = vsel %vm753_vm1, %v1250_v8, 0.0  ;;  %v2201_v8 = vld [vmem:[%s4259_s1 + $0x7e8] sm:$0xff] }
 0x213   :  { %v1713_v60 = vadd.f32 %v1712_v33, %v1711_v34  ;;  %v1253_v33 = vmul.f32 %v2188_v20, %v2188_v20  ;;  %v1744_v34 = vsel %vm753_vm1, %v1251_v25, 0.0  ;;  %v1267_v25 = vmul.f32 %v2202_v23, %v2202_v23 }
 0x215   :  { %v1715_v40 = vadd.f32 %v1714_v61, %v1713_v60  ;;  %v1254_v61 = vmul.f32 %v2189_v36, %v2189_v36  ;;  %v1746_v60 = vsel %vm753_vm1, %v1252_v28, 0.0  ;;  %v2203_v28 = vld [vmem:[%s4259_s1 + $0x7f8] sm:$0xff] }
 0x217   :  { %v1717_v44 = vadd.f32 %v1716_v38, %v1715_v40  ;;  %v1255_v38 = vmul.f32 %v2190_v62, %v2190_v62  ;;  %v1748_v40 = vsel %vm753_vm1, %v1253_v33, 0.0  ;;  %v1776_v33 = vsel %vm753_vm1, %v1267_v25, 0.0 }
 0x219   :  { %v1719_v48 = vadd.f32 %v1718_v43, %v1717_v44  ;;  %v1256_v43 = vmul.f32 %v2191_v42, %v2191_v42  ;;  %v1750_v44 = vsel %vm753_vm1, %v1254_v61, 0.0 }
 0x21b   :  { %v1721_v51 = vadd.f32 %v1720_v47, %v1719_v48  ;;  %v1257_v47 = vmul.f32 %v2192_v45, %v2192_v45  ;;  %v1752_v48 = vsel %vm753_vm1, %v1255_v38, 0.0 }
 0x21d   :  { %v1723_v54 = vadd.f32 %v1722_v50, %v1721_v51  ;;  %v1258_v50 = vmul.f32 %v2193_v17, %v2193_v17  ;;  %v1754_v51 = vsel %vm753_vm1, %v1256_v43, 0.0  ;;  %v1803_v17 = vpop.permute.xlu0 %1802 }
 0x21f   :  { %v1725_v58 = vadd.f32 %v1724_v30, %v1723_v54  ;;  %v1259_v30 = vmul.f32 %v2194_v53, %v2194_v53  ;;  %v1756_v54 = vsel %vm753_vm1, %v1257_v47, 0.0 }
 0x221   :  { %v1727_v0 = vadd.f32 %v1726_v57, %v1725_v58  ;;  %v1260_v57 = vmul.f32 %v2195_v56, %v2195_v56  ;;  %v1758_v58 = vsel %vm753_vm1, %v1258_v50, 0.0 }
 0x223   :  { %v1729_v4 = vadd.f32 %v1728_v63, %v1727_v0  ;;  %v1261_v63 = vmul.f32 %v2196_v31, %v2196_v31  ;;  %v1760_v0 = vsel %vm753_vm1, %v1259_v30, 0.0 }
 0x225   :  { %v1731_v10 = vadd.f32 %v1730_v3, %v1729_v4  ;;  %v1262_v3 = vmul.f32 %v2197_v2, %v2197_v2  ;;  %v1762_v4 = vsel %vm753_vm1, %v1260_v57, 0.0 }
 0x227   :  { %v1733_v39 = vadd.f32 %v1732_v7, %v1731_v10  ;;  %v1263_v7 = vmul.f32 %v2198_v6, %v2198_v6  ;;  %v1764_v10 = vsel %vm753_vm1, %v1261_v63, 0.0 }
 0x229   :  { %v1735_v18 = vadd.f32 %v1734_v13, %v1733_v39  ;;  %v1264_v13 = vmul.f32 %v2199_v12, %v2199_v12  ;;  %v1766_v39 = vsel %vm753_vm1, %v1262_v3, 0.0  ;;  %v2227_v3 = vmov 120.0  }
 0x22b   :  { %v1737_v22 = vadd.f32 %v1736_v16, %v1735_v18  ;;  %v1265_v16 = vmul.f32 %v2200_v15, %v2200_v15  ;;  %v1768_v18 = vsel %vm753_vm1, %v1263_v7, 0.0  ;;  %v1770_v21 = vsel %vm753_vm1, %v1264_v13, 0.0 }
 0x22d   :  { %v1739_v27 = vadd.f32 %v1738_v9, %v1737_v22  ;;  %v1266_v9 = vmul.f32 %v2201_v8, %v2201_v8 }
 0x22f   :  { %v1741_v32 = vadd.f32 %v1740_v26, %v1739_v27  ;;  %v1772_v26 = vsel %vm753_vm1, %v1265_v16, 0.0 }
 0x231   :  { %v1743_v35 = vadd.f32 %v1742_v29, %v1741_v32  ;;  %v1268_v29 = vmul.f32 %v2203_v28, %v2203_v28  ;;  %v1774_v32 = vsel %vm753_vm1, %v1266_v9, 0.0 }
 0x233   :  { %v1745_v37 = vadd.f32 %v1744_v34, %v1743_v35  ;;  %v1778_v35 = vsel %vm753_vm1, %v1268_v29, 0.0 }
 0x235   :  { %v1747_v41 = vadd.f32 %v1746_v60, %v1745_v37 }
 0x237   :  { %v1749_v24 = vadd.f32 %v1748_v40, %v1747_v41 }
 0x239   :  { %v1751_v49 = vadd.f32 %v1750_v44, %v1749_v24  ;;  %v1799_v24 = vlaneseq }
 0x23b   :  { %v1753_v52 = vadd.f32 %v1752_v48, %v1751_v49  ;;  %v1800_v48 = vand.u32 127, %v1799_v24 }
 0x23d   :  { %v1755_v55 = vadd.f32 %v1754_v51, %v1753_v52  ;;  %v1796_v51 = vld [vmem:[#allocation2] sm:$0xff]  ;;  %vm4174_vm5 = vcmp.eq.s32.totalorder %v1800_v48, %v1803_v17 }
 0x23f   :  { %v1757_v59 = vadd.f32 %v1756_v54, %v1755_v55 }
 0x241   :  { %v1759_v1 = vadd.f32 %v1758_v58, %v1757_v59 }
 0x243   :  { %v1761_v5 = vadd.f32 %v1760_v0, %v1759_v1  ;;  %v2226_v0 = vmov 8.0  }
 0x245   :  { %v1763_v11 = vadd.f32 %v1762_v4, %v1761_v5 }
 0x247   :  { %v1765_v14 = vadd.f32 %v1764_v10, %v1763_v11 }
 0x249   :  { %v1767_v19 = vadd.f32 %v1766_v39, %v1765_v14 }
 0x24b   :  { %v1769_v22 = vadd.f32 %v1768_v18, %v1767_v19 }
 0x24d   :  { %v1771_v27 = vadd.f32 %v1770_v21, %v1769_v22 }
 0x24f   :  { %v1773_v20 = vadd.f32 %v1772_v26, %v1771_v27 }
 0x251   :  { %v1775_v34 = vadd.f32 %v1774_v32, %v1773_v20 }
 0x253   :  { %v1777_v36 = vadd.f32 %v1776_v33, %v1775_v34 }
 0x255   :  { %v1779_v61 = vadd.f32 %v1778_v35, %v1777_v36 }
 0x257   :  { %v1780_v60 = vrot.slane %v1779_v61, 4 }
 0x259   :  { %v1781_v37 = vadd.f32 %v1780_v60, %v1779_v61 }
 0x25b   :  { %v1782_v62 = vrot.slane %v1781_v37, 2 }
 0x25d   :  { %v1783_v38 = vadd.f32 %v1782_v62, %v1781_v37  ;;  %v2228_v37 = vmov 0.0  }
 0x25f   :  { %v1784_v40 = vrot.slane %v1783_v38, 1 }
 0x261   :  { %v1785_v41 = vadd.f32 %v1784_v40, %v1783_v38 }
 0x263   :  { %2090 = vrsqrt.f32 %v1785_v41  ;;  %vm1792_vm2 = vweird.f32 %v1785_v41 }
 0x264   :  { %2092 = vrcp.f32 %v2226_v0 }
 0x265   :  { %2094 = vrcp.f32 %v2227_v3 }
 0x269   :  { %v2091_v42 = vpop.eup %2090 }
 0x26a   :  { %v1787_v43 = vmul.f32 %v2091_v42, %v1785_v41  ;;  %vm1793_vm3 = vweird.f32 %v2091_v42  ;;  %v2093_v1 = vpop.eup %2092 }
 0x26b   :  { %vm1794_vm4 = vmor %vm1792_vm2, %vm1793_vm3  ;;  %v1817_v2 = vmul.f32 8.0, %v2093_v1  ;;  %v2095_v5 = vpop.eup %2094  ;;  %vm1821_vm7 = vweird.f32 %v2093_v1  ;;  %vm755_vm2 = vcmask 1024  }
 0x26c   :  { %v1788_v44 = vmul.f32 %v2091_v42, %v1787_v43  ;;  %v1837_v12 = vmul.f32 120.0, %v2095_v5  ;;  %vm1841_vm10 = vweird.f32 %v2095_v5 }
 0x26d   :  { %v1818_v4 = vsub.f32 1.0, %v1817_v2 }
 0x26e   :  { %v1789_v45 = vmul.f32 0.5, %v1788_v44  ;;  %v1838_v21 = vsub.f32 1.0, %v1837_v12  ;;  %v1956_v44 = vsel %vm4174_vm5, 1.0, %v2228_v37  ;;  %v2205_v12 = vld [vmem:[%s4258_s0 + $0x58] sm:$0xff] }
 0x26f   :  { %v1819_v10 = vmul.f32 %v2093_v1, %v1818_v4 }
 0x270   :  { %v1790_v47 = vsub.f32 1.5, %v1789_v45  ;;  %v1839_v33 = vmul.f32 %v2095_v5, %v1838_v21  ;;  %v1957_v45 = vsel %vm753_vm1, %v1956_v44, 0.0 }
 0x271   :  { %v1820_v18 = vadd.f32 %v2093_v1, %v1819_v10  ;;  %v2204_v10 = vld [vmem:[%s4258_s0 + $0x50] sm:$0xff] }
 0x272   :  { %v1791_v49 = vmul.f32 %v2091_v42, %v1790_v47  ;;  %v1840_v61 = vadd.f32 %v2095_v5, %v1839_v33 }
 0x273   :  { %v1822_v20 = vsel %vm1821_vm7, %v2093_v1, %v1820_v18  ;;  %v2207_v18 = vld [vmem:[%s4258_s0 + $0x68] sm:$0xff] }
 0x274   :  { %v1795_v50 = vsel %vm1794_vm4, %v2091_v42, %v1791_v49  ;;  %v1842_v43 = vsel %vm1841_vm10, %v2095_v5, %v1840_v61  ;;  %v1958_v49 = vrot.slane %v1957_v45, 4 }
 0x275   :  { %v1797_v52 = vmul.f32 %v1796_v51, %v1795_v50 }
 0x276   :  { %v1959_v51 = vadd.f32 %v1958_v49, %v1957_v45  ;;  %v2208_v49 = vld [vmem:[%s4258_s0 + $0x70] sm:$0xff] }
 0x277   :  { %v2052_v30 = vadd.f32 -0.1, %v1797_v52  ;;  %v1805_v54 = vsel %vm4174_vm5, %v1797_v52, 0.0  ;;  %v1825_v63 = vsel %vm753_vm1, %v1797_v52, 0.0 }
 0x278   :  { %v1806_v55 = vsel %vm753_vm1, %v1805_v54, 0.0  ;;  %v1960_v54 = vrot.slane %v1959_v51, 2 }
 0x279   :  { %v1846_v56 = vsel %vm4174_vm5, %v2052_v30, %v1797_v52  ;;  %1807 = vadd.xlane.f32.xlu2 %v1806_v55 }
 0x27a   :  { %v1847_v57 = vmul.f32 2.0, %v1846_v56 }
 0x27c   :  { %v1848_v58 = vsel %vm753_vm1, %v1847_v57, -inf  ;;  %v1851_v59 = vsel %vm4174_vm5, %v1847_v57, 0.0 }
 0x27d   :  { %1849 = vmax.xlane.f32.xlu0 %v1848_v58  ;;  %v1852_v31 = vsel %vm753_vm1, %v1851_v59, 0.0  ;;  %v1961_v58 = vadd.f32 %v1960_v54, %v1959_v51 }
 0x27e   :  { %1853 = vadd.xlane.f32.xlu1 %v1852_v31 }
 0x27f   :  { %v1962_v1 = vrot.slane %v1961_v58, 1 }
 0x281   :  { %1826 = vadd.xlane.f32.xlu2 %v1825_v63  ;;  %v1963_v5 = vadd.f32 %v1962_v1, %v1961_v58 }
 0x2ec   :  { %v1808_v6 = vpop.xlane.xlu2 %1807 }
 0x2ed   :  { %v1809_v7 = vrot.slane %v1808_v6, 4 }
 0x2ef   :  { %v1810_v11 = vadd.f32 %v1809_v7, %v1808_v6  ;;  %v1964_v6 = vmul.f32 %v1963_v5, %v1963_v5 }
 0x2f0   :  { %v4188_v13 = vpop.xlane.xlu0 %1849 }
 0x2f1   :  { %v1811_v39 = vrot.slane %v1810_v11, 2  ;;  %v1855_v14 = vsub.f32 %v1847_v57, %v4188_v13  ;;  %vm1910_vm6 = vcmp.eq.f32.partialorder %v1847_v57, %v4188_v13  ;;  %v4192_v15 = vpop.xlane.xlu1 %1853  ;;  %v1966_v7 = vsel %vm1965_vm12, %v1964_v6, 0.0 }
 0x2f2   :  { %v1911_v16 = vsel %vm1910_vm6, %v1800_v48, 16  ;;  %v1866_v25 = vsub.f32 %v4188_v13, %v4192_v15 }
 0x2f3   :  { %v1856_v19 = vmul.f32 1.442695, %v1855_v14  ;;  %v1912_v8 = vsel %vm753_vm1, %v1911_v16, 2147483647  ;;  %v1812_v9 = vadd.f32 %v1811_v39, %v1810_v11  ;;  %v667_v11 = vrot.slane %v2204_v10, 4 }
 0x2f4   :  { %v1827_v22 = vpop.xlane.xlu2 %1826  ;;  %v1914_v23 = vshra.s32 %v1912_v8, 16  ;;  %vm1867_vm8 = vcmp.gt.f32.partialorder %v1866_v25, 0.0  ;;  %v1913_v24 = vand.u32 65535, %v1912_v8 }
 0x2f5   :  { %2096 = vpow2.f32 %v1856_v19  ;;  %v1828_v26 = vrot.slane %v1827_v22, 4  ;;  %v1813_v27 = vrot.slane %v1812_v9, 1  ;;  %v2053_v62 = vsel %vm1867_vm8, 1.0, %v2228_v37 }
 0x2f6   :  { %v1916_v28 = vcvt.s32.f32 %v1914_v23  ;;  %v1871_v41 = vsel %vm1870_vm9, %v2053_v62, 0.0  ;;  %v1915_v48 = vcvt.s32.f32 %v1913_v24  ;;  %v668_v39 = vadd.f32 %v2204_v10, %v667_v11 }
 0x2f7   :  { %v1829_v29 = vadd.f32 %v1828_v26, %v1827_v22  ;;  %v1814_v32 = vadd.f32 %v1813_v27, %v1812_v9  ;;  %v685_v19 = vrot.slane %v2207_v18, 4 }
 0x2f8   :  { %1917 = vmin.xlane.f32.xlu1 %v1916_v28  ;;  %v669_v8 = vrot.slane %v668_v39, 2 }
 0x2f9   :  { %v1830_v34 = vrot.slane %v1829_v29, 2  ;;  %2056 = vpush %v1814_v32  ;;  %v686_v22 = vadd.f32 %v2207_v18, %v685_v19 }
 0x2fa   :  { %2058 = vpush %v1822_v20  ;;  %v670_v23 = vadd.f32 %v669_v8, %v668_v39 }
 0x2fb   :  { %v2097_v35 = vpop.eup %2096  ;;  %v1831_v36 = vadd.f32 %v1830_v34, %v1829_v29  ;;  %v687_v27 = vrot.slane %v686_v22, 2 }
 0x2fc   :  { %v1858_v60 = vsel %vm4174_vm5, 0.0, %v2097_v35 }
 0x2fd   :  { %v1859_v38 = vsel %vm753_vm1, %v1858_v60, 0.0  ;;  %v1832_v40 = vrot.slane %v1831_v36, 1  ;;  %v688_v20 = vadd.f32 %v687_v27, %v686_v22 }
 0x2fe   :  { %1860 = vadd.xlane.f32.xlu2 %v1859_v38 }
 0x2ff   :  { %v1833_v42 = vadd.f32 %v1832_v40, %v1831_v36  ;;  %v689_v36 = vrot.slane %v688_v20, 1 }
 0x300   :  { %1872 = vadd.xlane.f32.xlu1 %v1871_v41 }
 0x301   :  { %2060 = vpush %v1833_v42  ;;  %v690_v38 = vadd.f32 %v689_v36, %v688_v20 }
 0x302   :  { %2062 = vpush %v1842_v43 }
 0x303   :  { %v716_v43 = vmul.f32 %v2207_v18, %v690_v38 }
 0x32a   :  { %s2057_s1 = spop %2056 }
 0x32b   :  { %s4202_s17 = spop %2058 }
 0x32c   :  { %s1824_s18 = smul.f32 %s4202_s17, %s2057_s1 }
 0x32e   :  { %2026 = sst [smem:[#allocation4 + $0x2]] %s1824_s18 }
 0x332   :  { %s2061_s19 = spop %2060 }
 0x333   :  { %s1835_s20 = ssub.f32 %s2061_s19, %s2057_s1  ;;  %s2063_s21 = spop %2062 }
 0x335   :  { %s1844_s22 = smul.f32 %s2063_s21, %s1835_s20 }
 0x337   :  { %2028 = sst [smem:[#allocation4 + $0x3]] %s1844_s22 }
 0x36b   :  { %v4209_v47 = vpop.xlane.xlu1 %1917 }
 0x36c   :  { %vm1919_vm11 = vcmp.eq.f32.partialorder %v1916_v28, %v4209_v47  ;;  %v671_v28 = vrot.slane %v670_v23, 1 }
 0x36d   :  { %v1920_v17 = vsel %vm1919_vm11, %v1915_v48, inf  ;;  %v745_v48 = vsel %vm719_vm0, %v716_v43, 0.0 }
 0x36e   :  { %1921 = vmin.xlane.f32.xlu1 %v1920_v17  ;;  %v672_v33 = vadd.f32 %v671_v28, %v670_v23  ;;  %v691_v17 = vrot.slane %v2208_v49, 4 }
 0x370   :  { %v713_v61 = vmul.f32 %v2204_v10, %v672_v33 }
 0x371   :  { %v1861_v50 = vpop.xlane.xlu2 %1860 }
 0x372   :  { %2098 = vlog2.f32 %v1861_v50  ;;  %v739_v40 = vsel %vm719_vm0, %v713_v61, 0.0 }
 0x373   :  { %v1873_v52 = vpop.xlane.xlu1 %1872  ;;  %v740_v44 = vadd.f32 %v739_v40, %v3110_v46 }
 0x374   :  { %v1874_v30 = vrot.slane %v1873_v52, 4 }
 0x376   :  { %v1875_v55 = vadd.f32 %v1874_v30, %v1873_v52  ;;  %v692_v52 = vadd.f32 %v2208_v49, %v691_v17  ;;  %v2209_v30 = vld [vmem:[%s4258_s0 + $0x78] sm:$0xff] }
 0x377   :  { %v697_v54 = vrot.slane %v2209_v30, 4 }
 0x378   :  { %v2099_v53 = vpop.eup %2098  ;;  %v1876_v56 = vrot.slane %v1875_v55, 2 }
 0x379   :  { %v1863_v57 = vmul.f32 0.6931472, %v2099_v53  ;;  %v698_v46 = vadd.f32 %v2209_v30, %v697_v54 }
 0x37a   :  { %v1877_v59 = vadd.f32 %v1876_v56, %v1875_v55  ;;  %v693_v55 = vrot.slane %v692_v52, 2 }
 0x37b   :  { %v1864_v31 = vadd.f32 %v1863_v57, %v4188_v13  ;;  %v673_v13 = vrot.slane %v2205_v12, 4  ;;  %v699_v56 = vrot.slane %v698_v46, 2 }
 0x37c   :  { %v1878_v63 = vrot.slane %v1877_v59, 1  ;;  %v694_v53 = vadd.f32 %v693_v55, %v692_v52 }
 0x37d   :  { %v1865_v0 = vsub.f32 %v1864_v31, %v4192_v15  ;;  %v674_v14 = vadd.f32 %v2205_v12, %v673_v13  ;;  %v2206_v15 = vld [vmem:[%s4258_s0 + $0x60] sm:$0xff]  ;;  %v700_v58 = vadd.f32 %v699_v56, %v698_v46 }
 0x37e   :  { %v1879_v2 = vadd.f32 %v1878_v63, %v1877_v59  ;;  %v679_v16 = vrot.slane %v2206_v15, 4  ;;  %v695_v57 = vrot.slane %v694_v53, 1  ;;  %v1924_v59 = vcvt.f32.s32 %v4209_v47 }
 0x37f   :  { %v1881_v3 = vmul.f32 %v2053_v62, %v1865_v0  ;;  %v675_v9 = vrot.slane %v674_v14, 2  ;;  %v701_v63 = vrot.slane %v700_v58, 1 }
 0x380   :  { %2064 = vpush %v1879_v2  ;;  %v680_v21 = vadd.f32 %v2206_v15, %v679_v16  ;;  %v696_v31 = vadd.f32 %v695_v57, %v694_v53  ;;  %v1925_v1 = vshll.u32 %v1924_v59, 16 }
 0x381   :  { %v1882_v4 = vsel %vm1870_vm9, %v1881_v3, 0.0  ;;  %v676_v25 = vadd.f32 %v675_v9, %v674_v14  ;;  %v702_v3 = vadd.f32 %v701_v63, %v700_v58 }
 0x382   :  { %1883 = vadd.xlane.f32.xlu2 %v1882_v4  ;;  %v681_v26 = vrot.slane %v680_v21, 2  ;;  %v717_v4 = vmul.f32 %v2208_v49, %v696_v31 }
 0x383   :  { %v677_v29 = vrot.slane %v676_v25, 1  ;;  %v718_v10 = vmul.f32 %v2209_v30, %v702_v3 }
 0x384   :  { %v682_v32 = vadd.f32 %v681_v26, %v680_v21  ;;  %v747_v47 = vsel %vm719_vm0, %v717_v4, 0.0 }
 0x385   :  { %v678_v34 = vadd.f32 %v677_v29, %v676_v25  ;;  %v749_v39 = vsel %vm719_vm0, %v718_v10, 0.0 }
 0x386   :  { %v683_v35 = vrot.slane %v682_v32, 1 }
 0x387   :  { %v714_v60 = vmul.f32 %v2205_v12, %v678_v34 }
 0x388   :  { %v684_v62 = vadd.f32 %v683_v35, %v682_v32 }
 0x389   :  { %v741_v41 = vsel %vm719_vm0, %v714_v60, 0.0 }
 0x38a   :  { %1967 = vadd.xlane.f32.xlu2 %v1966_v7  ;;  %v715_v42 = vmul.f32 %v2206_v15, %v684_v62  ;;  %v742_v24 = vadd.f32 %v741_v41, %v740_v44  ;;  %v2210_v7 = vld [vmem:[%s4260_s2] sm:$0xff] }
 0x38c   :  { %v743_v45 = vsel %vm719_vm0, %v715_v42, 0.0 }
 0x38d   :  { %v744_v50 = vadd.f32 %v743_v45, %v742_v24 }
 0x38f   :  { %v746_v51 = vadd.f32 %v745_v48, %v744_v50 }
 0x391   :  { %v748_v13 = vadd.f32 %v747_v47, %v746_v51 }
 0x393   :  { %v750_v15 = vadd.f32 %v749_v39, %v748_v13 }
 0x3b1   :  { %s2065_s8 = spop %2064 }
 0x3b2   :  { %s1892_s10 = smax.f32 %s2229_s9, %s2065_s8 }
 0x3b3   :  { %v1893_v5 = vstv %s1892_s10  ;;  %s2231_s10 = smov [#allocation4]  }
 0x3b4   :  { %2100 = vrcp.f32 %v1893_v5  ;;  %vm1899_vm15 = vweird.f32 %v1893_v5  ;;  %v1903_v26 = vand.u32 2147483647, %v1893_v5 }
 0x3b6   :  { %vm1904_vm0 = vcmp.eq.f32.partialorder %v1903_v26, 8.507059e+37 }
 0x3ba   :  { %v2101_v14 = vpop.eup %2100 }
 0x3bb   :  { %v1895_v16 = vmul.f32 %v2101_v14, %v1893_v5  ;;  %vm1900_vm14 = vweird.f32 %v2101_v14 }
 0x3bc   :  { %vm1901_vm1 = vmor %vm1899_vm15, %vm1900_vm14 }
 0x3bd   :  { %v1896_v18 = vsub.f32 1.0, %v1895_v16 }
 0x3bf   :  { %v1897_v9 = vmul.f32 %v2101_v14, %v1896_v18 }
 0x3c1   :  { %v1898_v23 = vadd.f32 %v2101_v14, %v1897_v9 }
 0x3c3   :  { %v1902_v28 = vsel %vm1901_vm1, %v2101_v14, %v1898_v23 }
 0x3e1   :  { %v1922_v0 = vpop.xlane.xlu1 %1921 }
 0x3e2   :  { %v1923_v2 = vcvt.f32.s32 %v1922_v0 }
 0x3e4   :  { %v1926_v6 = vadd.s32 %v1925_v1, %v1923_v2 }
 0x3e6   :  { %vm1927_vm13 = vcmp.eq.s32.totalorder %v1926_v6, %v2210_v7 }
 0x3e7   :  { %v2054_v11 = vsel %vm1927_vm13, 1.0, %v2228_v37  ;;  %v1905_v37 = vand.u32 2147483648, %v1893_v5 }
 0x3e8   :  { %v1930_v12 = vsel %vm1870_vm9, %v2054_v11, 0.0 }
 0x3e9   :  { %1931 = vadd.xlane.f32.xlu1 %v1930_v12  ;;  %v1906_v32 = vor.u32 1.1754944e-38, %v1905_v37 }
 0x3eb   :  { %v1907_v20 = vsel %vm1904_vm0, %v1906_v32, %v1902_v28 }
 0x3f1   :  { %751 = vadd.xlane.f32.xlu1 %v750_v15 }
 0x3f5   :  { %v1884_v19 = vpop.xlane.xlu2 %1883 }
 0x3f6   :  { %v1885_v8 = vrot.slane %v1884_v19, 4 }
 0x3f8   :  { %v1886_v21 = vadd.f32 %v1885_v8, %v1884_v19 }
 0x3fa   :  { %v1887_v22 = vrot.slane %v1886_v21, 2 }
 0x3fc   :  { %v1888_v25 = vadd.f32 %v1887_v22, %v1886_v21 }
 0x3fd   :  { %v1968_v33 = vpop.xlane.xlu2 %1967 }
 0x3fe   :  { %v1889_v27 = vrot.slane %v1888_v25, 1  ;;  %v1969_v34 = vrot.slane %v1968_v33, 4 }
 0x400   :  { %v1890_v29 = vadd.f32 %v1889_v27, %v1888_v25  ;;  %v1970_v61 = vadd.f32 %v1969_v34, %v1968_v33 }
 0x402   :  { %2066 = vpush %v1890_v29  ;;  %v1971_v38 = vrot.slane %v1970_v61, 2 }
 0x403   :  { %2068 = vpush %v1907_v20 }
 0x404   :  { %v1972_v43 = vadd.f32 %v1971_v38, %v1970_v61 }
 0x406   :  { %v1973_v24 = vrot.slane %v1972_v43, 1 }
 0x408   :  { %v1974_v49 = vadd.f32 %v1973_v24, %v1972_v43 }
 0x433   :  { %s2067_s2 = spop %2066 }
 0x434   :  { %s2069_s12 = spop %2068 }
 0x435   :  { %s1909_s13 = smul.f32 %s2069_s12, %s2067_s2 }
 0x437   :  { %2022 = sst [smem:[#allocation4]] %s1909_s13 }
 0x45c   :  { %v1932_v35 = vpop.xlane.xlu1 %1931 }
 0x45d   :  { %v1933_v36 = vrot.slane %v1932_v35, 4 }
 0x45f   :  { %v1934_v60 = vadd.f32 %v1933_v36, %v1932_v35 }
 0x461   :  { %v1935_v62 = vrot.slane %v1934_v60, 2 }
 0x463   :  { %v1936_v40 = vadd.f32 %v1935_v62, %v1934_v60 }
 0x464   :  { %v752_v41 = vpop.xlane.xlu1 %751 }
 0x465   :  { %756 = vst.msk [vmem:[#allocation3] sm:$0x3] %vm755_vm2, %v752_v41  ;;  %v1937_v42 = vrot.slane %v1936_v40, 1 }
 0x467   :  { %v1938_v44 = vadd.f32 %v1937_v42, %v1936_v40 }
 0x469   :  { %2070 = vpush %v1938_v44 }
 0x46c   :  { %v1949_v45 = vld [vmem:[#allocation3] sm:$0x3] }
 0x46d   :  { %2072 = vpush %v1949_v45  ;;  %v1953_v48 = vrot.slane %v1949_v45, 1 }
 0x46f   :  { %2074 = vpush %v1953_v48 }
 0x470   :  { %2076 = vpush %v1974_v49 }
 0x49a   :  { %s2071_s15 = spop %2070 }
 0x49b   :  { %s1948_s16 = smul.f32 %s2071_s15, %s4202_s17 }
 0x49d   :  { %2024 = sst [smem:[#allocation4 + $0x1]] %s1948_s16 }
 0x49e   :  { %s2073_s1 = spop %2072 }
 0x4a0   :  { %s2075_s18 = spop %2074 }
 0x4a1   :  { %s2077_s19 = spop %2076 }
 0x4a2   :  { %s2055_s20 = sadd.f32 -8.0, %s2077_s19 }
 0x4a3   :  { %s1977_s21 = ssub.f32 64.0, %s2077_s19 }
 0x4a4   :  { %s1979_s22 = ssub.f32 64.0, %s2055_s20  ;;  %s1982_s23 = smax.f32 %s2229_s9, %s2055_s20 }
 0x4a5   :  { %v1983_v17 = vstv %s1982_s23  ;;  %s2001_s24 = ssub.f32 64.0, %s1977_s21  ;;  %v2004_v50 = vstv %s1977_s21  ;;  %s1978_s25 = smul.f32 %s2075_s18, %s2055_s20 }
 0x4a6   :  { %2102 = vrcp.f32 %v1983_v17  ;;  %s1980_s26 = smul.f32 %s2073_s1, %s1979_s22  ;;  %v1995_v46 = vand.u32 2147483648, %v1983_v17  ;;  %v1993_v57 = vand.u32 2147483647, %v1983_v17  ;;  %v2016_v58 = vand.u32 2147483648, %v2004_v50 }
 0x4a7   :  { %2104 = vrcp.f32 %v2004_v50  ;;  %s2000_s27 = smul.f32 %s2075_s18, %s1977_s21  ;;  %v2014_v31 = vand.u32 2147483647, %v2004_v50  ;;  %vm1989_vm5 = vweird.f32 %v1983_v17  ;;  %vm2010_vm7 = vweird.f32 %v2004_v50 }
 0x4a8   :  { %s4249_s28 = sadd.f32 %s1980_s26, %s1978_s25  ;;  %s2002_s17 = smul.f32 %s2073_s1, %s2001_s24  ;;  %v1996_v0 = vor.u32 1.1754944e-38, %v1995_v46  ;;  %vm1994_vm8 = vcmp.eq.f32.partialorder %v1993_v57, 8.507059e+37  ;;  %v2017_v3 = vor.u32 1.1754944e-38, %v2016_v58 }
 0x4a9   :  { %vm2015_vm10 = vcmp.eq.f32.partialorder %v2014_v31, 8.507059e+37 }
 0x4aa   :  { %s4251_s29 = sadd.f32 %s2002_s17, %s2000_s27 }
 0x4ac   :  { %v2103_v51 = vpop.eup %2102 }
 0x4ad   :  { %v2105_v52 = vpop.eup %2104  ;;  %v1985_v30 = vmul.f32 %v2103_v51, %v1983_v17  ;;  %vm1990_vm3 = vweird.f32 %v2103_v51 }
 0x4ae   :  { %v2006_v54 = vmul.f32 %v2105_v52, %v2004_v50  ;;  %vm2011_vm4 = vweird.f32 %v2105_v52  ;;  %vm1991_vm6 = vmor %vm1989_vm5, %vm1990_vm3 }
 0x4af   :  { %v1986_v55 = vsub.f32 1.0, %v1985_v30  ;;  %vm2012_vm9 = vmor %vm2010_vm7, %vm2011_vm4 }
 0x4b0   :  { %v2007_v53 = vsub.f32 1.0, %v2006_v54 }
 0x4b1   :  { %v1987_v56 = vmul.f32 %v2103_v51, %v1986_v55 }
 0x4b2   :  { %v2008_v59 = vmul.f32 %v2105_v52, %v2007_v53 }
 0x4b3   :  { %v1988_v63 = vadd.f32 %v2103_v51, %v1987_v56 }
 0x4b4   :  { %v2009_v1 = vadd.f32 %v2105_v52, %v2008_v59 }
 0x4b5   :  { %v1992_v2 = vsel %vm1991_vm6, %v2103_v51, %v1988_v63 }
 0x4b6   :  { %v1997_v4 = vsel %vm1994_vm8, %v1996_v0, %v1992_v2  ;;  %v2013_v5 = vsel %vm2012_vm9, %v2105_v52, %v2009_v1 }
 0x4b7   :  { %2078 = vpush %v1997_v4  ;;  %v2018_v6 = vsel %vm2015_vm10, %v2017_v3, %v2013_v5 }
 0x4b8   :  { %2080 = vpush %v2018_v6 }
 0x4e8   :  { %s2079_s6 = spop %2078 }
 0x4e9   :  { %s1999_s7 = smul.f32 %s2079_s6, %s4249_s28  ;;  %s2081_s8 = spop %2080 }
 0x4ea   :  { %s2020_s9 = smul.f32 %s2081_s8, %s4251_s29 }
 0x4eb   :  { %2030 = sst [smem:[#allocation4 + $0x4]] %s1999_s7 }
 0x4ec   :  { %2032 = sst [smem:[#allocation4 + $0x5]] %s2020_s9 }
 0x4ed   :  { %2045 = dma.smem_to_hbm %s2231_s10, 16, %s2043_s5, [#allocation5]  }
 0x4ee   :  { %2223 = dma.done.wait [#allocation5], 16  }
 0x4ef   :  { %2224 = vsyncadd [#allocation5], 4294967280 }
 0x4f0   :  { %2050 = sfence }
 0x4f1   :  { %2051 = vsyncpa [#allocation5], 1 }

</bundles_post_ra>
